<compile_context>
chip_gen: v7x
topology: tpu7x:2x2x1
jax: 0.10.0
libtpu: 0.0.40
codegen_flags: <defaults>
</compile_context>

<pallas_src>
import functools

import jax
import jax.numpy as jnp
from jax.experimental import pallas as pl
from jax.experimental.pallas import tpu as pltpu

_EPS = 1e-5
_LANE = 128
_ROW_TILE = 256

_COMPILER_PARAMS = pltpu.CompilerParams(
    dimension_semantics=("parallel",),
    vmem_limit_bytes=48 * 1024 * 1024,
)


# ------------------------------ small helpers -------------------------------

def _round_up(x, m):
    return (x + m - 1) // m * m


def _row_tile(m):
    return min(_ROW_TILE, _round_up(m, 8))


def _pad2(a, rows, cols):
    return jnp.pad(a, ((0, rows - a.shape[0]), (0, cols - a.shape[1])))


def _pad_rows(a, rows):
    return jnp.pad(a, ((0, rows - a.shape[0]), (0, 0)))


def _pad_vec(v, cols):
    return jnp.pad(v.astype(jnp.float32), (0, cols - v.shape[0])).reshape(1, cols)


def _phase_split(xp, stride):
    """[N,Hp,Wp,C] -> [stride*stride, N, ceil(Hp/s), ceil(Wp/s), C] phase stack."""
    n, hp, wp, c = xp.shape
    hph = -(-hp // stride)
    wph = -(-wp // stride)
    xp = jnp.pad(xp, ((0, 0), (0, hph * stride - hp),
                      (0, wph * stride - wp), (0, 0)))
    phases = [xp[:, py::stride, px::stride, :]
              for py in range(stride) for px in range(stride)]
    return jnp.stack(phases, axis=0)


# ------------------------- in-kernel helpers (traced) ------------------------

def _bn_coeffs(st_ref, g_ref, b_ref, count):
    """Per-channel (scale, shift) from accumulated (sum, sum-of-squares)."""
    inv_n = 1.0 / float(count)
    mean = st_ref[0:1, :] * inv_n
    var = jnp.maximum(st_ref[1:2, :] * inv_n - mean * mean, 0.0)
    scale = g_ref[...] * jax.lax.rsqrt(var + _EPS)
    shift = b_ref[...] - mean * scale
    return scale, shift


def _masked_stats(y, rows_real):
    """Partial (sum, sumsq) over this block's rows, ignoring row padding."""
    rows = y.shape[0]
    rid = jax.lax.broadcasted_iota(jnp.int32, (rows, 1), 0) + pl.program_id(0) * rows
    mask = (rid < rows_real).astype(jnp.float32)
    ym = y * mask
    return jnp.sum(ym, axis=0, keepdims=True), jnp.sum(ym * y, axis=0, keepdims=True)


# --------------------------------- kernels ----------------------------------

def _conv1x1_stats_kernel(x_ref, w_ref, y_ref, st_ref, *, rows_real):
    # bf16 x bf16 -> f32 on the MXU, fused per-block BN statistics.
    y = jnp.dot(x_ref[...], w_ref[...], preferred_element_type=jnp.float32)
    y_ref[...] = y
    s1, s2 = _masked_stats(y, rows_real)
    st_ref[0:1, :] = s1
    st_ref[1:2, :] = s2


def _bn_act_kernel(x_ref, st_ref, g_ref, b_ref, o_ref, *, count, relu):
    scale, shift = _bn_coeffs(st_ref, g_ref, b_ref, count)
    y = x_ref[...] * scale + shift
    if relu:
        y = jnp.maximum(y, 0.0)
    o_ref[...] = y.astype(o_ref.dtype)


def _conv3x3_stats_kernel(xph_ref, w_ref, b_ref, y_ref, st_ref, *, stride, ho, wo):
    # 3x3 conv for one batch element: nine tap matmuls accumulated in f32.
    # xph_ref is the stride-phase decomposition of the spatially padded input,
    # so every tap is a *contiguous static* slice (no HBM im2col).
    cout = w_ref.shape[-1]
    acc = jnp.zeros((ho * wo, cout), jnp.float32)
    for dy in range(3):
        for dx in range(3):
            ph = (dy % stride) * stride + (dx % stride)
            r0, c0 = dy // stride, dx // stride
            xs = xph_ref[ph, r0:r0 + ho, c0:c0 + wo, :]
            xs = xs.reshape(ho * wo, xs.shape[-1])
            acc = acc + jnp.dot(xs, w_ref[dy * 3 + dx],
                                preferred_element_type=jnp.float32)
    acc = acc + b_ref[...]
    y_ref[...] = acc
    st_ref[0:1, :] = jnp.sum(acc, axis=0, keepdims=True)
    st_ref[1:2, :] = jnp.sum(acc * acc, axis=0, keepdims=True)


def _bn_conv1x1_stats_kernel(x_ref, stin_ref, g_ref, b_ref, w_ref, y_ref,
                             stout_ref, *, count, rows_real):
    # BN(previous stage) + ReLU fused as the matmul prologue, then the 1x1 conv
    # and the next stage's BN statistics.
    scale, shift = _bn_coeffs(stin_ref, g_ref, b_ref, count)
    a = jnp.maximum(x_ref[...] * scale + shift, 0.0)
    y = jnp.dot(a.astype(jnp.bfloat16), w_ref[...],
                preferred_element_type=jnp.float32)
    y_ref[...] = y
    s1, s2 = _masked_stats(y, rows_real)
    stout_ref[0:1, :] = s1
    stout_ref[1:2, :] = s2


def _bn_residual_act_kernel(*refs, count_main, count_res, residual_has_bn):
    # BN3 + (BN of projected residual | identity residual) + add + ReLU.
    if residual_has_bn:
        (y_ref, st_ref, g_ref, b_ref,
         r_ref, str_ref, gr_ref, br_ref, o_ref) = refs
    else:
        y_ref, st_ref, g_ref, b_ref, r_ref, o_ref = refs
    scale, shift = _bn_coeffs(st_ref, g_ref, b_ref, count_main)
    out = y_ref[...] * scale + shift
    if residual_has_bn:
        scale_r, shift_r = _bn_coeffs(str_ref, gr_ref, br_ref, count_res)
        res = r_ref[...] * scale_r + shift_r
    else:
        res = r_ref[...]
    o_ref[...] = jnp.maximum(out + res, 0.0)


# ----------------------------- pallas_call wrappers --------------------------

def _conv1x1_stats(x, w, tm, rows_real):
    mp, k = x.shape
    c = w.shape[1]
    gm = mp // tm
    y, st = pl.pallas_call(
        functools.partial(_conv1x1_stats_kernel, rows_real=rows_real),
        grid=(gm,),
        in_specs=[
            pl.BlockSpec((tm, k), lambda m: (m, 0)),
            pl.BlockSpec((k, c), lambda m: (0, 0)),
        ],
        out_specs=[
            pl.BlockSpec((tm, c), lambda m: (m, 0)),
            pl.BlockSpec((None, 2, c), lambda m: (m, 0, 0)),
        ],
        out_shape=[
            jax.ShapeDtypeStruct((mp, c), jnp.float32),
            jax.ShapeDtypeStruct((gm, 2, c), jnp.float32),
        ],
        compiler_params=_COMPILER_PARAMS,
    )(x, w)
    return y, jnp.sum(st, axis=0)


def _bn_act(y, stats, gamma, beta, tm, count, *, relu, out_dtype):
    mp, c = y.shape
    gm = mp // tm
    return pl.pallas_call(
        functools.partial(_bn_act_kernel, count=count, relu=relu),
        grid=(gm,),
        in_specs=[
            pl.BlockSpec((tm, c), lambda m: (m, 0)),
            pl.BlockSpec((2, c), lambda m: (0, 0)),
            pl.BlockSpec((1, c), lambda m: (0, 0)),
            pl.BlockSpec((1, c), lambda m: (0, 0)),
        ],
        out_specs=pl.BlockSpec((tm, c), lambda m: (m, 0)),
        out_shape=jax.ShapeDtypeStruct((mp, c), out_dtype),
        compiler_params=_COMPILER_PARAMS,
    )(y, stats, gamma, beta)


def _conv3x3_stats(xph, w_taps, bias, stride, ho, wo):
    phn, n, hph, wph, c = xph.shape
    cout = w_taps.shape[-1]
    y, st = pl.pallas_call(
        functools.partial(_conv3x3_stats_kernel, stride=stride, ho=ho, wo=wo),
        grid=(n,),
        in_specs=[
            pl.BlockSpec((phn, None, hph, wph, c), lambda b: (0, b, 0, 0, 0)),
            pl.BlockSpec((9, c, cout), lambda b: (0, 0, 0)),
            pl.BlockSpec((1, cout), lambda b: (0, 0)),
        ],
        out_specs=[
            pl.BlockSpec((None, ho * wo, cout), lambda b: (b, 0, 0)),
            pl.BlockSpec((None, 2, cout), lambda b: (b, 0, 0)),
        ],
        out_shape=[
            jax.ShapeDtypeStruct((n, ho * wo, cout), jnp.float32),
            jax.ShapeDtypeStruct((n, 2, cout), jnp.float32),
        ],
        compiler_params=_COMPILER_PARAMS,
    )(xph, w_taps, bias)
    return y.reshape(n * ho * wo, cout), jnp.sum(st, axis=0)


def _bn_conv1x1_stats(x, stats_in, gamma, beta, w, tm, count, rows_real):
    mp, cin = x.shape
    cout = w.shape[1]
    gm = mp // tm
    y, st = pl.pallas_call(
        functools.partial(_bn_conv1x1_stats_kernel, count=count,
                          rows_real=rows_real),
        grid=(gm,),
        in_specs=[
            pl.BlockSpec((tm, cin), lambda m: (m, 0)),
            pl.BlockSpec((2, cin), lambda m: (0, 0)),
            pl.BlockSpec((1, cin), lambda m: (0, 0)),
            pl.BlockSpec((1, cin), lambda m: (0, 0)),
            pl.BlockSpec((cin, cout), lambda m: (0, 0)),
        ],
        out_specs=[
            pl.BlockSpec((tm, cout), lambda m: (m, 0)),
            pl.BlockSpec((None, 2, cout), lambda m: (m, 0, 0)),
        ],
        out_shape=[
            jax.ShapeDtypeStruct((mp, cout), jnp.float32),
            jax.ShapeDtypeStruct((gm, 2, cout), jnp.float32),
        ],
        compiler_params=_COMPILER_PARAMS,
    )(x, stats_in, gamma, beta, w)
    return y, jnp.sum(st, axis=0)


def _bn_residual_act(y, stats, gamma, beta, res, tm, count_main, res_bn=None):
    mp, c = y.shape
    gm = mp // tm
    row_spec = pl.BlockSpec((tm, c), lambda m: (m, 0))
    st_spec = pl.BlockSpec((2, c), lambda m: (0, 0))
    vec_spec = pl.BlockSpec((1, c), lambda m: (0, 0))
    if res_bn is None:
        kern = functools.partial(_bn_residual_act_kernel, count_main=count_main,
                                 count_res=1, residual_has_bn=False)
        args = (y, stats, gamma, beta, res)
        in_specs = [row_spec, st_spec, vec_spec, vec_spec, row_spec]
    else:
        stats_r, gamma_r, beta_r, count_res = res_bn
        kern = functools.partial(_bn_residual_act_kernel, count_main=count_main,
                                 count_res=count_res, residual_has_bn=True)
        args = (y, stats, gamma, beta, res, stats_r, gamma_r, beta_r)
        in_specs = [row_spec, st_spec, vec_spec, vec_spec,
                    row_spec, st_spec, vec_spec, vec_spec]
    return pl.pallas_call(
        kern,
        grid=(gm,),
        in_specs=in_specs,
        out_specs=row_spec,
        out_shape=jax.ShapeDtypeStruct((mp, c), jnp.float32),
        compiler_params=_COMPILER_PARAMS,
    )(*args)


# ------------------------------- forward pass -------------------------------

def bottleneck_forward(x_nchw, params, *, stride, upsample):
    x = jnp.transpose(x_nchw, (0, 2, 3, 1)).astype(jnp.float32)   # -> NHWC
    n, h, w, cin = x.shape
    c = params["w1"].shape[1]
    c4 = 4 * c
    cin_p = _round_up(cin, _LANE)
    c_p = _round_up(c, _LANE)
    c4_p = _round_up(c4, _LANE)

    ho = (h - 1) // stride + 1
    wo = (w - 1) // stride + 1
    m0 = n * h * w
    m2 = n * ho * wo

    # Lane-dense (zero-padded) parameters; padded gamma/beta are 0 so padded
    # channels stay exactly 0 through every stage.
    w1 = _pad2(params["w1"], cin_p, c_p).astype(jnp.bfloat16)
    w2 = jnp.pad(params["w2"].reshape(9, c, c),
                 ((0, 0), (0, c_p - c), (0, c_p - c))).astype(jnp.bfloat16)
    b2c = _pad_vec(params["b2_conv"], c_p)
    w3 = _pad2(params["w3"], c_p, c4_p).astype(jnp.bfloat16)
    g1, b1 = _pad_vec(params["g1"], c_p), _pad_vec(params["b1"], c_p)
    g2, b2 = _pad_vec(params["g2"], c_p), _pad_vec(params["b2"], c_p)
    g3, b3 = _pad_vec(params["g3"], c4_p), _pad_vec(params["b3"], c4_p)

    # ---- stage 1: conv1 (1x1, no bias) fused with BN1 batch statistics -----
    tm0 = _row_tile(m0)
    m0p = _round_up(m0, tm0)
    x_flat = _pad2(x.reshape(m0, cin), m0p, cin_p)
    y1, st1 = _conv1x1_stats(x_flat.astype(jnp.bfloat16), w1, tm0, m0)

    # ---- BN1 + ReLU (tiled; bf16 output feeds the next matmul) -------------
    a1 = _bn_act(y1, st1, g1, b1, tm0, m0, relu=True, out_dtype=jnp.bfloat16)

    # ---- stage 2: conv2 (3x3, stride, pad=1, bias) fused with BN2 stats ----
    a1 = a1[:m0].reshape(n, h, w, c_p)
    a1 = jnp.pad(a1, ((0, 0), (1, 1), (1, 1), (0, 0)))     # spatial zero-pad
    xph = _phase_split(a1, stride)
    y2, st2 = _conv3x3_stats(xph, w2, b2c, stride, ho, wo)

    # ---- stage 3: BN2+ReLU fused into conv3 (1x1, no bias) + BN3 stats -----
    tm2 = _row_tile(m2)
    m2p = _round_up(m2, tm2)
    y3, st3 = _bn_conv1x1_stats(_pad_rows(y2, m2p), st2, g2, b2, w3,
                                tm2, m2, m2)

    # ---- residual branch ----------------------------------------------------
    if upsample:
        wu = _pad2(params["wu"], cin_p, c4_p).astype(jnp.bfloat16)
        gu, bu = _pad_vec(params["gu"], c4_p), _pad_vec(params["bu"], c4_p)
        # TODO(synk): express this strided spatial subsample via the conv
        # kernel's BlockSpec/index_map instead of a wrapper-side slice.
        xs = x[:, ::stride, ::stride, :].reshape(m2, cin)
        xs = _pad2(xs, m2p, cin_p).astype(jnp.bfloat16)
        yu, stu = _conv1x1_stats(xs, wu, tm2, m2)
        out = _bn_residual_act(y3, st3, g3, b3, yu, tm2, m2,
                               res_bn=(stu, gu, bu, m2))
    else:
        assert stride == 1 and cin == c4, (
            "identity residual requires stride == 1 and in_channels == 4*channels")
        res = _pad2(x.reshape(m0, cin), m2p, c4_p)
        out = _bn_residual_act(y3, st3, g3, b3, res, tm2, m2, res_bn=None)

    out = out[:m2, :c4].reshape(n, ho, wo, c4)
    return jnp.transpose(out, (0, 3, 1, 2))                # back to NCHW


# ------------------------------ reference (f32) ------------------------------

def _reference_forward(x_nchw, params, *, stride, upsample):
    x = jnp.transpose(x_nchw, (0, 2, 3, 1)).astype(jnp.float32)
    cin = x.shape[-1]
    c = params["w1"].shape[1]

    def bn(y, g, b):
        mean = jnp.mean(y, axis=(0, 1, 2), keepdims=True)
        var = jnp.mean(jnp.square(y - mean), axis=(0, 1, 2), keepdims=True)
        return (y - mean) * jax.lax.rsqrt(var + _EPS) * g + b

    def conv(y, w_hwio, strides, padding):
        return jax.lax.conv_general_dilated(
            y, w_hwio, window_strides=strides, padding=padding,
            dimension_numbers=("NHWC", "HWIO", "NHWC"))

    out = conv(x, params["w1"].reshape(1, 1, cin, c), (1, 1), "VALID")
    out = jax.nn.relu(bn(out, params["g1"], params["b1"]))
    out = conv(out, params["w2"].reshape(3, 3, c, c), (stride, stride),
               [(1, 1), (1, 1)]) + params["b2_conv"]
    out = jax.nn.relu(bn(out, params["g2"], params["b2"]))
    out = conv(out, params["w3"].reshape(1, 1, c, 4 * c), (1, 1), "VALID")
    out = bn(out, params["g3"], params["b3"])
    if upsample:
        res = conv(x, params["wu"].reshape(1, 1, cin, 4 * c),
                   (stride, stride), "VALID")
        res = bn(res, params["gu"], params["bu"])
    else:
        res = x
    out = jax.nn.relu(out + res)
    return jnp.transpose(out, (0, 3, 1, 2))


# --------------------------------- params -----------------------------------

def init_params(key, in_channels, channels):
    ks = jax.random.split(key, 12)
    c = channels
    scale = 0.1
    return {
        # conv weights stored pre-reshaped for the matmul kernels:
        #   w1: [Cin, C], w2: [9*C, C] (rows ordered (kh, kw, cin)),
        #   w3: [C, 4C], wu: [Cin, 4C]
        "w1": scale * jax.random.normal(ks[0], (in_channels, c), jnp.float32),
        "w2": scale * jax.random.normal(ks[1], (9 * c, c), jnp.float32),
        "b2_conv": scale * jax.random.normal(ks[2], (c,), jnp.float32),
        "w3": scale * jax.random.normal(ks[3], (c, 4 * c), jnp.float32),
        "wu": scale * jax.random.normal(ks[4], (in_channels, 4 * c), jnp.float32),
        # BatchNorm affine parameters (deterministic, non-trivial)
        "g1": 1.0 + scale * jax.random.normal(ks[5], (c,), jnp.float32),
        "b1": scale * jax.random.normal(ks[6], (c,), jnp.float32),
        "g2": 1.0 + scale * jax.random.normal(ks[7], (c,), jnp.float32),
        "b2": scale * jax.random.normal(ks[8], (c,), jnp.float32),
        "g3": 1.0 + scale * jax.random.normal(ks[9], (4 * c,), jnp.float32),
        "b3": scale * jax.random.normal(ks[10], (4 * c,), jnp.float32),
        "gu": 1.0 + 0.05 * jax.random.normal(ks[11], (4 * c,), jnp.float32),
        "bu": jnp.zeros((4 * c,), jnp.float32),
    }


if __name__ == "__main__":
    key = jax.random.PRNGKey(0)
    k_x, k_p = jax.random.split(key)

    N, in_channels, H, W = 2, 8, 16, 16
    channels = 4
    stride = 2
    upsample = True

    x = jax.random.normal(k_x, (N, in_channels, H, W), jnp.float32)
    params = init_params(k_p, in_channels, channels)

    fwd = jax.jit(functools.partial(bottleneck_forward, stride=stride,
                                    upsample=upsample))
    y = fwd(x, params)
    jax.block_until_ready(y)

    expected = (N, channels * 4, (H - 1) // stride + 1, (W - 1) // stride + 1)
    assert y.shape == expected, (y.shape, expected)

    # Check against a pure-JAX f32 reference (kernel matmuls run in bf16).
    y_ref = _reference_forward(x, params, stride=stride, upsample=upsample)
    err = float(jnp.max(jnp.abs(y - y_ref)))
    assert err < 0.2, f"max abs error {err} too large"

    print("KERNEL_OK")
</pallas_src>

<mosaic_0001>
module attributes {stable_mosaic.version = 11 : i64} {
  func.func @_conv1x1_stats_kernel(%arg0: i32, %arg1: memref<256x128xbf16, #tpu.memory_space<vmem>>, %arg2: memref<128x128xbf16, #tpu.memory_space<vmem>>, %arg3: memref<256x128xf32, #tpu.memory_space<vmem>>, %arg4: memref<1x2x128xf32, #tpu.memory_space<vmem>>) attributes {dimension_semantics = [#tpu.dimension_semantics<parallel>], iteration_bounds = array<i64: 2>, scalar_prefetch = 0 : i64, scratch_operands = 0 : i64, tpu.core_type = #tpu.core_type<tc>, window_params = [{transform_indices = @transform_0, window_bounds = array<i64: 256, 128>}, {pipeline_mode = #tpu.pipeline_mode<synchronous>, transform_indices = @transform_1, window_bounds = array<i64: 128, 128>}, {transform_indices = @transform_2, window_bounds = array<i64: 256, 128>}, {transform_indices = @transform_3, window_bounds = array<i64: 1, 2, 128>}]} {
    %c0 = arith.constant 0 : index
    %c0_0 = arith.constant 0 : index
    %0 = vector.load %arg1[%c0, %c0_0] : memref<256x128xbf16, #tpu.memory_space<vmem>>, vector<256x128xbf16>
    %c0_1 = arith.constant 0 : index
    %c0_2 = arith.constant 0 : index
    %1 = vector.load %arg2[%c0_1, %c0_2] : memref<128x128xbf16, #tpu.memory_space<vmem>>, vector<128x128xbf16>
    %cst = arith.constant dense<0.000000e+00> : vector<256x128xf32>
    %2 = tpu.matmul %0, %1, %cst {dimension_numbers = #tpu.dot_dimension_numbers<[1], [0], [0], [1], [0, 0, 1, 1], [], []>} : vector<256x128xbf16>, vector<128x128xbf16>, vector<256x128xf32> -> vector<256x128xf32>
    %c0_3 = arith.constant 0 : index
    %c0_4 = arith.constant 0 : index
    %3 = vector.load %arg3[%c0_3, %c0_4] : memref<256x128xf32, #tpu.memory_space<vmem>>, vector<256x128xf32>
    tpu.vector_store %arg3[%c0_3, %c0_4], %2 {strides = array<i32>} : memref<256x128xf32, #tpu.memory_space<vmem>>, vector<256x128xf32>,
    %4 = tpu.iota {dimensions = array<i32: 0>} : vector<256x1xi32>
    %c256_i32 = arith.constant 256 : i32
    %5 = arith.muli %arg0, %c256_i32 : i32
    %6 = vector.broadcast %5 : i32 to vector<256x1xi32>
    %7 = arith.addi %4, %6 : vector<256x1xi32>
    %c512_i32 = arith.constant 512 : i32
    %8 = vector.broadcast %c512_i32 : i32 to vector<256x1xi32>
    %9 = arith.cmpi slt, %7, %8 : vector<256x1xi32>
    %10 = arith.extui %9 : vector<256x1xi1> to vector<256x1xi32>
    %11 = arith.sitofp %10 : vector<256x1xi32> to vector<256x1xf32>
    %12 = vector.broadcast %11 : vector<256x1xf32> to vector<256x128xf32>
    %13 = arith.mulf %2, %12 : vector<256x128xf32>
    %cst_5 = arith.constant dense<0.000000e+00> : vector<128xf32>
    %14 = vector.multi_reduction <add>, %13, %cst_5 [0] : vector<256x128xf32> to vector<128xf32>
    %15 = vector.shape_cast %14 : vector<128xf32> to vector<1x128xf32>
    %16 = arith.mulf %13, %2 : vector<256x128xf32>
    %cst_6 = arith.constant dense<0.000000e+00> : vector<128xf32>
    %17 = vector.multi_reduction <add>, %16, %cst_6 [0] : vector<256x128xf32> to vector<128xf32>
    %18 = vector.shape_cast %17 : vector<128xf32> to vector<1x128xf32>
    %c0_7 = arith.constant 0 : index
    %c0_8 = arith.constant 0 : index
    %c0_9 = arith.constant 0 : index
    %19 = vector.load %arg4[%c0_7, %c0_8, %c0_9] : memref<1x2x128xf32, #tpu.memory_space<vmem>>, vector<1x1x128xf32>
    %20 = vector.shape_cast %19 : vector<1x1x128xf32> to vector<1x128xf32>
    %21 = vector.shape_cast %15 : vector<1x128xf32> to vector<1x1x128xf32>
    tpu.vector_store %arg4[%c0_7, %c0_8, %c0_9], %21 {strides = array<i32>} : memref<1x2x128xf32, #tpu.memory_space<vmem>>, vector<1x1x128xf32>,
    %c0_10 = arith.constant 0 : index
    %c1 = arith.constant 1 : index
    %c0_11 = arith.constant 0 : index
    %22 = vector.load %arg4[%c0_10, %c1, %c0_11] : memref<1x2x128xf32, #tpu.memory_space<vmem>>, vector<1x1x128xf32>
    %23 = vector.shape_cast %22 : vector<1x1x128xf32> to vector<1x128xf32>
    %24 = vector.shape_cast %18 : vector<1x128xf32> to vector<1x1x128xf32>
    tpu.vector_store %arg4[%c0_10, %c1, %c0_11], %24 {strides = array<i32>} : memref<1x2x128xf32, #tpu.memory_space<vmem>>, vector<1x1x128xf32>,
    return
  }
  func.func @transform_0(%arg0: i32) -> (i32, i32) {
    %c0_i32 = arith.constant 0 : i32
    %c0_i32_0 = arith.constant 0 : i32
    return %arg0, %c0_i32 : i32, i32
  }
  func.func @transform_1(%arg0: i32) -> (i32, i32) {
    %c0_i32 = arith.constant 0 : i32
    %c0_i32_0 = arith.constant 0 : i32
    %c0_i32_1 = arith.constant 0 : i32
    return %c0_i32, %c0_i32_0 : i32, i32
  }
  func.func @transform_2(%arg0: i32) -> (i32, i32) {
    %c0_i32 = arith.constant 0 : i32
    %c0_i32_0 = arith.constant 0 : i32
    return %arg0, %c0_i32 : i32, i32
  }
  func.func @transform_3(%arg0: i32) -> (i32, i32, i32) {
    %c0_i32 = arith.constant 0 : i32
    %c0_i32_0 = arith.constant 0 : i32
    %c0_i32_1 = arith.constant 0 : i32
    return %arg0, %c0_i32, %c0_i32_0 : i32, i32, i32
  }
}

module attributes {stable_mosaic.version = 11 : i64} {
  func.func @_bn_act_kernel(%arg0: i32, %arg1: memref<256x128xf32, #tpu.memory_space<vmem>>, %arg2: memref<2x128xf32, #tpu.memory_space<vmem>>, %arg3: memref<1x128xf32, #tpu.memory_space<vmem>>, %arg4: memref<1x128xf32, #tpu.memory_space<vmem>>, %arg5: memref<256x128xbf16, #tpu.memory_space<vmem>>) attributes {dimension_semantics = [#tpu.dimension_semantics<parallel>], iteration_bounds = array<i64: 2>, scalar_prefetch = 0 : i64, scratch_operands = 0 : i64, tpu.core_type = #tpu.core_type<tc>, window_params = [{transform_indices = @transform_0, window_bounds = array<i64: 256, 128>}, {pipeline_mode = #tpu.pipeline_mode<synchronous>, transform_indices = @transform_1, window_bounds = array<i64: 2, 128>}, {pipeline_mode = #tpu.pipeline_mode<synchronous>, transform_indices = @transform_2, window_bounds = array<i64: 1, 128>}, {pipeline_mode = #tpu.pipeline_mode<synchronous>, transform_indices = @transform_3, window_bounds = array<i64: 1, 128>}, {transform_indices = @transform_4, window_bounds = array<i64: 256, 128>}]} {
    %c0 = arith.constant 0 : index
    %c0_0 = arith.constant 0 : index
    %0 = vector.load %arg2[%c0, %c0_0] : memref<2x128xf32, #tpu.memory_space<vmem>>, vector<1x128xf32>
    %cst = arith.constant 0.001953125 : f32
    %1 = vector.broadcast %cst : f32 to vector<1x128xf32>
    %2 = arith.mulf %0, %1 : vector<1x128xf32>
    %c1 = arith.constant 1 : index
    %c0_1 = arith.constant 0 : index
    %3 = vector.load %arg2[%c1, %c0_1] : memref<2x128xf32, #tpu.memory_space<vmem>>, vector<1x128xf32>
    %cst_2 = arith.constant 0.001953125 : f32
    %4 = vector.broadcast %cst_2 : f32 to vector<1x128xf32>
    %5 = arith.mulf %3, %4 : vector<1x128xf32>
    %6 = arith.mulf %2, %2 : vector<1x128xf32>
    %7 = arith.subf %5, %6 : vector<1x128xf32>
    %cst_3 = arith.constant 0.000000e+00 : f32
    %8 = vector.broadcast %cst_3 : f32 to vector<1x128xf32>
    %9 = arith.maximumf %7, %8 : vector<1x128xf32>
    %c0_4 = arith.constant 0 : index
    %c0_5 = arith.constant 0 : index
    %10 = vector.load %arg3[%c0_4, %c0_5] : memref<1x128xf32, #tpu.memory_space<vmem>>, vector<1x128xf32>
    %cst_6 = arith.constant 9.99999974E-6 : f32
    %11 = vector.broadcast %cst_6 : f32 to vector<1x128xf32>
    %12 = arith.addf %9, %11 : vector<1x128xf32>
    %13 = math.rsqrt %12 : vector<1x128xf32>
    %14 = arith.mulf %10, %13 : vector<1x128xf32>
    %c0_7 = arith.constant 0 : index
    %c0_8 = arith.constant 0 : index
    %15 = vector.load %arg4[%c0_7, %c0_8] : memref<1x128xf32, #tpu.memory_space<vmem>>, vector<1x128xf32>
    %16 = arith.mulf %2, %14 : vector<1x128xf32>
    %17 = arith.subf %15, %16 : vector<1x128xf32>
    %c0_9 = arith.constant 0 : index
    %c0_10 = arith.constant 0 : index
    %18 = vector.load %arg1[%c0_9, %c0_10] : memref<256x128xf32, #tpu.memory_space<vmem>>, vector<256x128xf32>
    %19 = vector.broadcast %14 : vector<1x128xf32> to vector<256x128xf32>
    %20 = arith.mulf %18, %19 : vector<256x128xf32>
    %21 = vector.broadcast %17 : vector<1x128xf32> to vector<256x128xf32>
    %22 = arith.addf %20, %21 : vector<256x128xf32>
    %cst_11 = arith.constant 0.000000e+00 : f32
    %23 = vector.broadcast %cst_11 : f32 to vector<256x128xf32>
    %24 = arith.maximumf %22, %23 : vector<256x128xf32>
    %25 = arith.truncf %24 : vector<256x128xf32> to vector<256x128xbf16>
    %c0_12 = arith.constant 0 : index
    %c0_13 = arith.constant 0 : index
    %26 = vector.load %arg5[%c0_12, %c0_13] : memref<256x128xbf16, #tpu.memory_space<vmem>>, vector<256x128xbf16>
    tpu.vector_store %arg5[%c0_12, %c0_13], %25 {strides = array<i32>} : memref<256x128xbf16, #tpu.memory_space<vmem>>, vector<256x128xbf16>,
    return
  }
  func.func @transform_0(%arg0: i32) -> (i32, i32) {
    %c0_i32 = arith.constant 0 : i32
    %c0_i32_0 = arith.constant 0 : i32
    return %arg0, %c0_i32 : i32, i32
  }
  func.func @transform_1(%arg0: i32) -> (i32, i32) {
    %c0_i32 = arith.constant 0 : i32
    %c0_i32_0 = arith.constant 0 : i32
    %c0_i32_1 = arith.constant 0 : i32
    return %c0_i32, %c0_i32_0 : i32, i32
  }
  func.func @transform_2(%arg0: i32) -> (i32, i32) {
    %c0_i32 = arith.constant 0 : i32
    %c0_i32_0 = arith.constant 0 : i32
    %c0_i32_1 = arith.constant 0 : i32
    return %c0_i32, %c0_i32_0 : i32, i32
  }
  func.func @transform_3(%arg0: i32) -> (i32, i32) {
    %c0_i32 = arith.constant 0 : i32
    %c0_i32_0 = arith.constant 0 : i32
    %c0_i32_1 = arith.constant 0 : i32
    return %c0_i32, %c0_i32_0 : i32, i32
  }
  func.func @transform_4(%arg0: i32) -> (i32, i32) {
    %c0_i32 = arith.constant 0 : i32
    %c0_i32_0 = arith.constant 0 : i32
    return %arg0, %c0_i32 : i32, i32
  }
}

module attributes {stable_mosaic.version = 11 : i64} {
  func.func @_conv3x3_stats_kernel(%arg0: i32, %arg1: memref<4x1x9x9x128xbf16, #tpu.memory_space<vmem>>, %arg2: memref<9x128x128xbf16, #tpu.memory_space<vmem>>, %arg3: memref<1x128xf32, #tpu.memory_space<vmem>>, %arg4: memref<1x64x128xf32, #tpu.memory_space<vmem>>, %arg5: memref<1x2x128xf32, #tpu.memory_space<vmem>>) attributes {dimension_semantics = [#tpu.dimension_semantics<parallel>], iteration_bounds = array<i64: 2>, scalar_prefetch = 0 : i64, scratch_operands = 0 : i64, tpu.core_type = #tpu.core_type<tc>, window_params = [{transform_indices = @transform_0, window_bounds = array<i64: 4, 1, 9, 9, 128>}, {pipeline_mode = #tpu.pipeline_mode<synchronous>, transform_indices = @transform_1, window_bounds = array<i64: 9, 128, 128>}, {pipeline_mode = #tpu.pipeline_mode<synchronous>, transform_indices = @transform_2, window_bounds = array<i64: 1, 128>}, {transform_indices = @transform_3, window_bounds = array<i64: 1, 64, 128>}, {transform_indices = @transform_4, window_bounds = array<i64: 1, 2, 128>}]} {
    %cst = arith.constant 0.000000e+00 : f32
    %0 = vector.broadcast %cst : f32 to vector<64x128xf32>
    %c0 = arith.constant 0 : index
    %c0_0 = arith.constant 0 : index
    %c0_1 = arith.constant 0 : index
    %c0_2 = arith.constant 0 : index
    %c0_3 = arith.constant 0 : index
    %1 = vector.load %arg1[%c0, %c0_0, %c0_1, %c0_2, %c0_3] : memref<4x1x9x9x128xbf16, #tpu.memory_space<vmem>>, vector<1x1x8x8x128xbf16>
    %2 = vector.shape_cast %1 : vector<1x1x8x8x128xbf16> to vector<8x8x128xbf16>
    %3 = vector.shape_cast %2 : vector<8x8x128xbf16> to vector<64x128xbf16>
    %c0_4 = arith.constant 0 : index
    %c0_5 = arith.constant 0 : index
    %c0_6 = arith.constant 0 : index
    %4 = vector.load %arg2[%c0_4, %c0_5, %c0_6] : memref<9x128x128xbf16, #tpu.memory_space<vmem>>, vector<1x128x128xbf16>
    %5 = vector.shape_cast %4 : vector<1x128x128xbf16> to vector<128x128xbf16>
    %cst_7 = arith.constant dense<0.000000e+00> : vector<64x128xf32>
    %6 = tpu.matmul %3, %5, %cst_7 {dimension_numbers = #tpu.dot_dimension_numbers<[1], [0], [0], [1], [0, 0, 1, 1], [], []>} : vector<64x128xbf16>, vector<128x128xbf16>, vector<64x128xf32> -> vector<64x128xf32>
    %7 = arith.addf %0, %6 : vector<64x128xf32>
    %c1 = arith.constant 1 : index
    %c0_8 = arith.constant 0 : index
    %c0_9 = arith.constant 0 : index
    %c0_10 = arith.constant 0 : index
    %c0_11 = arith.constant 0 : index
    %8 = vector.load %arg1[%c1, %c0_8, %c0_9, %c0_10, %c0_11] : memref<4x1x9x9x128xbf16, #tpu.memory_space<vmem>>, vector<1x1x8x8x128xbf16>
    %9 = vector.shape_cast %8 : vector<1x1x8x8x128xbf16> to vector<8x8x128xbf16>
    %10 = vector.shape_cast %9 : vector<8x8x128xbf16> to vector<64x128xbf16>
    %c1_12 = arith.constant 1 : index
    %c0_13 = arith.constant 0 : index
    %c0_14 = arith.constant 0 : index
    %11 = vector.load %arg2[%c1_12, %c0_13, %c0_14] : memref<9x128x128xbf16, #tpu.memory_space<vmem>>, vector<1x128x128xbf16>
    %12 = vector.shape_cast %11 : vector<1x128x128xbf16> to vector<128x128xbf16>
    %cst_15 = arith.constant dense<0.000000e+00> : vector<64x128xf32>
    %13 = tpu.matmul %10, %12, %cst_15 {dimension_numbers = #tpu.dot_dimension_numbers<[1], [0], [0], [1], [0, 0, 1, 1], [], []>} : vector<64x128xbf16>, vector<128x128xbf16>, vector<64x128xf32> -> vector<64x128xf32>
    %14 = arith.addf %7, %13 : vector<64x128xf32>
    %c0_16 = arith.constant 0 : index
    %c0_17 = arith.constant 0 : index
    %c0_18 = arith.constant 0 : index
    %c1_19 = arith.constant 1 : index
    %c0_20 = arith.constant 0 : index
    %15 = vector.load %arg1[%c0_16, %c0_17, %c0_18, %c1_19, %c0_20] : memref<4x1x9x9x128xbf16, #tpu.memory_space<vmem>>, vector<1x1x8x8x128xbf16>
    %16 = vector.shape_cast %15 : vector<1x1x8x8x128xbf16> to vector<8x8x128xbf16>
    %17 = vector.shape_cast %16 : vector<8x8x128xbf16> to vector<64x128xbf16>
    %c2 = arith.constant 2 : index
    %c0_21 = arith.constant 0 : index
    %c0_22 = arith.constant 0 : index
    %18 = vector.load %arg2[%c2, %c0_21, %c0_22] : memref<9x128x128xbf16, #tpu.memory_space<vmem>>, vector<1x128x128xbf16>
    %19 = vector.shape_cast %18 : vector<1x128x128xbf16> to vector<128x128xbf16>
    %cst_23 = arith.constant dense<0.000000e+00> : vector<64x128xf32>
    %20 = tpu.matmul %17, %19, %cst_23 {dimension_numbers = #tpu.dot_dimension_numbers<[1], [0], [0], [1], [0, 0, 1, 1], [], []>} : vector<64x128xbf16>, vector<128x128xbf16>, vector<64x128xf32> -> vector<64x128xf32>
    %21 = arith.addf %14, %20 : vector<64x128xf32>
    %c2_24 = arith.constant 2 : index
    %c0_25 = arith.constant 0 : index
    %c0_26 = arith.constant 0 : index
    %c0_27 = arith.constant 0 : index
    %c0_28 = arith.constant 0 : index
    %22 = vector.load %arg1[%c2_24, %c0_25, %c0_26, %c0_27, %c0_28] : memref<4x1x9x9x128xbf16, #tpu.memory_space<vmem>>, vector<1x1x8x8x128xbf16>
    %23 = vector.shape_cast %22 : vector<1x1x8x8x128xbf16> to vector<8x8x128xbf16>
    %24 = vector.shape_cast %23 : vector<8x8x128xbf16> to vector<64x128xbf16>
    %c3 = arith.constant 3 : index
    %c0_29 = arith.constant 0 : index
    %c0_30 = arith.constant 0 : index
    %25 = vector.load %arg2[%c3, %c0_29, %c0_30] : memref<9x128x128xbf16, #tpu.memory_space<vmem>>, vector<1x128x128xbf16>
    %26 = vector.shape_cast %25 : vector<1x128x128xbf16> to vector<128x128xbf16>
    %cst_31 = arith.constant dense<0.000000e+00> : vector<64x128xf32>
    %27 = tpu.matmul %24, %26, %cst_31 {dimension_numbers = #tpu.dot_dimension_numbers<[1], [0], [0], [1], [0, 0, 1, 1], [], []>} : vector<64x128xbf16>, vector<128x128xbf16>, vector<64x128xf32> -> vector<64x128xf32>
    %28 = arith.addf %21, %27 : vector<64x128xf32>
    %c3_32 = arith.constant 3 : index
    %c0_33 = arith.constant 0 : index
    %c0_34 = arith.constant 0 : index
    %c0_35 = arith.constant 0 : index
    %c0_36 = arith.constant 0 : index
    %29 = vector.load %arg1[%c3_32, %c0_33, %c0_34, %c0_35, %c0_36] : memref<4x1x9x9x128xbf16, #tpu.memory_space<vmem>>, vector<1x1x8x8x128xbf16>
    %30 = vector.shape_cast %29 : vector<1x1x8x8x128xbf16> to vector<8x8x128xbf16>
    %31 = vector.shape_cast %30 : vector<8x8x128xbf16> to vector<64x128xbf16>
    %c4 = arith.constant 4 : index
    %c0_37 = arith.constant 0 : index
    %c0_38 = arith.constant 0 : index
    %32 = vector.load %arg2[%c4, %c0_37, %c0_38] : memref<9x128x128xbf16, #tpu.memory_space<vmem>>, vector<1x128x128xbf16>
    %33 = vector.shape_cast %32 : vector<1x128x128xbf16> to vector<128x128xbf16>
    %cst_39 = arith.constant dense<0.000000e+00> : vector<64x128xf32>
    %34 = tpu.matmul %31, %33, %cst_39 {dimension_numbers = #tpu.dot_dimension_numbers<[1], [0], [0], [1], [0, 0, 1, 1], [], []>} : vector<64x128xbf16>, vector<128x128xbf16>, vector<64x128xf32> -> vector<64x128xf32>
    %35 = arith.addf %28, %34 : vector<64x128xf32>
    %c2_40 = arith.constant 2 : index
    %c0_41 = arith.constant 0 : index
    %c0_42 = arith.constant 0 : index
    %c1_43 = arith.constant 1 : index
    %c0_44 = arith.constant 0 : index
    %36 = vector.load %arg1[%c2_40, %c0_41, %c0_42, %c1_43, %c0_44] : memref<4x1x9x9x128xbf16, #tpu.memory_space<vmem>>, vector<1x1x8x8x128xbf16>
    %37 = vector.shape_cast %36 : vector<1x1x8x8x128xbf16> to vector<8x8x128xbf16>
    %38 = vector.shape_cast %37 : vector<8x8x128xbf16> to vector<64x128xbf16>
    %c5 = arith.constant 5 : index
    %c0_45 = arith.constant 0 : index
    %c0_46 = arith.constant 0 : index
    %39 = vector.load %arg2[%c5, %c0_45, %c0_46] : memref<9x128x128xbf16, #tpu.memory_space<vmem>>, vector<1x128x128xbf16>
    %40 = vector.shape_cast %39 : vector<1x128x128xbf16> to vector<128x128xbf16>
    %cst_47 = arith.constant dense<0.000000e+00> : vector<64x128xf32>
    %41 = tpu.matmul %38, %40, %cst_47 {dimension_numbers = #tpu.dot_dimension_numbers<[1], [0], [0], [1], [0, 0, 1, 1], [], []>} : vector<64x128xbf16>, vector<128x128xbf16>, vector<64x128xf32> -> vector<64x128xf32>
    %42 = arith.addf %35, %41 : vector<64x128xf32>
    %c0_48 = arith.constant 0 : index
    %c0_49 = arith.constant 0 : index
    %c1_50 = arith.constant 1 : index
    %c0_51 = arith.constant 0 : index
    %c0_52 = arith.constant 0 : index
    %43 = vector.load %arg1[%c0_48, %c0_49, %c1_50, %c0_51, %c0_52] : memref<4x1x9x9x128xbf16, #tpu.memory_space<vmem>>, vector<1x1x8x8x128xbf16>
    %44 = vector.shape_cast %43 : vector<1x1x8x8x128xbf16> to vector<8x8x128xbf16>
    %45 = vector.shape_cast %44 : vector<8x8x128xbf16> to vector<64x128xbf16>
    %c6 = arith.constant 6 : index
    %c0_53 = arith.constant 0 : index
    %c0_54 = arith.constant 0 : index
    %46 = vector.load %arg2[%c6, %c0_53, %c0_54] : memref<9x128x128xbf16, #tpu.memory_space<vmem>>, vector<1x128x128xbf16>
    %47 = vector.shape_cast %46 : vector<1x128x128xbf16> to vector<128x128xbf16>
    %cst_55 = arith.constant dense<0.000000e+00> : vector<64x128xf32>
    %48 = tpu.matmul %45, %47, %cst_55 {dimension_numbers = #tpu.dot_dimension_numbers<[1], [0], [0], [1], [0, 0, 1, 1], [], []>} : vector<64x128xbf16>, vector<128x128xbf16>, vector<64x128xf32> -> vector<64x128xf32>
    %49 = arith.addf %42, %48 : vector<64x128xf32>
    %c1_56 = arith.constant 1 : index
    %c0_57 = arith.constant 0 : index
    %c1_58 = arith.constant 1 : index
    %c0_59 = arith.constant 0 : index
    %c0_60 = arith.constant 0 : index
    %50 = vector.load %arg1[%c1_56, %c0_57, %c1_58, %c0_59, %c0_60] : memref<4x1x9x9x128xbf16, #tpu.memory_space<vmem>>, vector<1x1x8x8x128xbf16>
    %51 = vector.shape_cast %50 : vector<1x1x8x8x128xbf16> to vector<8x8x128xbf16>
    %52 = vector.shape_cast %51 : vector<8x8x128xbf16> to vector<64x128xbf16>
    %c7 = arith.constant 7 : index
    %c0_61 = arith.constant 0 : index
    %c0_62 = arith.constant 0 : index
    %53 = vector.load %arg2[%c7, %c0_61, %c0_62] : memref<9x128x128xbf16, #tpu.memory_space<vmem>>, vector<1x128x128xbf16>
    %54 = vector.shape_cast %53 : vector<1x128x128xbf16> to vector<128x128xbf16>
    %cst_63 = arith.constant dense<0.000000e+00> : vector<64x128xf32>
    %55 = tpu.matmul %52, %54, %cst_63 {dimension_numbers = #tpu.dot_dimension_numbers<[1], [0], [0], [1], [0, 0, 1, 1], [], []>} : vector<64x128xbf16>, vector<128x128xbf16>, vector<64x128xf32> -> vector<64x128xf32>
    %56 = arith.addf %49, %55 : vector<64x128xf32>
    %c0_64 = arith.constant 0 : index
    %c0_65 = arith.constant 0 : index
    %c1_66 = arith.constant 1 : index
    %c1_67 = arith.constant 1 : index
    %c0_68 = arith.constant 0 : index
    %57 = vector.load %arg1[%c0_64, %c0_65, %c1_66, %c1_67, %c0_68] : memref<4x1x9x9x128xbf16, #tpu.memory_space<vmem>>, vector<1x1x8x8x128xbf16>
    %58 = vector.shape_cast %57 : vector<1x1x8x8x128xbf16> to vector<8x8x128xbf16>
    %59 = vector.shape_cast %58 : vector<8x8x128xbf16> to vector<64x128xbf16>
    %c8 = arith.constant 8 : index
    %c0_69 = arith.constant 0 : index
    %c0_70 = arith.constant 0 : index
    %60 = vector.load %arg2[%c8, %c0_69, %c0_70] : memref<9x128x128xbf16, #tpu.memory_space<vmem>>, vector<1x128x128xbf16>
    %61 = vector.shape_cast %60 : vector<1x128x128xbf16> to vector<128x128xbf16>
    %cst_71 = arith.constant dense<0.000000e+00> : vector<64x128xf32>
    %62 = tpu.matmul %59, %61, %cst_71 {dimension_numbers = #tpu.dot_dimension_numbers<[1], [0], [0], [1], [0, 0, 1, 1], [], []>} : vector<64x128xbf16>, vector<128x128xbf16>, vector<64x128xf32> -> vector<64x128xf32>
    %63 = arith.addf %56, %62 : vector<64x128xf32>
    %c0_72 = arith.constant 0 : index
    %c0_73 = arith.constant 0 : index
    %64 = vector.load %arg3[%c0_72, %c0_73] : memref<1x128xf32, #tpu.memory_space<vmem>>, vector<1x128xf32>
    %65 = vector.broadcast %64 : vector<1x128xf32> to vector<64x128xf32>
    %66 = arith.addf %63, %65 : vector<64x128xf32>
    %c0_74 = arith.constant 0 : index
    %c0_75 = arith.constant 0 : index
    %c0_76 = arith.constant 0 : index
    %67 = vector.load %arg4[%c0_74, %c0_75, %c0_76] : memref<1x64x128xf32, #tpu.memory_space<vmem>>, vector<1x64x128xf32>
    %68 = vector.shape_cast %67 : vector<1x64x128xf32> to vector<64x128xf32>
    %69 = vector.shape_cast %66 : vector<64x128xf32> to vector<1x64x128xf32>
    tpu.vector_store %arg4[%c0_74, %c0_75, %c0_76], %69 {strides = array<i32>} : memref<1x64x128xf32, #tpu.memory_space<vmem>>, vector<1x64x128xf32>,
    %cst_77 = arith.constant dense<0.000000e+00> : vector<128xf32>
    %70 = vector.multi_reduction <add>, %66, %cst_77 [0] : vector<64x128xf32> to vector<128xf32>
    %71 = vector.shape_cast %70 : vector<128xf32> to vector<1x128xf32>
    %c0_78 = arith.constant 0 : index
    %c0_79 = arith.constant 0 : index
    %c0_80 = arith.constant 0 : index
    %72 = vector.load %arg5[%c0_78, %c0_79, %c0_80] : memref<1x2x128xf32, #tpu.memory_space<vmem>>, vector<1x1x128xf32>
    %73 = vector.shape_cast %72 : vector<1x1x128xf32> to vector<1x128xf32>
    %74 = vector.shape_cast %71 : vector<1x128xf32> to vector<1x1x128xf32>
    tpu.vector_store %arg5[%c0_78, %c0_79, %c0_80], %74 {strides = array<i32>} : memref<1x2x128xf32, #tpu.memory_space<vmem>>, vector<1x1x128xf32>,
    %75 = arith.mulf %66, %66 : vector<64x128xf32>
    %cst_81 = arith.constant dense<0.000000e+00> : vector<128xf32>
    %76 = vector.multi_reduction <add>, %75, %cst_81 [0] : vector<64x128xf32> to vector<128xf32>
    %77 = vector.shape_cast %76 : vector<128xf32> to vector<1x128xf32>
    %c0_82 = arith.constant 0 : index
    %c1_83 = arith.constant 1 : index
    %c0_84 = arith.constant 0 : index
    %78 = vector.load %arg5[%c0_82, %c1_83, %c0_84] : memref<1x2x128xf32, #tpu.memory_space<vmem>>, vector<1x1x128xf32>
    %79 = vector.shape_cast %78 : vector<1x1x128xf32> to vector<1x128xf32>
    %80 = vector.shape_cast %77 : vector<1x128xf32> to vector<1x1x128xf32>
    tpu.vector_store %arg5[%c0_82, %c1_83, %c0_84], %80 {strides = array<i32>} : memref<1x2x128xf32, #tpu.memory_space<vmem>>, vector<1x1x128xf32>,
    return
  }
  func.func @transform_0(%arg0: i32) -> (i32, i32, i32, i32, i32) {
    %c0_i32 = arith.constant 0 : i32
    %c0_i32_0 = arith.constant 0 : i32
    %c0_i32_1 = arith.constant 0 : i32
    %c0_i32_2 = arith.constant 0 : i32
    %c0_i32_3 = arith.constant 0 : i32
    return %c0_i32, %arg0, %c0_i32_0, %c0_i32_1, %c0_i32_2 : i32, i32, i32, i32, i32
  }
  func.func @transform_1(%arg0: i32) -> (i32, i32, i32) {
    %c0_i32 = arith.constant 0 : i32
    %c0_i32_0 = arith.constant 0 : i32
    %c0_i32_1 = arith.constant 0 : i32
    %c0_i32_2 = arith.constant 0 : i32
    return %c0_i32, %c0_i32_0, %c0_i32_1 : i32, i32, i32
  }
  func.func @transform_2(%arg0: i32) -> (i32, i32) {
    %c0_i32 = arith.constant 0 : i32
    %c0_i32_0 = arith.constant 0 : i32
    %c0_i32_1 = arith.constant 0 : i32
    return %c0_i32, %c0_i32_0 : i32, i32
  }
  func.func @transform_3(%arg0: i32) -> (i32, i32, i32) {
    %c0_i32 = arith.constant 0 : i32
    %c0_i32_0 = arith.constant 0 : i32
    %c0_i32_1 = arith.constant 0 : i32
    return %arg0, %c0_i32, %c0_i32_0 : i32, i32, i32
  }
  func.func @transform_4(%arg0: i32) -> (i32, i32, i32) {
    %c0_i32 = arith.constant 0 : i32
    %c0_i32_0 = arith.constant 0 : i32
    %c0_i32_1 = arith.constant 0 : i32
    return %arg0, %c0_i32, %c0_i32_0 : i32, i32, i32
  }
}

module attributes {stable_mosaic.version = 11 : i64} {
  func.func @_bn_conv1x1_stats_kernel(%arg0: i32, %arg1: memref<128x128xf32, #tpu.memory_space<vmem>>, %arg2: memref<2x128xf32, #tpu.memory_space<vmem>>, %arg3: memref<1x128xf32, #tpu.memory_space<vmem>>, %arg4: memref<1x128xf32, #tpu.memory_space<vmem>>, %arg5: memref<128x128xbf16, #tpu.memory_space<vmem>>, %arg6: memref<128x128xf32, #tpu.memory_space<vmem>>, %arg7: memref<1x2x128xf32, #tpu.memory_space<vmem>>) attributes {dimension_semantics = [#tpu.dimension_semantics<parallel>], iteration_bounds = array<i64: 1>, scalar_prefetch = 0 : i64, scratch_operands = 0 : i64, tpu.core_type = #tpu.core_type<tc>, window_params = [{transform_indices = @transform_0, window_bounds = array<i64: 128, 128>}, {pipeline_mode = #tpu.pipeline_mode<synchronous>, transform_indices = @transform_1, window_bounds = array<i64: 2, 128>}, {pipeline_mode = #tpu.pipeline_mode<synchronous>, transform_indices = @transform_2, window_bounds = array<i64: 1, 128>}, {pipeline_mode = #tpu.pipeline_mode<synchronous>, transform_indices = @transform_3, window_bounds = array<i64: 1, 128>}, {pipeline_mode = #tpu.pipeline_mode<synchronous>, transform_indices = @transform_4, window_bounds = array<i64: 128, 128>}, {transform_indices = @transform_5, window_bounds = array<i64: 128, 128>}, {transform_indices = @transform_6, window_bounds = array<i64: 1, 2, 128>}]} {
    %c0 = arith.constant 0 : index
    %c0_0 = arith.constant 0 : index
    %0 = vector.load %arg2[%c0, %c0_0] : memref<2x128xf32, #tpu.memory_space<vmem>>, vector<1x128xf32>
    %cst = arith.constant 7.812500e-03 : f32
    %1 = vector.broadcast %cst : f32 to vector<1x128xf32>
    %2 = arith.mulf %0, %1 : vector<1x128xf32>
    %c1 = arith.constant 1 : index
    %c0_1 = arith.constant 0 : index
    %3 = vector.load %arg2[%c1, %c0_1] : memref<2x128xf32, #tpu.memory_space<vmem>>, vector<1x128xf32>
    %cst_2 = arith.constant 7.812500e-03 : f32
    %4 = vector.broadcast %cst_2 : f32 to vector<1x128xf32>
    %5 = arith.mulf %3, %4 : vector<1x128xf32>
    %6 = arith.mulf %2, %2 : vector<1x128xf32>
    %7 = arith.subf %5, %6 : vector<1x128xf32>
    %cst_3 = arith.constant 0.000000e+00 : f32
    %8 = vector.broadcast %cst_3 : f32 to vector<1x128xf32>
    %9 = arith.maximumf %7, %8 : vector<1x128xf32>
    %c0_4 = arith.constant 0 : index
    %c0_5 = arith.constant 0 : index
    %10 = vector.load %arg3[%c0_4, %c0_5] : memref<1x128xf32, #tpu.memory_space<vmem>>, vector<1x128xf32>
    %cst_6 = arith.constant 9.99999974E-6 : f32
    %11 = vector.broadcast %cst_6 : f32 to vector<1x128xf32>
    %12 = arith.addf %9, %11 : vector<1x128xf32>
    %13 = math.rsqrt %12 : vector<1x128xf32>
    %14 = arith.mulf %10, %13 : vector<1x128xf32>
    %c0_7 = arith.constant 0 : index
    %c0_8 = arith.constant 0 : index
    %15 = vector.load %arg4[%c0_7, %c0_8] : memref<1x128xf32, #tpu.memory_space<vmem>>, vector<1x128xf32>
    %16 = arith.mulf %2, %14 : vector<1x128xf32>
    %17 = arith.subf %15, %16 : vector<1x128xf32>
    %c0_9 = arith.constant 0 : index
    %c0_10 = arith.constant 0 : index
    %18 = vector.load %arg1[%c0_9, %c0_10] : memref<128x128xf32, #tpu.memory_space<vmem>>, vector<128x128xf32>
    %19 = vector.broadcast %14 : vector<1x128xf32> to vector<128x128xf32>
    %20 = arith.mulf %18, %19 : vector<128x128xf32>
    %21 = vector.broadcast %17 : vector<1x128xf32> to vector<128x128xf32>
    %22 = arith.addf %20, %21 : vector<128x128xf32>
    %cst_11 = arith.constant 0.000000e+00 : f32
    %23 = vector.broadcast %cst_11 : f32 to vector<128x128xf32>
    %24 = arith.maximumf %22, %23 : vector<128x128xf32>
    %25 = arith.truncf %24 : vector<128x128xf32> to vector<128x128xbf16>
    %c0_12 = arith.constant 0 : index
    %c0_13 = arith.constant 0 : index
    %26 = vector.load %arg5[%c0_12, %c0_13] : memref<128x128xbf16, #tpu.memory_space<vmem>>, vector<128x128xbf16>
    %cst_14 = arith.constant dense<0.000000e+00> : vector<128x128xf32>
    %27 = tpu.matmul %25, %26, %cst_14 {dimension_numbers = #tpu.dot_dimension_numbers<[1], [0], [0], [1], [0, 0, 1, 1], [], []>} : vector<128x128xbf16>, vector<128x128xbf16>, vector<128x128xf32> -> vector<128x128xf32>
    %c0_15 = arith.constant 0 : index
    %c0_16 = arith.constant 0 : index
    %28 = vector.load %arg6[%c0_15, %c0_16] : memref<128x128xf32, #tpu.memory_space<vmem>>, vector<128x128xf32>
    tpu.vector_store %arg6[%c0_15, %c0_16], %27 {strides = array<i32>} : memref<128x128xf32, #tpu.memory_space<vmem>>, vector<128x128xf32>,
    %29 = tpu.iota {dimensions = array<i32: 0>} : vector<128x1xi32>
    %c128_i32 = arith.constant 128 : i32
    %30 = arith.muli %arg0, %c128_i32 : i32
    %31 = vector.broadcast %30 : i32 to vector<128x1xi32>
    %32 = arith.addi %29, %31 : vector<128x1xi32>
    %c128_i32_17 = arith.constant 128 : i32
    %33 = vector.broadcast %c128_i32_17 : i32 to vector<128x1xi32>
    %34 = arith.cmpi slt, %32, %33 : vector<128x1xi32>
    %35 = arith.extui %34 : vector<128x1xi1> to vector<128x1xi32>
    %36 = arith.sitofp %35 : vector<128x1xi32> to vector<128x1xf32>
    %37 = vector.broadcast %36 : vector<128x1xf32> to vector<128x128xf32>
    %38 = arith.mulf %27, %37 : vector<128x128xf32>
    %cst_18 = arith.constant dense<0.000000e+00> : vector<128xf32>
    %39 = vector.multi_reduction <add>, %38, %cst_18 [0] : vector<128x128xf32> to vector<128xf32>
    %40 = vector.shape_cast %39 : vector<128xf32> to vector<1x128xf32>
    %41 = arith.mulf %38, %27 : vector<128x128xf32>
    %cst_19 = arith.constant dense<0.000000e+00> : vector<128xf32>
    %42 = vector.multi_reduction <add>, %41, %cst_19 [0] : vector<128x128xf32> to vector<128xf32>
    %43 = vector.shape_cast %42 : vector<128xf32> to vector<1x128xf32>
    %c0_20 = arith.constant 0 : index
    %c0_21 = arith.constant 0 : index
    %c0_22 = arith.constant 0 : index
    %44 = vector.load %arg7[%c0_20, %c0_21, %c0_22] : memref<1x2x128xf32, #tpu.memory_space<vmem>>, vector<1x1x128xf32>
    %45 = vector.shape_cast %44 : vector<1x1x128xf32> to vector<1x128xf32>
    %46 = vector.shape_cast %40 : vector<1x128xf32> to vector<1x1x128xf32>
    tpu.vector_store %arg7[%c0_20, %c0_21, %c0_22], %46 {strides = array<i32>} : memref<1x2x128xf32, #tpu.memory_space<vmem>>, vector<1x1x128xf32>,
    %c0_23 = arith.constant 0 : index
    %c1_24 = arith.constant 1 : index
    %c0_25 = arith.constant 0 : index
    %47 = vector.load %arg7[%c0_23, %c1_24, %c0_25] : memref<1x2x128xf32, #tpu.memory_space<vmem>>, vector<1x1x128xf32>
    %48 = vector.shape_cast %47 : vector<1x1x128xf32> to vector<1x128xf32>
    %49 = vector.shape_cast %43 : vector<1x128xf32> to vector<1x1x128xf32>
    tpu.vector_store %arg7[%c0_23, %c1_24, %c0_25], %49 {strides = array<i32>} : memref<1x2x128xf32, #tpu.memory_space<vmem>>, vector<1x1x128xf32>,
    return
  }
  func.func @transform_0(%arg0: i32) -> (i32, i32) {
    %c0_i32 = arith.constant 0 : i32
    %c0_i32_0 = arith.constant 0 : i32
    return %arg0, %c0_i32 : i32, i32
  }
  func.func @transform_1(%arg0: i32) -> (i32, i32) {
    %c0_i32 = arith.constant 0 : i32
    %c0_i32_0 = arith.constant 0 : i32
    %c0_i32_1 = arith.constant 0 : i32
    return %c0_i32, %c0_i32_0 : i32, i32
  }
  func.func @transform_2(%arg0: i32) -> (i32, i32) {
    %c0_i32 = arith.constant 0 : i32
    %c0_i32_0 = arith.constant 0 : i32
    %c0_i32_1 = arith.constant 0 : i32
    return %c0_i32, %c0_i32_0 : i32, i32
  }
  func.func @transform_3(%arg0: i32) -> (i32, i32) {
    %c0_i32 = arith.constant 0 : i32
    %c0_i32_0 = arith.constant 0 : i32
    %c0_i32_1 = arith.constant 0 : i32
    return %c0_i32, %c0_i32_0 : i32, i32
  }
  func.func @transform_4(%arg0: i32) -> (i32, i32) {
    %c0_i32 = arith.constant 0 : i32
    %c0_i32_0 = arith.constant 0 : i32
    %c0_i32_1 = arith.constant 0 : i32
    return %c0_i32, %c0_i32_0 : i32, i32
  }
  func.func @transform_5(%arg0: i32) -> (i32, i32) {
    %c0_i32 = arith.constant 0 : i32
    %c0_i32_0 = arith.constant 0 : i32
    return %arg0, %c0_i32 : i32, i32
  }
  func.func @transform_6(%arg0: i32) -> (i32, i32, i32) {
    %c0_i32 = arith.constant 0 : i32
    %c0_i32_0 = arith.constant 0 : i32
    %c0_i32_1 = arith.constant 0 : i32
    return %arg0, %c0_i32, %c0_i32_0 : i32, i32, i32
  }
}

module attributes {stable_mosaic.version = 11 : i64} {
  func.func @_conv1x1_stats_kernel(%arg0: i32, %arg1: memref<128x128xbf16, #tpu.memory_space<vmem>>, %arg2: memref<128x128xbf16, #tpu.memory_space<vmem>>, %arg3: memref<128x128xf32, #tpu.memory_space<vmem>>, %arg4: memref<1x2x128xf32, #tpu.memory_space<vmem>>) attributes {dimension_semantics = [#tpu.dimension_semantics<parallel>], iteration_bounds = array<i64: 1>, scalar_prefetch = 0 : i64, scratch_operands = 0 : i64, tpu.core_type = #tpu.core_type<tc>, window_params = [{transform_indices = @transform_0, window_bounds = array<i64: 128, 128>}, {pipeline_mode = #tpu.pipeline_mode<synchronous>, transform_indices = @transform_1, window_bounds = array<i64: 128, 128>}, {transform_indices = @transform_2, window_bounds = array<i64: 128, 128>}, {transform_indices = @transform_3, window_bounds = array<i64: 1, 2, 128>}]} {
    %c0 = arith.constant 0 : index
    %c0_0 = arith.constant 0 : index
    %0 = vector.load %arg1[%c0, %c0_0] : memref<128x128xbf16, #tpu.memory_space<vmem>>, vector<128x128xbf16>
    %c0_1 = arith.constant 0 : index
    %c0_2 = arith.constant 0 : index
    %1 = vector.load %arg2[%c0_1, %c0_2] : memref<128x128xbf16, #tpu.memory_space<vmem>>, vector<128x128xbf16>
    %cst = arith.constant dense<0.000000e+00> : vector<128x128xf32>
    %2 = tpu.matmul %0, %1, %cst {dimension_numbers = #tpu.dot_dimension_numbers<[1], [0], [0], [1], [0, 0, 1, 1], [], []>} : vector<128x128xbf16>, vector<128x128xbf16>, vector<128x128xf32> -> vector<128x128xf32>
    %c0_3 = arith.constant 0 : index
    %c0_4 = arith.constant 0 : index
    %3 = vector.load %arg3[%c0_3, %c0_4] : memref<128x128xf32, #tpu.memory_space<vmem>>, vector<128x128xf32>
    tpu.vector_store %arg3[%c0_3, %c0_4], %2 {strides = array<i32>} : memref<128x128xf32, #tpu.memory_space<vmem>>, vector<128x128xf32>,
    %4 = tpu.iota {dimensions = array<i32: 0>} : vector<128x1xi32>
    %c128_i32 = arith.constant 128 : i32
    %5 = arith.muli %arg0, %c128_i32 : i32
    %6 = vector.broadcast %5 : i32 to vector<128x1xi32>
    %7 = arith.addi %4, %6 : vector<128x1xi32>
    %c128_i32_5 = arith.constant 128 : i32
    %8 = vector.broadcast %c128_i32_5 : i32 to vector<128x1xi32>
    %9 = arith.cmpi slt, %7, %8 : vector<128x1xi32>
    %10 = arith.extui %9 : vector<128x1xi1> to vector<128x1xi32>
    %11 = arith.sitofp %10 : vector<128x1xi32> to vector<128x1xf32>
    %12 = vector.broadcast %11 : vector<128x1xf32> to vector<128x128xf32>
    %13 = arith.mulf %2, %12 : vector<128x128xf32>
    %cst_6 = arith.constant dense<0.000000e+00> : vector<128xf32>
    %14 = vector.multi_reduction <add>, %13, %cst_6 [0] : vector<128x128xf32> to vector<128xf32>
    %15 = vector.shape_cast %14 : vector<128xf32> to vector<1x128xf32>
    %16 = arith.mulf %13, %2 : vector<128x128xf32>
    %cst_7 = arith.constant dense<0.000000e+00> : vector<128xf32>
    %17 = vector.multi_reduction <add>, %16, %cst_7 [0] : vector<128x128xf32> to vector<128xf32>
    %18 = vector.shape_cast %17 : vector<128xf32> to vector<1x128xf32>
    %c0_8 = arith.constant 0 : index
    %c0_9 = arith.constant 0 : index
    %c0_10 = arith.constant 0 : index
    %19 = vector.load %arg4[%c0_8, %c0_9, %c0_10] : memref<1x2x128xf32, #tpu.memory_space<vmem>>, vector<1x1x128xf32>
    %20 = vector.shape_cast %19 : vector<1x1x128xf32> to vector<1x128xf32>
    %21 = vector.shape_cast %15 : vector<1x128xf32> to vector<1x1x128xf32>
    tpu.vector_store %arg4[%c0_8, %c0_9, %c0_10], %21 {strides = array<i32>} : memref<1x2x128xf32, #tpu.memory_space<vmem>>, vector<1x1x128xf32>,
    %c0_11 = arith.constant 0 : index
    %c1 = arith.constant 1 : index
    %c0_12 = arith.constant 0 : index
    %22 = vector.load %arg4[%c0_11, %c1, %c0_12] : memref<1x2x128xf32, #tpu.memory_space<vmem>>, vector<1x1x128xf32>
    %23 = vector.shape_cast %22 : vector<1x1x128xf32> to vector<1x128xf32>
    %24 = vector.shape_cast %18 : vector<1x128xf32> to vector<1x1x128xf32>
    tpu.vector_store %arg4[%c0_11, %c1, %c0_12], %24 {strides = array<i32>} : memref<1x2x128xf32, #tpu.memory_space<vmem>>, vector<1x1x128xf32>,
    return
  }
  func.func @transform_0(%arg0: i32) -> (i32, i32) {
    %c0_i32 = arith.constant 0 : i32
    %c0_i32_0 = arith.constant 0 : i32
    return %arg0, %c0_i32 : i32, i32
  }
  func.func @transform_1(%arg0: i32) -> (i32, i32) {
    %c0_i32 = arith.constant 0 : i32
    %c0_i32_0 = arith.constant 0 : i32
    %c0_i32_1 = arith.constant 0 : i32
    return %c0_i32, %c0_i32_0 : i32, i32
  }
  func.func @transform_2(%arg0: i32) -> (i32, i32) {
    %c0_i32 = arith.constant 0 : i32
    %c0_i32_0 = arith.constant 0 : i32
    return %arg0, %c0_i32 : i32, i32
  }
  func.func @transform_3(%arg0: i32) -> (i32, i32, i32) {
    %c0_i32 = arith.constant 0 : i32
    %c0_i32_0 = arith.constant 0 : i32
    %c0_i32_1 = arith.constant 0 : i32
    return %arg0, %c0_i32, %c0_i32_0 : i32, i32, i32
  }
}

module attributes {stable_mosaic.version = 11 : i64} {
  func.func @_bn_residual_act_kernel(%arg0: i32, %arg1: memref<128x128xf32, #tpu.memory_space<vmem>>, %arg2: memref<2x128xf32, #tpu.memory_space<vmem>>, %arg3: memref<1x128xf32, #tpu.memory_space<vmem>>, %arg4: memref<1x128xf32, #tpu.memory_space<vmem>>, %arg5: memref<128x128xf32, #tpu.memory_space<vmem>>, %arg6: memref<2x128xf32, #tpu.memory_space<vmem>>, %arg7: memref<1x128xf32, #tpu.memory_space<vmem>>, %arg8: memref<1x128xf32, #tpu.memory_space<vmem>>, %arg9: memref<128x128xf32, #tpu.memory_space<vmem>>) attributes {dimension_semantics = [#tpu.dimension_semantics<parallel>], iteration_bounds = array<i64: 1>, scalar_prefetch = 0 : i64, scratch_operands = 0 : i64, tpu.core_type = #tpu.core_type<tc>, window_params = [{transform_indices = @transform_0, window_bounds = array<i64: 128, 128>}, {pipeline_mode = #tpu.pipeline_mode<synchronous>, transform_indices = @transform_1, window_bounds = array<i64: 2, 128>}, {pipeline_mode = #tpu.pipeline_mode<synchronous>, transform_indices = @transform_2, window_bounds = array<i64: 1, 128>}, {pipeline_mode = #tpu.pipeline_mode<synchronous>, transform_indices = @transform_3, window_bounds = array<i64: 1, 128>}, {transform_indices = @transform_4, window_bounds = array<i64: 128, 128>}, {pipeline_mode = #tpu.pipeline_mode<synchronous>, transform_indices = @transform_5, window_bounds = array<i64: 2, 128>}, {pipeline_mode = #tpu.pipeline_mode<synchronous>, transform_indices = @transform_6, window_bounds = array<i64: 1, 128>}, {pipeline_mode = #tpu.pipeline_mode<synchronous>, transform_indices = @transform_7, window_bounds = array<i64: 1, 128>}, {transform_indices = @transform_8, window_bounds = array<i64: 128, 128>}]} {
    %c0 = arith.constant 0 : index
    %c0_0 = arith.constant 0 : index
    %0 = vector.load %arg2[%c0, %c0_0] : memref<2x128xf32, #tpu.memory_space<vmem>>, vector<1x128xf32>
    %cst = arith.constant 7.812500e-03 : f32
    %1 = vector.broadcast %cst : f32 to vector<1x128xf32>
    %2 = arith.mulf %0, %1 : vector<1x128xf32>
    %c1 = arith.constant 1 : index
    %c0_1 = arith.constant 0 : index
    %3 = vector.load %arg2[%c1, %c0_1] : memref<2x128xf32, #tpu.memory_space<vmem>>, vector<1x128xf32>
    %cst_2 = arith.constant 7.812500e-03 : f32
    %4 = vector.broadcast %cst_2 : f32 to vector<1x128xf32>
    %5 = arith.mulf %3, %4 : vector<1x128xf32>
    %6 = arith.mulf %2, %2 : vector<1x128xf32>
    %7 = arith.subf %5, %6 : vector<1x128xf32>
    %cst_3 = arith.constant 0.000000e+00 : f32
    %8 = vector.broadcast %cst_3 : f32 to vector<1x128xf32>
    %9 = arith.maximumf %7, %8 : vector<1x128xf32>
    %c0_4 = arith.constant 0 : index
    %c0_5 = arith.constant 0 : index
    %10 = vector.load %arg3[%c0_4, %c0_5] : memref<1x128xf32, #tpu.memory_space<vmem>>, vector<1x128xf32>
    %cst_6 = arith.constant 9.99999974E-6 : f32
    %11 = vector.broadcast %cst_6 : f32 to vector<1x128xf32>
    %12 = arith.addf %9, %11 : vector<1x128xf32>
    %13 = math.rsqrt %12 : vector<1x128xf32>
    %14 = arith.mulf %10, %13 : vector<1x128xf32>
    %c0_7 = arith.constant 0 : index
    %c0_8 = arith.constant 0 : index
    %15 = vector.load %arg4[%c0_7, %c0_8] : memref<1x128xf32, #tpu.memory_space<vmem>>, vector<1x128xf32>
    %16 = arith.mulf %2, %14 : vector<1x128xf32>
    %17 = arith.subf %15, %16 : vector<1x128xf32>
    %c0_9 = arith.constant 0 : index
    %c0_10 = arith.constant 0 : index
    %18 = vector.load %arg1[%c0_9, %c0_10] : memref<128x128xf32, #tpu.memory_space<vmem>>, vector<128x128xf32>
    %19 = vector.broadcast %14 : vector<1x128xf32> to vector<128x128xf32>
    %20 = arith.mulf %18, %19 : vector<128x128xf32>
    %21 = vector.broadcast %17 : vector<1x128xf32> to vector<128x128xf32>
    %22 = arith.addf %20, %21 : vector<128x128xf32>
    %c0_11 = arith.constant 0 : index
    %c0_12 = arith.constant 0 : index
    %23 = vector.load %arg6[%c0_11, %c0_12] : memref<2x128xf32, #tpu.memory_space<vmem>>, vector<1x128xf32>
    %cst_13 = arith.constant 7.812500e-03 : f32
    %24 = vector.broadcast %cst_13 : f32 to vector<1x128xf32>
    %25 = arith.mulf %23, %24 : vector<1x128xf32>
    %c1_14 = arith.constant 1 : index
    %c0_15 = arith.constant 0 : index
    %26 = vector.load %arg6[%c1_14, %c0_15] : memref<2x128xf32, #tpu.memory_space<vmem>>, vector<1x128xf32>
    %cst_16 = arith.constant 7.812500e-03 : f32
    %27 = vector.broadcast %cst_16 : f32 to vector<1x128xf32>
    %28 = arith.mulf %26, %27 : vector<1x128xf32>
    %29 = arith.mulf %25, %25 : vector<1x128xf32>
    %30 = arith.subf %28, %29 : vector<1x128xf32>
    %cst_17 = arith.constant 0.000000e+00 : f32
    %31 = vector.broadcast %cst_17 : f32 to vector<1x128xf32>
    %32 = arith.maximumf %30, %31 : vector<1x128xf32>
    %c0_18 = arith.constant 0 : index
    %c0_19 = arith.constant 0 : index
    %33 = vector.load %arg7[%c0_18, %c0_19] : memref<1x128xf32, #tpu.memory_space<vmem>>, vector<1x128xf32>
    %cst_20 = arith.constant 9.99999974E-6 : f32
    %34 = vector.broadcast %cst_20 : f32 to vector<1x128xf32>
    %35 = arith.addf %32, %34 : vector<1x128xf32>
    %36 = math.rsqrt %35 : vector<1x128xf32>
    %37 = arith.mulf %33, %36 : vector<1x128xf32>
    %c0_21 = arith.constant 0 : index
    %c0_22 = arith.constant 0 : index
    %38 = vector.load %arg8[%c0_21, %c0_22] : memref<1x128xf32, #tpu.memory_space<vmem>>, vector<1x128xf32>
    %39 = arith.mulf %25, %37 : vector<1x128xf32>
    %40 = arith.subf %38, %39 : vector<1x128xf32>
    %c0_23 = arith.constant 0 : index
    %c0_24 = arith.constant 0 : index
    %41 = vector.load %arg5[%c0_23, %c0_24] : memref<128x128xf32, #tpu.memory_space<vmem>>, vector<128x128xf32>
    %42 = vector.broadcast %37 : vector<1x128xf32> to vector<128x128xf32>
    %43 = arith.mulf %41, %42 : vector<128x128xf32>
    %44 = vector.broadcast %40 : vector<1x128xf32> to vector<128x128xf32>
    %45 = arith.addf %43, %44 : vector<128x128xf32>
    %46 = arith.addf %22, %45 : vector<128x128xf32>
    %cst_25 = arith.constant 0.000000e+00 : f32
    %47 = vector.broadcast %cst_25 : f32 to vector<128x128xf32>
    %48 = arith.maximumf %46, %47 : vector<128x128xf32>
    %c0_26 = arith.constant 0 : index
    %c0_27 = arith.constant 0 : index
    %49 = vector.load %arg9[%c0_26, %c0_27] : memref<128x128xf32, #tpu.memory_space<vmem>>, vector<128x128xf32>
    tpu.vector_store %arg9[%c0_26, %c0_27], %48 {strides = array<i32>} : memref<128x128xf32, #tpu.memory_space<vmem>>, vector<128x128xf32>,
    return
  }
  func.func @transform_0(%arg0: i32) -> (i32, i32) {
    %c0_i32 = arith.constant 0 : i32
    %c0_i32_0 = arith.constant 0 : i32
    return %arg0, %c0_i32 : i32, i32
  }
  func.func @transform_1(%arg0: i32) -> (i32, i32) {
    %c0_i32 = arith.constant 0 : i32
    %c0_i32_0 = arith.constant 0 : i32
    %c0_i32_1 = arith.constant 0 : i32
    return %c0_i32, %c0_i32_0 : i32, i32
  }
  func.func @transform_2(%arg0: i32) -> (i32, i32) {
    %c0_i32 = arith.constant 0 : i32
    %c0_i32_0 = arith.constant 0 : i32
    %c0_i32_1 = arith.constant 0 : i32
    return %c0_i32, %c0_i32_0 : i32, i32
  }
  func.func @transform_3(%arg0: i32) -> (i32, i32) {
    %c0_i32 = arith.constant 0 : i32
    %c0_i32_0 = arith.constant 0 : i32
    %c0_i32_1 = arith.constant 0 : i32
    return %c0_i32, %c0_i32_0 : i32, i32
  }
  func.func @transform_4(%arg0: i32) -> (i32, i32) {
    %c0_i32 = arith.constant 0 : i32
    %c0_i32_0 = arith.constant 0 : i32
    return %arg0, %c0_i32 : i32, i32
  }
  func.func @transform_5(%arg0: i32) -> (i32, i32) {
    %c0_i32 = arith.constant 0 : i32
    %c0_i32_0 = arith.constant 0 : i32
    %c0_i32_1 = arith.constant 0 : i32
    return %c0_i32, %c0_i32_0 : i32, i32
  }
  func.func @transform_6(%arg0: i32) -> (i32, i32) {
    %c0_i32 = arith.constant 0 : i32
    %c0_i32_0 = arith.constant 0 : i32
    %c0_i32_1 = arith.constant 0 : i32
    return %c0_i32, %c0_i32_0 : i32, i32
  }
  func.func @transform_7(%arg0: i32) -> (i32, i32) {
    %c0_i32 = arith.constant 0 : i32
    %c0_i32_0 = arith.constant 0 : i32
    %c0_i32_1 = arith.constant 0 : i32
    return %c0_i32, %c0_i32_0 : i32, i32
  }
  func.func @transform_8(%arg0: i32) -> (i32, i32) {
    %c0_i32 = arith.constant 0 : i32
    %c0_i32_0 = arith.constant 0 : i32
    return %arg0, %c0_i32 : i32, i32
  }
}

</mosaic_0001>

<bundles_post_ra>
// kernel: bottleneck_forward.7
= control target key start
LH: loop header
LB: loop body
LE: loop exit
PB: predicated region body
PF: predicated region fallthrough
CT: control target
= control target key end

     0   :  { %s784_s15 = smov 0   ;;  %s937_s0 = inlined_call_operand.vmem [shape: f32[512,128], index: 0, kind: input, shape index: {}]   ;;  %s938_s1 = inlined_call_operand.vmem [shape: f32[2,128], index: 1, kind: input, shape index: {}]   ;;  %s939_s2 = inlined_call_operand.vmem [shape: f32[1,128], index: 2, kind: input, shape index: {}]   ;;  %s940_s3 = inlined_call_operand.vmem [shape: f32[1,128], index: 3, kind: input, shape index: {}]   ;;  %s941_s4 = inlined_call_operand.vmem [shape: bf16[512,128], index: 4, kind: output, shape index: {}]  }
   0x1 LB: > { %s571_s16 = sadd.s32 4294967295, %s757_s15   ;;  %p575_p0 = scmp.ge.s32.totalorder %s757_s15, 1  ;;  %s757_s15 = sphi %s784_s15, %s14_s15  }
   0x2   : > { %p163_p1 = scmp.lt.s32.totalorder %s757_s15, 3 }
   0x4   : > { %p164_p2 = pnand %p575_p0, %p163_p1 }
   0x5   : > { %v201_v0 = vld [vmem:[%s938_s1] sm:$0x1] (!%p164_p2)  ;;  %v203_v1 = vld [vmem:[%s938_s1 + $0x1] sm:$0x1] (!%p164_p2)  ;;  %s576_s21 = sshll.u32 (!%p164_p2), %s571_s16, 5  ;;  %v248_v8 = vlaneseq (!%p164_p2) }
   0x6   : > { %167 = sbr.rel (%p164_p2) target bundleno = 65 (0x41), region = 36  ;;  %v202_v2 = vmul.f32 (!%p164_p2), 0.001953125, %v201_v0  ;;  %v204_v3 = vmul.f32 (!%p164_p2), 0.001953125, %v203_v1  ;;  %p190_p3 = scmp.lt.s32.totalorder (!%p164_p2), %s576_s21, 63  ;;  %v208_v10 = vld [vmem:[%s939_s2] sm:$0x1] (!%p164_p2) }
   0x7   : > { %v249_v9 = vshrl.u32 (!%p164_p2), %v248_v8, 7  ;;  %v212_v14 = vld [vmem:[%s940_s3] sm:$0x1] (!%p164_p2) }
   0x8   : > { %v205_v4 = vmul.f32 (!%p164_p2), %v202_v2, %v202_v2 }
   0x9   : > { %v250_v11 = vsub.s32 (!%p164_p2), 0, %v249_v9 }
   0xa   : > { %v206_v5 = vsub.f32 (!%p164_p2), %v204_v3, %v205_v4 }
   0xc   : > { %v207_v6 = vmax.f32 (!%p164_p2), %v206_v5, 0.0 }
   0xd   : > { %s943_s21 = smov (!%p190_p3, %s576_s21), 63 }
   0xe   : > { %v209_v7 = vadd.f32 1e-05, %v207_v6  ;;  %s577_s22 = sshll.u32 %s943_s21, 3  ;;  %s579_s30 = sshll.u32 %s943_s21, 2 }
   0xf   : > { %s804_s25 = scalar_lea.vmem %s937_s0, %s577_s22  ;;  %s856_s7 = scalar_lea.vmem %s941_s4, %s579_s30 }
  0x10   : > { %749 = vrsqrt.f32 %v209_v7  ;;  %v215_v15 = vld [vmem:[%s804_s25] sm:$0xff]  ;;  %v216_v16 = vld [vmem:[%s804_s25 + $0x8] sm:$0xff]  ;;  %v217_v17 = vld [vmem:[%s804_s25 + $0x10] sm:$0xff] }
  0x11   : > { %v218_v18 = vld [vmem:[%s804_s25 + $0x18] sm:$0xff]  ;;  %v219_v19 = vld [vmem:[%s804_s25 + $0x20] sm:$0xff]  ;;  %v220_v22 = vld [vmem:[%s804_s25 + $0x28] sm:$0xff] }
  0x12   : > { %v221_v23 = vld [vmem:[%s804_s25 + $0x30] sm:$0xff]  ;;  %v222_v24 = vld [vmem:[%s804_s25 + $0x38] sm:$0xff]  ;;  %v223_v25 = vld [vmem:[%s804_s25 + $0x40] sm:$0xff] }
  0x13   : > { %v224_v26 = vld [vmem:[%s804_s25 + $0x48] sm:$0xff]  ;;  %v225_v27 = vld [vmem:[%s804_s25 + $0x50] sm:$0xff]  ;;  %v226_v32 = vld [vmem:[%s804_s25 + $0x58] sm:$0xff] }
  0x14   : > { %v227_v33 = vld [vmem:[%s804_s25 + $0x60] sm:$0xff]  ;;  %v228_v34 = vld [vmem:[%s804_s25 + $0x68] sm:$0xff]  ;;  %v229_v3 = vld [vmem:[%s804_s25 + $0x70] sm:$0xff] }
  0x15   : > { %v230_v4 = vld [vmem:[%s804_s25 + $0x78] sm:$0xff]  ;;  %v231_v9 = vld [vmem:[%s804_s25 + $0x80] sm:$0xff] }
  0x1a   : > { %v750_v12 = vpop.eup %749 }
  0x1b   : > { %v211_v13 = vmul.f32 %v750_v12, %v208_v10 }
  0x1d   : > { %v213_v20 = vmul.f32 %v211_v13, %v202_v2  ;;  %v817_v21 = vrot.slane %v211_v13, %v250_v11 }
  0x1f   : > { %v214_v28 = vsub.f32 %v212_v14, %v213_v20  ;;  %v253_v29 = vmul.f32 %v817_v21, %v215_v15  ;;  %v254_v30 = vmul.f32 %v817_v21, %v216_v16  ;;  %v255_v31 = vmul.f32 %v817_v21, %v217_v17  ;;  %v232_v14 = vld [vmem:[%s804_s25 + $0x88] sm:$0xff]  ;;  %v234_v20 = vld [vmem:[%s804_s25 + $0x98] sm:$0xff] }
  0x20   : > { %v256_v35 = vmul.f32 %v817_v21, %v218_v18  ;;  %v257_v36 = vmul.f32 %v817_v21, %v219_v19  ;;  %v258_v37 = vmul.f32 %v817_v21, %v220_v22  ;;  %v259_v38 = vmul.f32 %v817_v21, %v221_v23  ;;  %v233_v19 = vld [vmem:[%s804_s25 + $0x90] sm:$0xff] }
  0x21   : > { %v835_v39 = vrot.slane %v214_v28, %v250_v11  ;;  %v260_v40 = vmul.f32 %v817_v21, %v222_v24  ;;  %v261_v41 = vmul.f32 %v817_v21, %v223_v25  ;;  %v262_v42 = vmul.f32 %v817_v21, %v224_v26  ;;  %v235_v26 = vld [vmem:[%s804_s25 + $0xa0] sm:$0xff] }
  0x22   : > { %v263_v43 = vmul.f32 %v817_v21, %v225_v27  ;;  %v264_v44 = vmul.f32 %v817_v21, %v226_v32  ;;  %v265_v45 = vmul.f32 %v817_v21, %v227_v33  ;;  %v266_v46 = vmul.f32 %v817_v21, %v228_v34 }
  0x23   : > { %v291_v47 = vadd.f32 %v835_v39, %v253_v29  ;;  %v292_v48 = vadd.f32 %v835_v39, %v254_v30  ;;  %v293_v49 = vadd.f32 %v835_v39, %v255_v31  ;;  %v294_v50 = vadd.f32 %v835_v39, %v256_v35  ;;  %v236_v31 = vld [vmem:[%s804_s25 + $0xa8] sm:$0xff] }
  0x24   : > { %v295_v51 = vadd.f32 %v835_v39, %v257_v36  ;;  %v296_v52 = vadd.f32 %v835_v39, %v258_v37  ;;  %v297_v53 = vadd.f32 %v835_v39, %v259_v38  ;;  %v298_v54 = vadd.f32 %v835_v39, %v260_v40  ;;  %v237_v36 = vld [vmem:[%s804_s25 + $0xb0] sm:$0xff] }
  0x25   : > { %v323_v55 = vmax.f32 %v291_v47, 0.0  ;;  %v324_v56 = vmax.f32 %v292_v48, 0.0  ;;  %v325_v57 = vmax.f32 %v293_v49, 0.0  ;;  %v326_v58 = vmax.f32 %v294_v50, 0.0  ;;  %v239_v47 = vld [vmem:[%s804_s25 + $0xc0] sm:$0xff] }
  0x26   : > { %v327_v59 = vmax.f32 %v295_v51, 0.0  ;;  %v328_v60 = vmax.f32 %v296_v52, 0.0  ;;  %v329_v61 = vmax.f32 %v297_v53, 0.0  ;;  %v330_v62 = vmax.f32 %v298_v54, 0.0  ;;  %v240_v52 = vld [vmem:[%s804_s25 + $0xc8] sm:$0xff] }
  0x27   : > { %v649_v63 = vpack.c.bf16 %v324_v56, %v323_v55  ;;  %v654_v0 = vpack.c.bf16 %v326_v58, %v325_v57  ;;  %v299_v1 = vadd.f32 %v835_v39, %v261_v41  ;;  %v300_v2 = vadd.f32 %v835_v39, %v262_v42  ;;  %v238_v42 = vld [vmem:[%s804_s25 + $0xb8] sm:$0xff]  ;;  %v241_v57 = vld [vmem:[%s804_s25 + $0xd0] sm:$0xff] }
  0x28   : > { %v659_v5 = vpack.c.bf16 %v328_v60, %v327_v59  ;;  %v664_v6 = vpack.c.bf16 %v330_v62, %v329_v61  ;;  %v301_v7 = vadd.f32 %v835_v39, %v263_v43  ;;  %v302_v8 = vadd.f32 %v835_v39, %v264_v44  ;;  %v242_v58 = vld [vmem:[%s804_s25 + $0xd8] sm:$0xff] }
  0x29   : > { %650 = vst [vmem:[%s856_s7] sm:$0xff] %v649_v63   ;;  %726 = vst [vmem:[%s856_s7 + $0x8] sm:$0xff] %v654_v0   ;;  %v331_v10 = vmax.f32 %v299_v1, 0.0  ;;  %v332_v11 = vmax.f32 %v300_v2, 0.0  ;;  %v303_v12 = vadd.f32 %v835_v39, %v265_v45  ;;  %v304_v13 = vadd.f32 %v835_v39, %v266_v46  ;;  %v243_v63 = vld [vmem:[%s804_s25 + $0xe0] sm:$0xff] }
  0x2a   : > { %727 = vst [vmem:[%s856_s7 + $0x10] sm:$0xff] %v659_v5   ;;  %728 = vst [vmem:[%s856_s7 + $0x18] sm:$0xff] %v664_v6   ;;  %v333_v15 = vmax.f32 %v301_v7, 0.0  ;;  %v334_v16 = vmax.f32 %v302_v8, 0.0  ;;  %v267_v17 = vmul.f32 %v817_v21, %v229_v3  ;;  %v268_v18 = vmul.f32 %v817_v21, %v230_v4  ;;  %v244_v4 = vld [vmem:[%s804_s25 + $0xe8] sm:$0xff] }
  0x2b   : > { %v669_v22 = vpack.c.bf16 %v332_v11, %v331_v10  ;;  %v335_v23 = vmax.f32 %v303_v12, 0.0  ;;  %v336_v24 = vmax.f32 %v304_v13, 0.0  ;;  %v269_v25 = vmul.f32 %v817_v21, %v231_v9  ;;  %v245_v9 = vld [vmem:[%s804_s25 + $0xf0] sm:$0xff] }
  0x2c   : > { %v674_v27 = vpack.c.bf16 %v334_v16, %v333_v15  ;;  %v305_v28 = vadd.f32 %v835_v39, %v267_v17  ;;  %v306_v29 = vadd.f32 %v835_v39, %v268_v18  ;;  %v270_v30 = vmul.f32 %v817_v21, %v232_v14  ;;  %v246_v14 = vld [vmem:[%s804_s25 + $0xf8] sm:$0xff] }
  0x2d   : > { %729 = vst [vmem:[%s856_s7 + $0x20] sm:$0xff] %v669_v22   ;;  %v679_v32 = vpack.c.bf16 %v336_v24, %v335_v23  ;;  %v307_v33 = vadd.f32 %v835_v39, %v269_v25  ;;  %v271_v34 = vmul.f32 %v817_v21, %v233_v19  ;;  %v272_v35 = vmul.f32 %v817_v21, %v234_v20 }
  0x2e   : > { %730 = vst [vmem:[%s856_s7 + $0x28] sm:$0xff] %v674_v27   ;;  %v337_v37 = vmax.f32 %v305_v28, 0.0  ;;  %v338_v38 = vmax.f32 %v306_v29, 0.0  ;;  %v308_v40 = vadd.f32 %v835_v39, %v270_v30  ;;  %v273_v41 = vmul.f32 %v817_v21, %v235_v26 }
  0x2f   : > { %731 = vst [vmem:[%s856_s7 + $0x30] sm:$0xff] %v679_v32   ;;  %v339_v43 = vmax.f32 %v307_v33, 0.0  ;;  %v309_v44 = vadd.f32 %v835_v39, %v271_v34  ;;  %v310_v45 = vadd.f32 %v835_v39, %v272_v35  ;;  %v274_v46 = vmul.f32 %v817_v21, %v236_v31 }
  0x30   : > { %v684_v48 = vpack.c.bf16 %v338_v38, %v337_v37  ;;  %v340_v49 = vmax.f32 %v308_v40, 0.0  ;;  %v311_v50 = vadd.f32 %v835_v39, %v273_v41  ;;  %v275_v51 = vmul.f32 %v817_v21, %v237_v36 }
  0x31   : > { %v341_v53 = vmax.f32 %v309_v44, 0.0  ;;  %v342_v54 = vmax.f32 %v310_v45, 0.0  ;;  %v312_v55 = vadd.f32 %v835_v39, %v274_v46  ;;  %v276_v56 = vmul.f32 %v817_v21, %v238_v42 }
  0x32   : > { %732 = vst [vmem:[%s856_s7 + $0x38] sm:$0xff] %v684_v48   ;;  %v689_v59 = vpack.c.bf16 %v340_v49, %v339_v43  ;;  %v343_v60 = vmax.f32 %v311_v50, 0.0  ;;  %v313_v61 = vadd.f32 %v835_v39, %v275_v51  ;;  %v277_v62 = vmul.f32 %v817_v21, %v239_v47 }
  0x33   : > { %v694_v0 = vpack.c.bf16 %v342_v54, %v341_v53  ;;  %v344_v1 = vmax.f32 %v312_v55, 0.0  ;;  %v314_v2 = vadd.f32 %v835_v39, %v276_v56  ;;  %v278_v3 = vmul.f32 %v817_v21, %v240_v52 }
  0x34   : > { %733 = vst [vmem:[%s856_s7 + $0x40] sm:$0xff] %v689_v59   ;;  %v345_v5 = vmax.f32 %v313_v61, 0.0  ;;  %v315_v6 = vadd.f32 %v835_v39, %v277_v62  ;;  %v279_v7 = vmul.f32 %v817_v21, %v241_v57  ;;  %v280_v8 = vmul.f32 %v817_v21, %v242_v58 }
  0x35   : > { %734 = vst [vmem:[%s856_s7 + $0x48] sm:$0xff] %v694_v0   ;;  %v699_v10 = vpack.c.bf16 %v344_v1, %v343_v60  ;;  %v346_v11 = vmax.f32 %v314_v2, 0.0  ;;  %v316_v12 = vadd.f32 %v835_v39, %v278_v3  ;;  %v281_v13 = vmul.f32 %v817_v21, %v243_v63 }
  0x36   : > { %v347_v15 = vmax.f32 %v315_v6, 0.0  ;;  %v317_v16 = vadd.f32 %v835_v39, %v279_v7  ;;  %v318_v17 = vadd.f32 %v835_v39, %v280_v8  ;;  %v282_v18 = vmul.f32 %v817_v21, %v244_v4 }
  0x37   : > { %735 = vst [vmem:[%s856_s7 + $0x50] sm:$0xff] %v699_v10   ;;  %v704_v19 = vpack.c.bf16 %v346_v11, %v345_v5  ;;  %v348_v20 = vmax.f32 %v316_v12, 0.0  ;;  %v319_v22 = vadd.f32 %v835_v39, %v281_v13  ;;  %v283_v23 = vmul.f32 %v817_v21, %v245_v9 }
  0x38   : > { %v349_v24 = vmax.f32 %v317_v16, 0.0  ;;  %v350_v25 = vmax.f32 %v318_v17, 0.0  ;;  %v320_v26 = vadd.f32 %v835_v39, %v282_v18  ;;  %v284_v27 = vmul.f32 %v817_v21, %v246_v14 }
  0x39   : > { %736 = vst [vmem:[%s856_s7 + $0x58] sm:$0xff] %v704_v19   ;;  %v709_v28 = vpack.c.bf16 %v348_v20, %v347_v15  ;;  %v351_v29 = vmax.f32 %v319_v22, 0.0  ;;  %v321_v30 = vadd.f32 %v835_v39, %v283_v23 }
  0x3a   : > { %v714_v31 = vpack.c.bf16 %v350_v25, %v349_v24  ;;  %v352_v32 = vmax.f32 %v320_v26, 0.0  ;;  %v322_v33 = vadd.f32 %v835_v39, %v284_v27 }
  0x3b   : > { %737 = vst [vmem:[%s856_s7 + $0x60] sm:$0xff] %v709_v28   ;;  %v353_v34 = vmax.f32 %v321_v30, 0.0 }
  0x3c   : > { %738 = vst [vmem:[%s856_s7 + $0x68] sm:$0xff] %v714_v31   ;;  %v719_v35 = vpack.c.bf16 %v352_v32, %v351_v29  ;;  %v354_v36 = vmax.f32 %v322_v33, 0.0 }
  0x3e   : > { %739 = vst [vmem:[%s856_s7 + $0x70] sm:$0xff] %v719_v35   ;;  %v724_v37 = vpack.c.bf16 %v354_v36, %v353_v34 }
  0x40   : > { %740 = vst [vmem:[%s856_s7 + $0x78] sm:$0xff] %v724_v37  }
  0x41 PF: > { %s14_s15 = sadd.s32 1, %s757_s15  }
  0x42   : > { %p11_p4 = scmp.ge.s32.totalorder %s14_s15, 4  }
  0x44   :  { %13 = sbr.rel (!%p11_p4) target bundleno = 1 (0x1), region = 66 }

// kernel: bottleneck_forward.6
= control target key start
LH: loop header
LB: loop body
LE: loop exit
PB: predicated region body
PF: predicated region fallthrough
CT: control target
= control target key end

     0   :  { %s1180_s12 = smov 0   ;;  %s1485_s0 = inlined_call_operand.vmem [shape: bf16[512,128], index: 0, kind: input, shape index: {}]   ;;  %s1486_s1 = inlined_call_operand.vmem [shape: bf16[128,128], index: 1, kind: input, shape index: {}]   ;;  %s1487_s2 = inlined_call_operand.vmem [shape: f32[512,128], index: 2, kind: output, shape index: {0}]   ;;  %s1488_s3 = inlined_call_operand.vmem [shape: f32[2,2,128], index: 3, kind: output, shape index: {1}]  }
   0x1 LB: > { %s1186_s13 = sadd.s32 4294967295, %s1157_s12   ;;  %p965_p0 = scmp.ge.s32.totalorder %s1157_s12, 1  ;;  %s1157_s12 = sphi %s1180_s12, %s14_s12  }
   0x2   : > { %p141_p1 = scmp.lt.s32.totalorder %s1157_s12, 3 }
   0x4   : > { %p142_p2 = pnand %p965_p0, %p141_p1 }
   0x5   : > { %v1127_v0 = vld [vmem:[%s1486_s1] sm:$0xff] (!%p142_p2)   ;;  %s966_s16 = sshll.u32 (!%p142_p2), %s1186_s13, 5  ;;  %v1128_v1 = vld [vmem:[%s1486_s1 + $0x8] sm:$0xff] (!%p142_p2)   ;;  %v1129_v2 = vld [vmem:[%s1486_s1 + $0x10] sm:$0xff] (!%p142_p2)   ;;  %v571_v24 = vlaneseq (!%p142_p2)  ;;  %s995_s8 = sshll.u32 (!%p142_p2), %s1186_s13, 8  ;;  %v1159_v38 = vmov (!%p142_p2), 0.0  }
   0x6   : > { %145 = sbr.rel (%p142_p2) target bundleno = 332 (0x14c), region = 28  ;;  %p170_p3 = scmp.lt.s32.totalorder (!%p142_p2), %s966_s16, 63  ;;  %1054 = vmatprep.subr.bf16.mxu0 (!%p142_p2), %v1127_v0  ;;  %1102 = vmatprep.subr.bf16.mxu1 (!%p142_p2), %v1127_v0  ;;  %v1130_v3 = vld [vmem:[%s1486_s1 + $0x18] sm:$0xff] (!%p142_p2)   ;;  %v1131_v5 = vld [vmem:[%s1486_s1 + $0x20] sm:$0xff] (!%p142_p2)   ;;  %v1132_v6 = vld [vmem:[%s1486_s1 + $0x28] sm:$0xff] (!%p142_p2)   ;;  %v1242_v26 = vstv (!%p142_p2), %s995_s8 }
   0x7   : > { %1055 = vmatpush3.bf16.msra.mxu0 (!%p142_p2), %v1127_v0  ;;  %1110 = vmatpush3.bf16.msra.mxu1 (!%p142_p2), %v1127_v0  ;;  %v1133_v8 = vld [vmem:[%s1486_s1 + $0x30] sm:$0xff] (!%p142_p2)   ;;  %v1134_v9 = vld [vmem:[%s1486_s1 + $0x38] sm:$0xff] (!%p142_p2)   ;;  %v1239_v25 = vshrl.u32 (!%p142_p2), %v571_v24, 7  ;;  %p181_p4 = scmp.lt.s32.totalorder (!%p142_p2), %s1186_s13, 1 }
   0x8   : > { %1056 = vmatprep.subr.bf16.mxu0 (!%p142_p2), %v1128_v1  ;;  %1103 = vmatprep.subr.bf16.mxu1 (!%p142_p2), %v1128_v1 }
   0x9   : > { %v574_v27 = vadd.s32 (!%p142_p2), 16, %v1239_v25  ;;  %v573_v28 = vadd.s32 (!%p142_p2), 8, %v1239_v25  ;;  %v606_v29 = vadd.s32 (!%p142_p2), %v1242_v26, %v1239_v25  ;;  %v575_v30 = vadd.s32 (!%p142_p2), 24, %v1239_v25 }
   0xa   : > { %v578_v33 = vadd.s32 (!%p142_p2), 48, %v1239_v25  ;;  %v576_v35 = vadd.s32 (!%p142_p2), 32, %v1239_v25  ;;  %v579_v36 = vadd.s32 (!%p142_p2), 56, %v1239_v25  ;;  %v577_v37 = vadd.s32 (!%p142_p2), 40, %v1239_v25 }
   0xb   : > { %1057 = vmatpush3.bf16.msra.mxu0 (!%p142_p2), %v1128_v1  ;;  %1111 = vmatpush3.bf16.msra.mxu1 (!%p142_p2), %v1128_v1  ;;  %v608_v31 = vadd.s32 (!%p142_p2), %v1242_v26, %v574_v27  ;;  %v607_v32 = vadd.s32 (!%p142_p2), %v1242_v26, %v573_v28  ;;  %vm638_vm0 = vcmp.lt.s32.totalorder (!%p142_p2), %v606_v29, 512  ;;  %v609_v34 = vadd.s32 (!%p142_p2), %v1242_v26, %v575_v30 }
   0xc   : > { %1058 = vmatprep.subr.bf16.mxu0 (!%p142_p2), %v1129_v2  ;;  %1104 = vmatprep.subr.bf16.mxu1 (!%p142_p2), %v1129_v2  ;;  %v996_v39 = vsel (!%p142_p2), %vm638_vm0, 1.0, %v1159_v38  ;;  %v612_v40 = vadd.s32 (!%p142_p2), %v1242_v26, %v578_v33  ;;  %v610_v42 = vadd.s32 (!%p142_p2), %v1242_v26, %v576_v35  ;;  %v613_v43 = vadd.s32 (!%p142_p2), %v1242_v26, %v579_v36 }
   0xd   : > { %s1490_s16 = smov (!%p170_p3, %s966_s16), 63  ;;  %vm640_vm1 = vcmp.lt.s32.totalorder %v608_v31, 512  ;;  %vm639_vm2 = vcmp.lt.s32.totalorder %v607_v32, 512  ;;  %vm641_vm3 = vcmp.lt.s32.totalorder %v609_v34, 512  ;;  %v611_v48 = vadd.s32 %v1242_v26, %v577_v37  ;;  %s1492_s13 = smov (!%p181_p4, %s1186_s13), 1 }
   0xe   : > { %s967_s21 = sshll.u32 %s1490_s16, 2  ;;  %s969_s9 = sshll.u32 %s1490_s16, 3  ;;  %v998_v45 = vsel %vm640_vm1, 1.0, %v1159_v38  ;;  %v997_v47 = vsel %vm639_vm2, 1.0, %v1159_v38  ;;  %v582_v49 = vadd.s32 80, %v1239_v25  ;;  %v999_v54 = vsel %vm641_vm3, 1.0, %v1159_v38 }
   0xf   : > { %s1206_s24 = scalar_lea.vmem %s1485_s0, %s967_s21  ;;  %1059 = vmatpush3.bf16.msra.mxu0 %v1129_v2  ;;  %1112 = vmatpush3.bf16.msra.mxu1 %v1129_v2  ;;  %s1260_s14 = scalar_lea.vmem %s1487_s2, %s969_s9  ;;  %vm644_vm4 = vcmp.lt.s32.totalorder %v612_v40, 512  ;;  %v580_v56 = vadd.s32 64, %v1239_v25  ;;  %vm642_vm5 = vcmp.lt.s32.totalorder %v610_v42, 512  ;;  %vm645_vm6 = vcmp.lt.s32.totalorder %v613_v43, 512 }
  0x10   : > { %v1135_v4 = vld [vmem:[%s1206_s24] sm:$0xff]   ;;  %1060 = vmatprep.subr.bf16.mxu0 %v1130_v3  ;;  %1105 = vmatprep.subr.bf16.mxu1 %v1130_v3  ;;  %v1136_v10 = vld [vmem:[%s1206_s24 + $0x8] sm:$0xff]   ;;  %v1137_v12 = vld [vmem:[%s1206_s24 + $0x10] sm:$0xff]   ;;  %vm643_vm7 = vcmp.lt.s32.totalorder %v611_v48, 512  ;;  %v616_v60 = vadd.s32 %v1242_v26, %v582_v49  ;;  %v583_v61 = vadd.s32 88, %v1239_v25  ;;  %v581_v62 = vadd.s32 72, %v1239_v25 }
  0x11   : > { %1070 = vmatprep.mubr.bf16.mxu0 %v1135_v4  ;;  %v1143_v7 = vld [vmem:[%s1206_s24 + $0x40] sm:$0xff]   ;;  %v1144_v11 = vld [vmem:[%s1206_s24 + $0x48] sm:$0xff]   ;;  %v1145_v13 = vld [vmem:[%s1206_s24 + $0x50] sm:$0xff]   ;;  %v1000_v4 = vsel %vm642_vm5, 1.0, %v1159_v38  ;;  %v586_v27 = vadd.s32 112, %v1239_v25  ;;  %v584_v28 = vadd.s32 96, %v1239_v25 }
  0x12   : > { %1086 = vmatprep.mubr.bf16.mxu1 %v1143_v7  ;;  %v1138_v14 = vld [vmem:[%s1206_s24 + $0x18] sm:$0xff]   ;;  %v1139_v16 = vld [vmem:[%s1206_s24 + $0x20] sm:$0xff]   ;;  %v1140_v18 = vld [vmem:[%s1206_s24 + $0x28] sm:$0xff]   ;;  %vm648_vm8 = vcmp.lt.s32.totalorder %v616_v60, 512  ;;  %v587_v34 = vadd.s32 120, %v1239_v25  ;;  %v585_v35 = vadd.s32 104, %v1239_v25 }
  0x13   : > { %1061 = vmatpush3.bf16.msra.mxu0 %v1130_v3  ;;  %1113 = vmatpush3.bf16.msra.mxu1 %v1130_v3  ;;  %v1146_v15 = vld [vmem:[%s1206_s24 + $0x58] sm:$0xff]   ;;  %v1147_v17 = vld [vmem:[%s1206_s24 + $0x60] sm:$0xff]   ;;  %v1148_v19 = vld [vmem:[%s1206_s24 + $0x68] sm:$0xff]   ;;  %v1002_v3 = vsel %vm644_vm4, 1.0, %v1159_v38  ;;  %v620_v43 = vadd.s32 %v1242_v26, %v586_v27  ;;  %s970_s15 = sshll.u32 %s1492_s13, 1 }
  0x14   : > { %1062 = vmatprep.subr.bf16.mxu0 %v1131_v5  ;;  %1106 = vmatprep.subr.bf16.mxu1 %v1131_v5  ;;  %v1141_v20 = vld [vmem:[%s1206_s24 + $0x30] sm:$0xff]   ;;  %v1142_v22 = vld [vmem:[%s1206_s24 + $0x38] sm:$0xff]   ;;  %s184_s18 = scalar_lea.vmem %s1488_s3, %s970_s15 }
  0x15   : > { %v1149_v21 = vld [vmem:[%s1206_s24 + $0x70] sm:$0xff]   ;;  %v1150_v23 = vld [vmem:[%s1206_s24 + $0x78] sm:$0xff]   ;;  %vm652_vm12 = vcmp.lt.s32.totalorder %v620_v43, 512 }
  0x17   : > { %1063 = vmatpush3.bf16.msra.mxu0 %v1131_v5  ;;  %1114 = vmatpush3.bf16.msra.mxu1 %v1131_v5  ;;  %v614_v5 = vadd.s32 %v1242_v26, %v580_v56  ;;  %v621_v56 = vadd.s32 %v1242_v26, %v587_v34 }
  0x18   : > { %1064 = vmatprep.subr.bf16.mxu0 %v1132_v6  ;;  %1107 = vmatprep.subr.bf16.mxu1 %v1132_v6 }
  0x19   : > { %vm646_vm9 = vcmp.lt.s32.totalorder %v614_v5, 512  ;;  %v589_v5 = vadd.s32 136, %v1239_v25  ;;  %vm653_vm14 = vcmp.lt.s32.totalorder %v621_v56, 512 }
  0x1a   : > { %v1004_v42 = vsel %vm646_vm9, 1.0, %v1159_v38 }
  0x1b   : > { %1065 = vmatpush3.bf16.msra.mxu0 %v1132_v6  ;;  %1115 = vmatpush3.bf16.msra.mxu1 %v1132_v6 }
  0x1c   : > { %1066 = vmatprep.subr.bf16.mxu0 %v1133_v8  ;;  %1108 = vmatprep.subr.bf16.mxu1 %v1133_v8 }
  0x1f   : > { %1067 = vmatpush3.bf16.msra.mxu0 %v1133_v8  ;;  %1116 = vmatpush3.bf16.msra.mxu1 %v1133_v8 }
  0x20   : > { %1068 = vmatprep.subr.bf16.mxu0 %v1134_v9  ;;  %1109 = vmatprep.subr.bf16.mxu1 %v1134_v9 }
  0x23   : > { %1069 = vmatpush3.bf16.msra.mxu0 %v1134_v9  ;;  %1117 = vmatpush3.bf16.msra.mxu1 %v1134_v9 }
  0x26   : > { %1071 = vmatmul.mubr.bf16.vlgmr.msra.gmra.mrb[0].mxu0 %v1136_v10  ;;  %1087 = vmatmul.mubr.bf16.vlgmr.msra.gmra.mrb[0].mxu1 %v1144_v11  ;;  %v1003_v10 = vsel %vm645_vm6, 1.0, %v1159_v38 }
  0x27   : > { %1074 = vmatprep.mubr.bf16.mxu0 %v1137_v12  ;;  %1090 = vmatprep.mubr.bf16.mxu1 %v1145_v13  ;;  %v1001_v13 = vsel %vm643_vm7, 1.0, %v1159_v38 }
  0x2e   : > { %1075 = vmatmul.mubr.bf16.gmra.mrb[4].mxu0 %v1138_v14  ;;  %1091 = vmatmul.mubr.bf16.gmra.mrb[4].mxu1 %v1146_v15  ;;  %v617_v14 = vadd.s32 %v1242_v26, %v583_v61  ;;  %v615_v15 = vadd.s32 %v1242_v26, %v581_v62 }
  0x2f   : > { %1078 = vmatprep.mubr.bf16.mxu0 %v1139_v16  ;;  %1094 = vmatprep.mubr.bf16.mxu1 %v1147_v17 }
  0x30   : > { %vm649_vm10 = vcmp.lt.s32.totalorder %v617_v14, 512  ;;  %vm647_vm11 = vcmp.lt.s32.totalorder %v615_v15, 512 }
  0x36   : > { %1079 = vmatmul.mubr.bf16.gmra.mrb[8].mxu0 %v1140_v18  ;;  %1095 = vmatmul.mubr.bf16.gmra.mrb[8].mxu1 %v1148_v19 }
  0x37   : > { %1082 = vmatprep.mubr.bf16.mxu0 %v1141_v20  ;;  %1098 = vmatprep.mubr.bf16.mxu1 %v1149_v21 }
  0x3e   : > { %1083 = vmatmul.mubr.bf16.gmra.mrb[12].mxu0 %v1142_v22  ;;  %1099 = vmatmul.mubr.bf16.gmra.mrb[12].mxu1 %v1150_v23 }
  0xf9   : > { %v1072_v41 = vpop.f32.mrb[0].mxu0  ;;  %v1266_v44 = vpop.f32.mrb[0].mxu1 }
  0xfa   : > { %541 = vst [vmem:[%s1260_s14 + $0x10] sm:$0xff] %v1072_v41  ;;  %v412_v46 = vpop.f32.mrb[1].mxu0  ;;  %557 = vst [vmem:[%s1260_s14 + $0x90] sm:$0xff] %v1266_v44  ;;  %v1275_v50 = vpop.f32.mrb[1].mxu1  ;;  %v736_v58 = vmul.f32 %v1072_v41, %v998_v45  ;;  %v618_v45 = vadd.s32 %v1242_v26, %v584_v28 }
  0xfb   : > { %539 = vst [vmem:[%s1260_s14] sm:$0xff] %v412_v46  ;;  %v734_v51 = vmul.f32 %v996_v39, %v412_v46  ;;  %v1073_v52 = vpop.f32.mrb[2].mxu0  ;;  %555 = vst [vmem:[%s1260_s14 + $0x80] sm:$0xff] %v1275_v50  ;;  %v1280_v53 = vpop.f32.mrb[2].mxu1 }
  0xfc   : > { %542 = vst [vmem:[%s1260_s14 + $0x18] sm:$0xff] %v1073_v52  ;;  %v415_v55 = vpop.f32.mrb[3].mxu0  ;;  %558 = vst [vmem:[%s1260_s14 + $0x98] sm:$0xff] %v1280_v53  ;;  %v1288_v57 = vpop.f32.mrb[3].mxu1  ;;  %v737_v0 = vmul.f32 %v1073_v52, %v999_v54  ;;  %v805_v6 = vmul.f32 %v1072_v41, %v736_v58  ;;  %v1006_v41 = vsel %vm648_vm8, 1.0, %v1159_v38  ;;  %vm650_vm13 = vcmp.lt.s32.totalorder %v618_v45, 512 }
  0xfd   : > { %540 = vst [vmem:[%s1260_s14 + $0x8] sm:$0xff] %v415_v55  ;;  %v735_v59 = vmul.f32 %v997_v47, %v415_v55  ;;  %556 = vst [vmem:[%s1260_s14 + $0x88] sm:$0xff] %v1288_v57  ;;  %v803_v63 = vmul.f32 %v734_v51, %v412_v46 }
  0xfe   : > { %v806_v17 = vmul.f32 %v1073_v52, %v737_v0 }
  0xff   : > { %v766_v1 = vadd.f32 %v735_v59, %v734_v51  ;;  %v804_v2 = vmul.f32 %v735_v59, %v415_v55  ;;  %v1007_v51 = vsel %vm649_vm10, 1.0, %v1159_v38  ;;  %v1005_v55 = vsel %vm647_vm11, 1.0, %v1159_v38 }
 0x100   : > { %v588_v59 = vadd.s32 128, %v1239_v25 }
 0x101   : > { %v767_v7 = vadd.f32 %v766_v1, %v736_v58  ;;  %v835_v8 = vadd.f32 %v804_v2, %v803_v63  ;;  %v1076_v9 = vpop.f32.mrb[4].mxu0  ;;  %v1302_v11 = vpop.f32.mrb[4].mxu1  ;;  %v619_v58 = vadd.s32 %v1242_v26, %v585_v35 }
 0x102   : > { %545 = vst [vmem:[%s1260_s14 + $0x30] sm:$0xff] %v1076_v9  ;;  %v428_v12 = vpop.f32.mrb[5].mxu0  ;;  %561 = vst [vmem:[%s1260_s14 + $0xb0] sm:$0xff] %v1302_v11  ;;  %v1311_v16 = vpop.f32.mrb[5].mxu1  ;;  %v740_v23 = vmul.f32 %v1076_v9, %v1002_v3 }
 0x103   : > { %v836_v18 = vadd.f32 %v835_v8, %v805_v6  ;;  %543 = vst [vmem:[%s1260_s14 + $0x20] sm:$0xff] %v428_v12  ;;  %v738_v19 = vmul.f32 %v1000_v4, %v428_v12  ;;  %v768_v20 = vadd.f32 %v767_v7, %v737_v0  ;;  %v1077_v21 = vpop.f32.mrb[6].mxu0  ;;  %559 = vst [vmem:[%s1260_s14 + $0xa0] sm:$0xff] %v1311_v16  ;;  %v1316_v22 = vpop.f32.mrb[6].mxu1  ;;  %vm651_vm15 = vcmp.lt.s32.totalorder %v619_v58, 512 }
 0x104   : > { %546 = vst [vmem:[%s1260_s14 + $0x38] sm:$0xff] %v1077_v21  ;;  %v431_v24 = vpop.f32.mrb[7].mxu0  ;;  %562 = vst [vmem:[%s1260_s14 + $0xb8] sm:$0xff] %v1316_v22  ;;  %v1323_v29 = vpop.f32.mrb[7].mxu1  ;;  %v741_v37 = vmul.f32 %v1077_v21, %v1003_v10  ;;  %v809_v46 = vmul.f32 %v1076_v9, %v740_v23  ;;  %v1009_v34 = vsel %vm651_vm15, 1.0, %v1159_v38 }
 0x105   : > { %v769_v30 = vadd.f32 %v768_v20, %v738_v19  ;;  %v807_v31 = vmul.f32 %v738_v19, %v428_v12  ;;  %v837_v32 = vadd.f32 %v836_v18, %v806_v17  ;;  %544 = vst [vmem:[%s1260_s14 + $0x28] sm:$0xff] %v431_v24  ;;  %v739_v33 = vmul.f32 %v1001_v13, %v431_v24 }
 0x106   : > { %560 = vst [vmem:[%s1260_s14 + $0xa8] sm:$0xff] %v1323_v29  ;;  %v810_v61 = vmul.f32 %v1077_v21, %v741_v37  ;;  %v590_v12 = vadd.s32 144, %v1239_v25  ;;  %v622_v13 = vadd.s32 %v1242_v26, %v588_v59  ;;  %v1010_v19 = vsel %vm652_vm12, 1.0, %v1159_v38 }
 0x107   : > { %v838_v36 = vadd.f32 %v837_v32, %v807_v31  ;;  %v770_v39 = vadd.f32 %v769_v30, %v739_v33  ;;  %v808_v40 = vmul.f32 %v739_v33, %v431_v24  ;;  %v1008_v20 = vsel %vm650_vm13, 1.0, %v1159_v38 }
 0x108   : > { %v591_v21 = vadd.s32 152, %v1239_v25  ;;  %v1011_v31 = vsel %vm653_vm14, 1.0, %v1159_v38  ;;  %v624_v35 = vadd.s32 %v1242_v26, %v590_v12  ;;  %vm654_vm0 = vcmp.lt.s32.totalorder %v622_v13, 512 }
 0x109   : > { %v771_v47 = vadd.f32 %v770_v39, %v740_v23  ;;  %v839_v48 = vadd.f32 %v838_v36, %v808_v40  ;;  %v1080_v49 = vpop.f32.mrb[8].mxu0  ;;  %v1338_v52 = vpop.f32.mrb[8].mxu1  ;;  %v623_v23 = vadd.s32 %v1242_v26, %v589_v5  ;;  %v592_v36 = vadd.s32 160, %v1239_v25 }
 0x10a   : > { %549 = vst [vmem:[%s1260_s14 + $0x50] sm:$0xff] %v1080_v49  ;;  %v444_v54 = vpop.f32.mrb[9].mxu0  ;;  %565 = vst [vmem:[%s1260_s14 + $0xd0] sm:$0xff] %v1338_v52  ;;  %v1348_v60 = vpop.f32.mrb[9].mxu1  ;;  %v744_v3 = vmul.f32 %v1080_v49, %v1006_v41  ;;  %vm656_vm2 = vcmp.lt.s32.totalorder %v624_v35, 512  ;;  %v1012_v59 = vsel %vm654_vm0, 1.0, %v1159_v38 }
 0x10b   : > { %v840_v62 = vadd.f32 %v839_v48, %v809_v46  ;;  %547 = vst [vmem:[%s1260_s14 + $0x40] sm:$0xff] %v444_v54  ;;  %v742_v63 = vmul.f32 %v1004_v42, %v444_v54  ;;  %v772_v0 = vadd.f32 %v771_v47, %v741_v37  ;;  %v1081_v1 = vpop.f32.mrb[10].mxu0  ;;  %563 = vst [vmem:[%s1260_s14 + $0xc0] sm:$0xff] %v1348_v60  ;;  %v1353_v2 = vpop.f32.mrb[10].mxu1  ;;  %vm655_vm1 = vcmp.lt.s32.totalorder %v623_v23, 512 }
 0x10c   : > { %550 = vst [vmem:[%s1260_s14 + $0x58] sm:$0xff] %v1081_v1  ;;  %v447_v4 = vpop.f32.mrb[11].mxu0  ;;  %566 = vst [vmem:[%s1260_s14 + $0xd8] sm:$0xff] %v1353_v2  ;;  %v1359_v6 = vpop.f32.mrb[11].mxu1  ;;  %v745_v15 = vmul.f32 %v1081_v1, %v1007_v51  ;;  %v813_v24 = vmul.f32 %v1080_v49, %v744_v3  ;;  %v625_v48 = vadd.s32 %v1242_v26, %v591_v21  ;;  %v593_v49 = vadd.s32 168, %v1239_v25 }
 0x10d   : > { %v773_v7 = vadd.f32 %v772_v0, %v742_v63  ;;  %v811_v8 = vmul.f32 %v742_v63, %v444_v54  ;;  %v841_v9 = vadd.f32 %v840_v62, %v810_v61  ;;  %548 = vst [vmem:[%s1260_s14 + $0x48] sm:$0xff] %v447_v4  ;;  %v743_v10 = vmul.f32 %v1005_v55, %v447_v4 }
 0x10e   : > { %564 = vst [vmem:[%s1260_s14 + $0xc8] sm:$0xff] %v1359_v6  ;;  %v814_v39 = vmul.f32 %v1081_v1, %v745_v15  ;;  %v594_v61 = vadd.s32 176, %v1239_v25  ;;  %v626_v62 = vadd.s32 %v1242_v26, %v592_v36  ;;  %vm657_vm3 = vcmp.lt.s32.totalorder %v625_v48, 512 }
 0x10f   : > { %v842_v14 = vadd.f32 %v841_v9, %v811_v8  ;;  %v774_v17 = vadd.f32 %v773_v7, %v743_v10  ;;  %v812_v18 = vmul.f32 %v743_v10, %v447_v4  ;;  %v1013_v4 = vsel %vm655_vm1, 1.0, %v1159_v38 }
 0x110   : > { %v595_v5 = vadd.s32 184, %v1239_v25  ;;  %v627_v7 = vadd.s32 %v1242_v26, %v593_v49  ;;  %v750_v12 = vmul.f32 %v1012_v59, %v1275_v50  ;;  %v1014_v13 = vsel %vm656_vm2, 1.0, %v1159_v38 }
 0x111   : > { %v775_v27 = vadd.f32 %v774_v17, %v744_v3  ;;  %v843_v28 = vadd.f32 %v842_v14, %v812_v18  ;;  %v1084_v30 = vpop.f32.mrb[12].mxu0  ;;  %v1374_v32 = vpop.f32.mrb[12].mxu1  ;;  %v628_v14 = vadd.s32 %v1242_v26, %v594_v61  ;;  %vm658_vm4 = vcmp.lt.s32.totalorder %v626_v62, 512 }
 0x112   : > { %553 = vst [vmem:[%s1260_s14 + $0x70] sm:$0xff] %v1084_v30  ;;  %v460_v33 = vpop.f32.mrb[13].mxu0  ;;  %569 = vst [vmem:[%s1260_s14 + $0xf0] sm:$0xff] %v1374_v32  ;;  %v1383_v37 = vpop.f32.mrb[13].mxu1  ;;  %v748_v46 = vmul.f32 %v1084_v30, %v1010_v19  ;;  %v1015_v21 = vsel %vm657_vm3, 1.0, %v1159_v38  ;;  %v629_v23 = vadd.s32 %v1242_v26, %v595_v5  ;;  %vm659_vm5 = vcmp.lt.s32.totalorder %v627_v7, 512 }
 0x113   : > { %v844_v40 = vadd.f32 %v843_v28, %v813_v24  ;;  %551 = vst [vmem:[%s1260_s14 + $0x60] sm:$0xff] %v460_v33  ;;  %v746_v41 = vmul.f32 %v1008_v20, %v460_v33  ;;  %v776_v42 = vadd.f32 %v775_v27, %v745_v15  ;;  %v1085_v43 = vpop.f32.mrb[14].mxu0  ;;  %567 = vst [vmem:[%s1260_s14 + $0xe0] sm:$0xff] %v1383_v37  ;;  %v1388_v45 = vpop.f32.mrb[14].mxu1  ;;  %v596_v15 = vadd.s32 192, %v1239_v25 }
 0x114   : > { %554 = vst [vmem:[%s1260_s14 + $0x78] sm:$0xff] %v1085_v43  ;;  %v463_v47 = vpop.f32.mrb[15].mxu0  ;;  %570 = vst [vmem:[%s1260_s14 + $0xf8] sm:$0xff] %v1388_v45  ;;  %v1395_v51 = vpop.f32.mrb[15].mxu1  ;;  %v749_v0 = vmul.f32 %v1085_v43, %v1011_v31  ;;  %v817_v8 = vmul.f32 %v1084_v30, %v748_v46  ;;  %v751_v20 = vmul.f32 %v1013_v4, %v1288_v57  ;;  %v597_v24 = vadd.s32 200, %v1239_v25 }
 0x115   : > { %v777_v54 = vadd.f32 %v776_v42, %v746_v41  ;;  %v815_v55 = vmul.f32 %v746_v41, %v460_v33  ;;  %v845_v56 = vadd.f32 %v844_v40, %v814_v39  ;;  %552 = vst [vmem:[%s1260_s14 + $0x68] sm:$0xff] %v463_v47  ;;  %v747_v58 = vmul.f32 %v1009_v34, %v463_v47 }
 0x116   : > { %568 = vst [vmem:[%s1260_s14 + $0xe8] sm:$0xff] %v1395_v51  ;;  %v818_v17 = vmul.f32 %v1085_v43, %v749_v0  ;;  %v752_v27 = vmul.f32 %v1266_v44, %v1014_v13  ;;  %v819_v30 = vmul.f32 %v750_v12, %v1275_v50  ;;  %vm660_vm6 = vcmp.lt.s32.totalorder %v628_v14, 512 }
 0x117   : > { %v846_v63 = vadd.f32 %v845_v56, %v815_v55  ;;  %v778_v1 = vadd.f32 %v777_v54, %v747_v58  ;;  %v816_v3 = vmul.f32 %v747_v58, %v463_v47  ;;  %v1016_v33 = vsel %vm658_vm4, 1.0, %v1159_v38 }
 0x118   : > { %v598_v34 = vadd.s32 208, %v1239_v25  ;;  %v630_v35 = vadd.s32 %v1242_v26, %v596_v15  ;;  %v753_v39 = vmul.f32 %v1280_v53, %v1015_v21  ;;  %v820_v41 = vmul.f32 %v751_v20, %v1288_v57 }
 0x119   : > { %v779_v9 = vadd.f32 %v778_v1, %v748_v46  ;;  %v847_v10 = vadd.f32 %v846_v63, %v816_v3  ;;  %vm661_vm7 = vcmp.lt.s32.totalorder %v629_v23, 512  ;;  %v1017_v42 = vsel %vm659_vm5, 1.0, %v1159_v38 }
 0x11a   : > { %v599_v43 = vadd.s32 216, %v1239_v25  ;;  %v631_v50 = vadd.s32 %v1242_v26, %v597_v24  ;;  %v821_v46 = vmul.f32 %v1266_v44, %v752_v27  ;;  %v754_v49 = vmul.f32 %v1016_v33, %v1311_v16 }
 0x11b   : > { %v848_v18 = vadd.f32 %v847_v10, %v817_v8  ;;  %v780_v19 = vadd.f32 %v779_v9, %v749_v0  ;;  %v1018_v54 = vsel %vm660_vm6, 1.0, %v1159_v38  ;;  %v632_v55 = vadd.s32 %v1242_v26, %v598_v34 }
 0x11c   : > { %vm662_vm8 = vcmp.lt.s32.totalorder %v630_v35, 512  ;;  %v600_v57 = vadd.s32 224, %v1239_v25  ;;  %v822_v56 = vmul.f32 %v1280_v53, %v753_v39  ;;  %v755_v61 = vmul.f32 %v1017_v42, %v1323_v29 }
 0x11d   : > { %v781_v28 = vadd.f32 %v780_v19, %v750_v12  ;;  %v849_v31 = vadd.f32 %v848_v18, %v818_v17  ;;  %v1019_v44 = vsel %vm661_vm7, 1.0, %v1159_v38  ;;  %v633_v62 = vadd.s32 %v1242_v26, %v599_v43 }
 0x11e   : > { %vm663_vm9 = vcmp.lt.s32.totalorder %v631_v50, 512  ;;  %v601_v63 = vadd.s32 232, %v1239_v25  ;;  %v756_v0 = vmul.f32 %v1302_v11, %v1018_v54  ;;  %v823_v3 = vmul.f32 %v754_v49, %v1311_v16 }
 0x11f   : > { %v850_v36 = vadd.f32 %v849_v31, %v819_v30  ;;  %v782_v40 = vadd.f32 %v781_v28, %v751_v20  ;;  %vm664_vm10 = vcmp.lt.s32.totalorder %v632_v55, 512  ;;  %v1020_v53 = vsel %vm662_vm8, 1.0, %v1159_v38 }
 0x120   : > { %v602_v5 = vadd.s32 240, %v1239_v25  ;;  %v634_v7 = vadd.s32 %v1242_v26, %v600_v57  ;;  %v757_v9 = vmul.f32 %v1316_v22, %v1019_v44  ;;  %v824_v12 = vmul.f32 %v755_v61, %v1323_v29 }
 0x121   : > { %v783_v47 = vadd.f32 %v782_v40, %v752_v27  ;;  %v851_v48 = vadd.f32 %v850_v36, %v820_v41  ;;  %vm665_vm11 = vcmp.lt.s32.totalorder %v633_v62, 512  ;;  %v1021_v13 = vsel %vm663_vm9, 1.0, %v1159_v38 }
 0x122   : > { %v603_v14 = vadd.s32 248, %v1239_v25  ;;  %v635_v16 = vadd.s32 %v1242_v26, %v601_v63  ;;  %v825_v15 = vmul.f32 %v1302_v11, %v756_v0  ;;  %v758_v19 = vmul.f32 %v1020_v53, %v1348_v60 }
 0x123   : > { %v852_v58 = vadd.f32 %v851_v48, %v821_v46  ;;  %v784_v59 = vadd.f32 %v783_v47, %v753_v39  ;;  %v1022_v20 = vsel %vm664_vm10, 1.0, %v1159_v38  ;;  %v636_v21 = vadd.s32 %v1242_v26, %v602_v5 }
 0x124   : > { %vm666_vm12 = vcmp.lt.s32.totalorder %v634_v7, 512  ;;  %v826_v29 = vmul.f32 %v1316_v22, %v757_v9  ;;  %v759_v25 = vmul.f32 %v1021_v13, %v1359_v6  ;;  %v1023_v27 = vsel %vm665_vm11, 1.0, %v1159_v38 }
 0x125   : > { %v785_v1 = vadd.f32 %v784_v59, %v754_v49  ;;  %v853_v4 = vadd.f32 %v852_v58, %v822_v56  ;;  %v637_v11 = vadd.s32 %v1242_v26, %v603_v14  ;;  %vm667_vm13 = vcmp.lt.s32.totalorder %v635_v16, 512 }
 0x126   : > { %v760_v28 = vmul.f32 %v1338_v52, %v1022_v20  ;;  %v827_v31 = vmul.f32 %v758_v19, %v1348_v60  ;;  %vm668_vm14 = vcmp.lt.s32.totalorder %v636_v21, 512  ;;  %v1024_v34 = vsel %vm666_vm12, 1.0, %v1159_v38 }
 0x127   : > { %v854_v8 = vadd.f32 %v853_v4, %v823_v3  ;;  %v786_v10 = vadd.f32 %v785_v1, %v755_v61  ;;  %v761_v22 = vmul.f32 %v1353_v2, %v1023_v27  ;;  %v828_v39 = vmul.f32 %v759_v25, %v1359_v6 }
 0x128   : > { %vm669_vm15 = vcmp.lt.s32.totalorder %v637_v11, 512  ;;  %v1025_v40 = vsel %vm667_vm13, 1.0, %v1159_v38  ;;  %v829_v26 = vmul.f32 %v1338_v52, %v760_v28  ;;  %v762_v43 = vmul.f32 %v1024_v34, %v1383_v37 }
 0x129   : > { %v787_v17 = vadd.f32 %v786_v10, %v756_v0  ;;  %v855_v18 = vadd.f32 %v854_v8, %v824_v12  ;;  %v1026_v60 = vsel %vm668_vm14, 1.0, %v1159_v38  ;;  %v830_v50 = vmul.f32 %v1353_v2, %v761_v22 }
 0x12a   : > { %v763_v48 = vmul.f32 %v1025_v40, %v1395_v51  ;;  %v1027_v6 = vsel %vm669_vm15, 1.0, %v1159_v38  ;;  %v764_v49 = vmul.f32 %v1374_v32, %v1026_v60  ;;  %v831_v52 = vmul.f32 %v762_v43, %v1383_v37 }
 0x12b   : > { %v856_v23 = vadd.f32 %v855_v18, %v825_v15  ;;  %v788_v24 = vadd.f32 %v787_v17, %v757_v9  ;;  %v765_v56 = vmul.f32 %v1388_v45, %v1027_v6 }
 0x12c   : > { %v832_v2 = vmul.f32 %v763_v48, %v1395_v51  ;;  %v833_v59 = vmul.f32 %v1374_v32, %v764_v49 }
 0x12d   : > { %v789_v30 = vadd.f32 %v788_v24, %v758_v19  ;;  %v857_v33 = vadd.f32 %v856_v23, %v826_v29  ;;  %v834_v62 = vmul.f32 %v1388_v45, %v765_v56 }
 0x12f   : > { %v858_v35 = vadd.f32 %v857_v33, %v827_v31  ;;  %v790_v36 = vadd.f32 %v789_v30, %v759_v25 }
 0x131   : > { %v791_v41 = vadd.f32 %v790_v36, %v760_v28  ;;  %v859_v42 = vadd.f32 %v858_v35, %v828_v39 }
 0x133   : > { %v860_v46 = vadd.f32 %v859_v42, %v829_v26  ;;  %v792_v47 = vadd.f32 %v791_v41, %v761_v22 }
 0x135   : > { %v793_v54 = vadd.f32 %v792_v47, %v762_v43  ;;  %v861_v55 = vadd.f32 %v860_v46, %v830_v50 }
 0x137   : > { %v862_v57 = vadd.f32 %v861_v55, %v831_v52  ;;  %v794_v58 = vadd.f32 %v793_v54, %v763_v48 }
 0x139   : > { %v795_v61 = vadd.f32 %v794_v58, %v764_v49  ;;  %v863_v44 = vadd.f32 %v862_v57, %v832_v2 }
 0x13b   : > { %v796_v38 = vadd.f32 %v795_v61, %v765_v56  ;;  %v864_v63 = vadd.f32 %v863_v44, %v833_v59 }
 0x13d   : > { %v797_v0 = vrot.slane %v796_v38, 4  ;;  %v865_v1 = vadd.f32 %v864_v63, %v834_v62 }
 0x13f   : > { %v798_v37 = vadd.f32 %v797_v0, %v796_v38  ;;  %v866_v3 = vrot.slane %v865_v1, 4 }
 0x141   : > { %v799_v4 = vrot.slane %v798_v37, 2  ;;  %v867_v53 = vadd.f32 %v866_v3, %v865_v1 }
 0x143   : > { %v800_v5 = vadd.f32 %v799_v4, %v798_v37  ;;  %v868_v7 = vrot.slane %v867_v53, 2 }
 0x145   : > { %v801_v51 = vrot.slane %v800_v5, 1  ;;  %v869_v8 = vadd.f32 %v868_v7, %v867_v53 }
 0x147   : > { %v802_v32 = vadd.f32 %v801_v51, %v800_v5  ;;  %v870_v45 = vrot.slane %v869_v8, 1 }
 0x149   : > { %v871_v9 = vadd.f32 %v870_v45, %v869_v8  ;;  %872 = vst [vmem:[%s184_s18] sm:$0x1] %v802_v32 }
 0x14b   : > { %873 = vst [vmem:[%s184_s18 + $0x1] sm:$0x1] %v871_v9 }
 0x14c PF: > { %s14_s12 = sadd.s32 1, %s1157_s12  }
 0x14d   : > { %p11_p5 = scmp.ge.s32.totalorder %s14_s12, 4  }
 0x14f   :  { %13 = sbr.rel (!%p11_p5) target bundleno = 1 (0x1), region = 70 }

// kernel: bottleneck_forward.9
= control target key start
LH: loop header
LB: loop body
LE: loop exit
PB: predicated region body
PF: predicated region fallthrough
CT: control target
= control target key end

     0   :  { %v54_v15 = vlaneseq  ;;  %s720_s4 = inlined_call_operand.vmem [shape: bf16[128,128], index: 4, kind: input, shape index: {}]   ;;  %s721_s1 = inlined_call_operand.vmem [shape: f32[2,128], index: 1, kind: input, shape index: {}]   ;;  %s722_s2 = inlined_call_operand.vmem [shape: f32[1,128], index: 2, kind: input, shape index: {}]   ;;  %s723_s0 = inlined_call_operand.vmem [shape: f32[128,128], index: 0, kind: input, shape index: {}]   ;;  %s724_s3 = inlined_call_operand.vmem [shape: f32[1,128], index: 3, kind: input, shape index: {}]   ;;  %s725_s5 = inlined_call_operand.vmem [shape: f32[128,128], index: 5, kind: output, shape index: {0}]   ;;  %s726_s6 = inlined_call_operand.vmem [shape: f32[1,2,128], index: 6, kind: output, shape index: {1}]  }
   0x1   :  { %v537_v0 = vld [vmem:[%s720_s4] sm:$0xff]   ;;  %v538_v1 = vld [vmem:[%s720_s4 + $0x8] sm:$0xff]   ;;  %v539_v2 = vld [vmem:[%s720_s4 + $0x10] sm:$0xff]  }
   0x2   :  { %489 = vmatprep.subr.bf16.mxu0 %v537_v0  ;;  %521 = vmatprep.subr.bf16.mxu1 %v537_v0  ;;  %v540_v3 = vld [vmem:[%s720_s4 + $0x18] sm:$0xff]   ;;  %v23_v4 = vld [vmem:[%s721_s1] sm:$0x1]  ;;  %v25_v5 = vld [vmem:[%s721_s1 + $0x1] sm:$0x1]  ;;  %v55_v17 = vshrl.u32 %v54_v15, 7 }
   0x3   :  { %490 = vmatpush3.bf16.msra.mxu0 %v537_v0  ;;  %529 = vmatpush3.bf16.msra.mxu1 %v537_v0  ;;  %v24_v6 = vmul.f32 0.0078125, %v23_v4  ;;  %v26_v7 = vmul.f32 0.0078125, %v25_v5  ;;  %v541_v9 = vld [vmem:[%s720_s4 + $0x20] sm:$0xff]   ;;  %v542_v12 = vld [vmem:[%s720_s4 + $0x28] sm:$0xff]   ;;  %v543_v14 = vld [vmem:[%s720_s4 + $0x30] sm:$0xff]  }
   0x4   :  { %491 = vmatprep.subr.bf16.mxu0 %v538_v1  ;;  %522 = vmatprep.subr.bf16.mxu1 %v538_v1  ;;  %v544_v16 = vld [vmem:[%s720_s4 + $0x38] sm:$0xff]   ;;  %v30_v18 = vld [vmem:[%s722_s2] sm:$0x1]  ;;  %v56_v19 = vsub.s32 0, %v55_v17  ;;  %v38_v24 = vld [vmem:[%s723_s0 + $0x8] sm:$0xff] }
   0x5   :  { %v27_v8 = vmul.f32 %v24_v6, %v24_v6  ;;  %v34_v22 = vld [vmem:[%s724_s3] sm:$0x1]  ;;  %v39_v25 = vld [vmem:[%s723_s0 + $0x10] sm:$0xff]  ;;  %v40_v26 = vld [vmem:[%s723_s0 + $0x18] sm:$0xff] }
   0x6   :  { %v37_v23 = vld [vmem:[%s723_s0] sm:$0xff]  ;;  %v42_v30 = vld [vmem:[%s723_s0 + $0x28] sm:$0xff]  ;;  %v43_v31 = vld [vmem:[%s723_s0 + $0x30] sm:$0xff] }
   0x7   :  { %492 = vmatpush3.bf16.msra.mxu0 %v538_v1  ;;  %530 = vmatpush3.bf16.msra.mxu1 %v538_v1  ;;  %v28_v10 = vsub.f32 %v26_v7, %v27_v8  ;;  %v41_v27 = vld [vmem:[%s723_s0 + $0x20] sm:$0xff]  ;;  %v44_v32 = vld [vmem:[%s723_s0 + $0x38] sm:$0xff]  ;;  %v46_v34 = vld [vmem:[%s723_s0 + $0x48] sm:$0xff] }
   0x8   :  { %493 = vmatprep.subr.bf16.mxu0 %v539_v2  ;;  %523 = vmatprep.subr.bf16.mxu1 %v539_v2  ;;  %v45_v33 = vld [vmem:[%s723_s0 + $0x40] sm:$0xff]  ;;  %v47_v35 = vld [vmem:[%s723_s0 + $0x50] sm:$0xff]  ;;  %v48_v40 = vld [vmem:[%s723_s0 + $0x58] sm:$0xff] }
   0x9   :  { %v29_v11 = vmax.f32 %v28_v10, 0.0  ;;  %v49_v41 = vld [vmem:[%s723_s0 + $0x60] sm:$0xff]  ;;  %v50_v42 = vld [vmem:[%s723_s0 + $0x68] sm:$0xff]  ;;  %v51_v10 = vld [vmem:[%s723_s0 + $0x70] sm:$0xff] }
   0xb   :  { %494 = vmatpush3.bf16.msra.mxu0 %v539_v2  ;;  %531 = vmatpush3.bf16.msra.mxu1 %v539_v2  ;;  %v31_v13 = vadd.f32 1e-05, %v29_v11  ;;  %v52_v11 = vld [vmem:[%s723_s0 + $0x78] sm:$0xff] }
   0xc   :  { %495 = vmatprep.subr.bf16.mxu0 %v540_v3  ;;  %524 = vmatprep.subr.bf16.mxu1 %v540_v3 }
   0xd   :  { %545 = vrsqrt.f32 %v31_v13 }
   0xf   :  { %496 = vmatpush3.bf16.msra.mxu0 %v540_v3  ;;  %532 = vmatpush3.bf16.msra.mxu1 %v540_v3 }
  0x10   :  { %497 = vmatprep.subr.bf16.mxu0 %v541_v9  ;;  %525 = vmatprep.subr.bf16.mxu1 %v541_v9 }
  0x13   :  { %498 = vmatpush3.bf16.msra.mxu0 %v541_v9  ;;  %533 = vmatpush3.bf16.msra.mxu1 %v541_v9 }
  0x14   :  { %499 = vmatprep.subr.bf16.mxu0 %v542_v12  ;;  %526 = vmatprep.subr.bf16.mxu1 %v542_v12 }
  0x17   :  { %500 = vmatpush3.bf16.msra.mxu0 %v542_v12  ;;  %534 = vmatpush3.bf16.msra.mxu1 %v542_v12  ;;  %v546_v20 = vpop.eup %545 }
  0x18   :  { %501 = vmatprep.subr.bf16.mxu0 %v543_v14  ;;  %527 = vmatprep.subr.bf16.mxu1 %v543_v14  ;;  %v33_v21 = vmul.f32 %v546_v20, %v30_v18 }
  0x1a   :  { %v35_v28 = vmul.f32 %v33_v21, %v24_v6  ;;  %v57_v29 = vrot.slane %v33_v21, %v56_v19 }
  0x1b   :  { %502 = vmatpush3.bf16.msra.mxu0 %v543_v14  ;;  %535 = vmatpush3.bf16.msra.mxu1 %v543_v14 }
  0x1c   :  { %503 = vmatprep.subr.bf16.mxu0 %v544_v16  ;;  %528 = vmatprep.subr.bf16.mxu1 %v544_v16  ;;  %v36_v36 = vsub.f32 %v34_v22, %v35_v28  ;;  %v59_v37 = vmul.f32 %v57_v29, %v37_v23  ;;  %v60_v38 = vmul.f32 %v57_v29, %v38_v24 }
  0x1d   :  { %v61_v39 = vmul.f32 %v57_v29, %v39_v25  ;;  %v62_v43 = vmul.f32 %v57_v29, %v40_v26  ;;  %v63_v44 = vmul.f32 %v57_v29, %v41_v27  ;;  %v64_v45 = vmul.f32 %v57_v29, %v42_v30 }
  0x1e   :  { %v65_v46 = vmul.f32 %v57_v29, %v43_v31  ;;  %v79_v47 = vrot.slane %v36_v36, %v56_v19  ;;  %v66_v48 = vmul.f32 %v57_v29, %v44_v32  ;;  %v67_v49 = vmul.f32 %v57_v29, %v45_v33 }
  0x1f   :  { %504 = vmatpush3.bf16.msra.mxu0 %v544_v16  ;;  %536 = vmatpush3.bf16.msra.mxu1 %v544_v16  ;;  %v68_v50 = vmul.f32 %v57_v29, %v46_v34  ;;  %v69_v51 = vmul.f32 %v57_v29, %v47_v35  ;;  %v70_v52 = vmul.f32 %v57_v29, %v48_v40 }
  0x20   :  { %v71_v53 = vmul.f32 %v57_v29, %v49_v41  ;;  %v72_v54 = vmul.f32 %v57_v29, %v50_v42  ;;  %v81_v55 = vadd.f32 %v79_v47, %v59_v37  ;;  %v82_v56 = vadd.f32 %v79_v47, %v60_v38 }
  0x21   :  { %v83_v57 = vadd.f32 %v79_v47, %v61_v39  ;;  %v84_v58 = vadd.f32 %v79_v47, %v62_v43  ;;  %v85_v59 = vadd.f32 %v79_v47, %v63_v44  ;;  %v86_v60 = vadd.f32 %v79_v47, %v64_v45 }
  0x22   :  { %v87_v61 = vadd.f32 %v79_v47, %v65_v46  ;;  %v88_v62 = vadd.f32 %v79_v47, %v66_v48  ;;  %v97_v63 = vmax.f32 %v81_v55, 0.0  ;;  %v98_v0 = vmax.f32 %v82_v56, 0.0 }
  0x23   :  { %v99_v1 = vmax.f32 %v83_v57, 0.0  ;;  %v100_v2 = vmax.f32 %v84_v58, 0.0  ;;  %v101_v3 = vmax.f32 %v85_v59, 0.0  ;;  %v102_v4 = vmax.f32 %v86_v60, 0.0 }
  0x24   :  { %v103_v5 = vmax.f32 %v87_v61, 0.0  ;;  %v113_v6 = vpack.c.bf16 %v98_v0, %v97_v63  ;;  %v89_v8 = vadd.f32 %v79_v47, %v67_v49  ;;  %v90_v9 = vadd.f32 %v79_v47, %v68_v50 }
  0x25   :  { %v114_v7 = vpack.c.bf16 %v100_v2, %v99_v1  ;;  %v115_v12 = vpack.c.bf16 %v102_v4, %v101_v3  ;;  %v104_v13 = vmax.f32 %v88_v62, 0.0  ;;  %v91_v14 = vadd.f32 %v79_v47, %v69_v51 }
  0x26   :  { %v92_v15 = vadd.f32 %v79_v47, %v70_v52  ;;  %505 = vmatprep.mubr.bf16.mxu0 %v113_v6  ;;  %v105_v16 = vmax.f32 %v89_v8, 0.0  ;;  %v106_v17 = vmax.f32 %v90_v9, 0.0  ;;  %v93_v18 = vadd.f32 %v79_v47, %v71_v53 }
  0x27   :  { %v94_v19 = vadd.f32 %v79_v47, %v72_v54  ;;  %506 = vmatmul.mubr.bf16.vlgmr.msra.gmra.mrb[0].mxu0 %v114_v7  ;;  %v107_v20 = vmax.f32 %v91_v14, 0.0  ;;  %v73_v22 = vmul.f32 %v57_v29, %v51_v10  ;;  %v74_v23 = vmul.f32 %v57_v29, %v52_v11 }
  0x28   :  { %v108_v21 = vmax.f32 %v92_v15, 0.0  ;;  %509 = vmatprep.mubr.bf16.mxu0 %v115_v12  ;;  %v117_v24 = vpack.c.bf16 %v106_v17, %v105_v16  ;;  %v109_v25 = vmax.f32 %v93_v18, 0.0  ;;  %v116_v32 = vpack.c.bf16 %v104_v13, %v103_v5 }
  0x29   :  { %v110_v26 = vmax.f32 %v94_v19, 0.0  ;;  %v95_v28 = vadd.f32 %v79_v47, %v73_v22  ;;  %v96_v30 = vadd.f32 %v79_v47, %v74_v23 }
  0x2a   :  { %v118_v27 = vpack.c.bf16 %v108_v21, %v107_v20  ;;  %513 = vmatprep.mubr.bf16.mxu1 %v117_v24 }
  0x2b   :  { %v119_v31 = vpack.c.bf16 %v110_v26, %v109_v25  ;;  %v111_v33 = vmax.f32 %v95_v28, 0.0  ;;  %v112_v34 = vmax.f32 %v96_v30, 0.0 }
  0x2c   :  { %514 = vmatmul.mubr.bf16.vlgmr.msra.gmra.mrb[0].mxu1 %v118_v27 }
  0x2d   :  { %517 = vmatprep.mubr.bf16.mxu1 %v119_v31  ;;  %v120_v35 = vpack.c.bf16 %v112_v34, %v111_v33 }
  0x2f   :  { %510 = vmatmul.mubr.bf16.gmra.mrb[4].mxu0 %v116_v32 }
  0x34   :  { %518 = vmatmul.mubr.bf16.gmra.mrb[4].mxu1 %v120_v35 }
  0xfa   :  { %v507_v36 = vpop.f32.mrb[0].mxu0 }
  0xfb   :  { %284 = vst [vmem:[%s725_s5 + $0x10] sm:$0xff] %v507_v36  ;;  %v219_v29 = vpop.f32.mrb[1].mxu0  ;;  %v420_v44 = vmul.f32 %v507_v36, %v507_v36 }
  0xfc   :  { %282 = vst [vmem:[%s725_s5] sm:$0xff] %v219_v29  ;;  %v508_v37 = vpop.f32.mrb[2].mxu0  ;;  %v418_v39 = vmul.f32 %v219_v29, %v219_v29 }
  0xfd   :  { %285 = vst [vmem:[%s725_s5 + $0x18] sm:$0xff] %v508_v37  ;;  %v222_v38 = vpop.f32.mrb[3].mxu0  ;;  %v421_v49 = vmul.f32 %v508_v37, %v508_v37 }
  0xfe   :  { %283 = vst [vmem:[%s725_s5 + $0x8] sm:$0xff] %v222_v38  ;;  %v397_v40 = vadd.f32 %v222_v38, %v219_v29  ;;  %v419_v41 = vmul.f32 %v222_v38, %v222_v38 }
  0xff   :  { %v515_v42 = vpop.f32.mrb[0].mxu1 }
 0x100   :  { %292 = vst [vmem:[%s725_s5 + $0x50] sm:$0xff] %v515_v42  ;;  %v251_v43 = vpop.f32.mrb[1].mxu1  ;;  %v398_v45 = vadd.f32 %v507_v36, %v397_v40  ;;  %v434_v46 = vadd.f32 %v419_v41, %v418_v39  ;;  %v428_v14 = vmul.f32 %v515_v42, %v515_v42 }
 0x101   :  { %290 = vst [vmem:[%s725_s5 + $0x40] sm:$0xff] %v251_v43  ;;  %v516_v47 = vpop.f32.mrb[2].mxu1  ;;  %v426_v8 = vmul.f32 %v251_v43, %v251_v43 }
 0x102   :  { %293 = vst [vmem:[%s725_s5 + $0x58] sm:$0xff] %v516_v47  ;;  %v254_v48 = vpop.f32.mrb[3].mxu1  ;;  %v435_v50 = vadd.f32 %v434_v46, %v420_v44  ;;  %v511_v51 = vpop.f32.mrb[4].mxu0  ;;  %v399_v52 = vadd.f32 %v508_v37, %v398_v45  ;;  %v429_v17 = vmul.f32 %v516_v47, %v516_v47 }
 0x103   :  { %291 = vst [vmem:[%s725_s5 + $0x48] sm:$0xff] %v254_v48  ;;  %288 = vst [vmem:[%s725_s5 + $0x30] sm:$0xff] %v511_v51  ;;  %v235_v53 = vpop.f32.mrb[5].mxu0  ;;  %v424_v0 = vmul.f32 %v511_v51, %v511_v51  ;;  %v427_v13 = vmul.f32 %v254_v48, %v254_v48 }
 0x104   :  { %286 = vst [vmem:[%s725_s5 + $0x20] sm:$0xff] %v235_v53  ;;  %v400_v54 = vadd.f32 %v399_v52, %v235_v53  ;;  %v422_v55 = vmul.f32 %v235_v53, %v235_v53  ;;  %v436_v56 = vadd.f32 %v435_v50, %v421_v49  ;;  %v512_v57 = vpop.f32.mrb[6].mxu0 }
 0x105   :  { %289 = vst [vmem:[%s725_s5 + $0x38] sm:$0xff] %v512_v57  ;;  %v238_v58 = vpop.f32.mrb[7].mxu0  ;;  %v425_v5 = vmul.f32 %v512_v57, %v512_v57 }
 0x106   :  { %v437_v59 = vadd.f32 %v436_v56, %v422_v55  ;;  %287 = vst [vmem:[%s725_s5 + $0x28] sm:$0xff] %v238_v58  ;;  %v401_v60 = vadd.f32 %v400_v54, %v238_v58  ;;  %v423_v61 = vmul.f32 %v238_v58, %v238_v58 }
 0x107   :  { %v519_v62 = vpop.f32.mrb[4].mxu1 }
 0x108   :  { %296 = vst [vmem:[%s725_s5 + $0x70] sm:$0xff] %v519_v62  ;;  %v267_v63 = vpop.f32.mrb[5].mxu1  ;;  %v402_v1 = vadd.f32 %v511_v51, %v401_v60  ;;  %v438_v2 = vadd.f32 %v437_v59, %v423_v61  ;;  %v432_v26 = vmul.f32 %v519_v62, %v519_v62 }
 0x109   :  { %294 = vst [vmem:[%s725_s5 + $0x60] sm:$0xff] %v267_v63  ;;  %v520_v3 = vpop.f32.mrb[6].mxu1  ;;  %v430_v20 = vmul.f32 %v267_v63, %v267_v63 }
 0x10a   :  { %297 = vst [vmem:[%s725_s5 + $0x78] sm:$0xff] %v520_v3  ;;  %v270_v4 = vpop.f32.mrb[7].mxu1  ;;  %v439_v6 = vadd.f32 %v438_v2, %v424_v0  ;;  %v403_v7 = vadd.f32 %v512_v57, %v402_v1  ;;  %v433_v30 = vmul.f32 %v520_v3, %v520_v3 }
 0x10b   :  { %295 = vst [vmem:[%s725_s5 + $0x68] sm:$0xff] %v270_v4  ;;  %v431_v25 = vmul.f32 %v270_v4, %v270_v4 }
 0x10c   :  { %v404_v9 = vadd.f32 %v403_v7, %v251_v43  ;;  %v440_v10 = vadd.f32 %v439_v6, %v425_v5 }
 0x10e   :  { %v441_v11 = vadd.f32 %v440_v10, %v426_v8  ;;  %v405_v12 = vadd.f32 %v404_v9, %v254_v48 }
 0x110   :  { %v406_v15 = vadd.f32 %v515_v42, %v405_v12  ;;  %v442_v16 = vadd.f32 %v441_v11, %v427_v13 }
 0x112   :  { %v443_v18 = vadd.f32 %v442_v16, %v428_v14  ;;  %v407_v19 = vadd.f32 %v516_v47, %v406_v15 }
 0x114   :  { %v408_v21 = vadd.f32 %v407_v19, %v267_v63  ;;  %v444_v22 = vadd.f32 %v443_v18, %v429_v17 }
 0x116   :  { %v445_v23 = vadd.f32 %v444_v22, %v430_v20  ;;  %v409_v24 = vadd.f32 %v408_v21, %v270_v4 }
 0x118   :  { %v410_v27 = vadd.f32 %v519_v62, %v409_v24  ;;  %v446_v28 = vadd.f32 %v445_v23, %v431_v25 }
 0x11a   :  { %v411_v31 = vadd.f32 %v520_v3, %v410_v27  ;;  %v447_v32 = vadd.f32 %v446_v28, %v432_v26 }
 0x11c   :  { %v412_v33 = vrot.slane %v411_v31, 4  ;;  %v448_v34 = vadd.f32 %v447_v32, %v433_v30 }
 0x11e   :  { %v413_v35 = vadd.f32 %v412_v33, %v411_v31  ;;  %v449_v36 = vrot.slane %v448_v34, 4 }
 0x120   :  { %v414_v29 = vrot.slane %v413_v35, 2  ;;  %v450_v37 = vadd.f32 %v449_v36, %v448_v34 }
 0x122   :  { %v415_v38 = vadd.f32 %v414_v29, %v413_v35  ;;  %v451_v39 = vrot.slane %v450_v37, 2 }
 0x124   :  { %v416_v40 = vrot.slane %v415_v38, 1  ;;  %v452_v41 = vadd.f32 %v451_v39, %v450_v37 }
 0x126   :  { %v417_v42 = vadd.f32 %v416_v40, %v415_v38  ;;  %v453_v43 = vrot.slane %v452_v41, 1 }
 0x128   :  { %v454_v44 = vadd.f32 %v453_v43, %v452_v41  ;;  %455 = vst [vmem:[%s726_s6] sm:$0x1] %v417_v42 }
 0x12a   :  { %456 = vst [vmem:[%s726_s6 + $0x1] sm:$0x1] %v454_v44 }

// kernel: bottleneck_forward.8
= control target key start
LH: loop header
LB: loop body
LE: loop exit
PB: predicated region body
PF: predicated region fallthrough
CT: control target
= control target key end

     0   :  { %s3441_s15 = smov 0   ;;  %s3443_s16 = smov 0   ;;  %s3925_s0 = inlined_call_operand.vmem [shape: bf16[4,2,9,9,128], index: 0, kind: input, shape index: {}]   ;;  %s3926_s1 = inlined_call_operand.vmem [shape: bf16[9,128,128], index: 1, kind: input, shape index: {}]   ;;  %s3927_s2 = inlined_call_operand.vmem [shape: f32[1,128], index: 2, kind: input, shape index: {}]   ;;  %s3928_s3 = inlined_call_operand.vmem [shape: f32[2,64,128], index: 3, kind: output, shape index: {0}]   ;;  %s3929_s4 = inlined_call_operand.vmem [shape: f32[2,2,128], index: 4, kind: output, shape index: {1}]  }
   0x1   :  { %s3445_s17 = smov 0  }
   0x2 LB: > { %s2544_s18 = sadd.s32 4294967295, %s3414_s17   ;;  %s3458_s19 = sadd.s32 1, %s3414_s17   ;;  %s3414_s17 = sphi %s3445_s17, %s3934_s17   ;;  %s3410_s16 = sphi %s3443_s16, %s3933_s16   ;;  %s3406_s15 = sphi %s3441_s15, %s3932_s15  }
   0x3   : > { %s19_s20 = ssub.s32 %s3414_s17, %s3458_s19  ;;  %s22_s21 = sadd.s32 1, %s3410_s16 }
   0x4   : > { %p20_p0 = scmp.eq.s32.totalorder %s19_s20, 0  ;;  %p29_p1 = scmp.ne.s32.totalorder %s3410_s16, %s3406_s15 }
   0x5   : > { %p30_p2 = scmp.eq.s32.totalorder %s3414_s17, 0  ;;  %p2547_p4 = scmp.ge.s32.totalorder %s3414_s17, 2 }
   0x6   : > { %s3467_s22 = scalar_select %p20_p0, %s3410_s16, %s22_s21  }
   0x7   : > { %p31_p3 = por %p30_p2, %p29_p1  ;;  %155 = sbr.rel (%p2547_p4) target bundleno = 37 (0x25), region = 24 }
   0xe   : > { %158 = sbr.rel (!%p31_p3) target bundleno = 37 (0x25), region = 28  ;;  %s160_s23 = sand.u32 (%p31_p3), 1, %s3410_s16  }
   0xf   : > { %s3270_s24 = smul.u32 (%p31_p3), 72, %s3414_s17 }
  0x10   : > { %s3269_s25 = smul.u32 (%p31_p3), 288, %s160_s23 }
  0x11   : > { %s3475_s28 = scalar_lea.vmem (%p31_p3), %s3925_s0, %s3270_s24 }
  0x12   : > { %v181_v0 = vld [vmem:[%s3475_s28] sm:$0xff] (%p31_p3)   ;;  %v185_v1 = vld [vmem:[%s3475_s28 + $0x8] sm:$0xff] (%p31_p3)   ;;  %v189_v2 = vld [vmem:[%s3475_s28 + $0x10] sm:$0xff] (%p31_p3)   ;;  %s3480_s29 = scalar_lea.vmem (%p31_p3), [#allocation2], %s3269_s25 }
  0x13   : > { %182 = vst [vmem:[%s3480_s29] sm:$0xff] (%p31_p3), %v181_v0   ;;  %186 = vst [vmem:[%s3480_s29 + $0x8] sm:$0xff] (%p31_p3), %v185_v1   ;;  %v193_v3 = vld [vmem:[%s3475_s28 + $0x18] sm:$0xff] (%p31_p3)   ;;  %v197_v4 = vld [vmem:[%s3475_s28 + $0x20] sm:$0xff] (%p31_p3)  }
  0x14   : > { %190 = vst [vmem:[%s3480_s29 + $0x10] sm:$0xff] (%p31_p3), %v189_v2   ;;  %v201_v5 = vld [vmem:[%s3475_s28 + $0x28] sm:$0xff] (%p31_p3)   ;;  %194 = vst [vmem:[%s3480_s29 + $0x18] sm:$0xff] (%p31_p3), %v193_v3   ;;  %v205_v6 = vld [vmem:[%s3475_s28 + $0x30] sm:$0xff] (%p31_p3)  }
  0x15   : > { %198 = vst [vmem:[%s3480_s29 + $0x20] sm:$0xff] %v197_v4   ;;  %202 = vst [vmem:[%s3480_s29 + $0x28] sm:$0xff] %v201_v5   ;;  %v209_v7 = vld [vmem:[%s3475_s28 + $0x38] sm:$0xff]   ;;  %v213_v8 = vld [vmem:[%s3475_s28 + $0x40] sm:$0xff]  }
  0x16   : > { %206 = vst [vmem:[%s3480_s29 + $0x30] sm:$0xff] %v205_v6   ;;  %210 = vst [vmem:[%s3480_s29 + $0x38] sm:$0xff] %v209_v7   ;;  %v217_v9 = vld [vmem:[%s3475_s28 + $0x90] sm:$0xff]   ;;  %v221_v10 = vld [vmem:[%s3475_s28 + $0x98] sm:$0xff]  }
  0x17   : > { %214 = vst [vmem:[%s3480_s29 + $0x40] sm:$0xff] %v213_v8   ;;  %v225_v11 = vld [vmem:[%s3475_s28 + $0xa0] sm:$0xff]   ;;  %218 = vst [vmem:[%s3480_s29 + $0x48] sm:$0xff] %v217_v9   ;;  %v229_v12 = vld [vmem:[%s3475_s28 + $0xa8] sm:$0xff]  }
  0x18   : > { %222 = vst [vmem:[%s3480_s29 + $0x50] sm:$0xff] %v221_v10   ;;  %226 = vst [vmem:[%s3480_s29 + $0x58] sm:$0xff] %v225_v11   ;;  %v233_v13 = vld [vmem:[%s3475_s28 + $0xb0] sm:$0xff]   ;;  %v237_v14 = vld [vmem:[%s3475_s28 + $0xb8] sm:$0xff]  }
  0x19   : > { %230 = vst [vmem:[%s3480_s29 + $0x60] sm:$0xff] %v229_v12   ;;  %234 = vst [vmem:[%s3480_s29 + $0x68] sm:$0xff] %v233_v13   ;;  %v241_v15 = vld [vmem:[%s3475_s28 + $0xc0] sm:$0xff]   ;;  %v245_v16 = vld [vmem:[%s3475_s28 + $0xc8] sm:$0xff]  }
  0x1a   : > { %238 = vst [vmem:[%s3480_s29 + $0x70] sm:$0xff] %v237_v14   ;;  %v249_v17 = vld [vmem:[%s3475_s28 + $0xd0] sm:$0xff]   ;;  %242 = vst [vmem:[%s3480_s29 + $0x78] sm:$0xff] %v241_v15   ;;  %v253_v18 = vld [vmem:[%s3475_s28 + $0x120] sm:$0xff]  }
  0x1b   : > { %246 = vst [vmem:[%s3480_s29 + $0x80] sm:$0xff] %v245_v16   ;;  %250 = vst [vmem:[%s3480_s29 + $0x88] sm:$0xff] %v249_v17   ;;  %v257_v19 = vld [vmem:[%s3475_s28 + $0x128] sm:$0xff]   ;;  %v261_v20 = vld [vmem:[%s3475_s28 + $0x130] sm:$0xff]  }
  0x1c   : > { %254 = vst [vmem:[%s3480_s29 + $0x90] sm:$0xff] %v253_v18   ;;  %258 = vst [vmem:[%s3480_s29 + $0x98] sm:$0xff] %v257_v19   ;;  %v265_v21 = vld [vmem:[%s3475_s28 + $0x138] sm:$0xff]   ;;  %v269_v22 = vld [vmem:[%s3475_s28 + $0x140] sm:$0xff]  }
  0x1d   : > { %262 = vst [vmem:[%s3480_s29 + $0xa0] sm:$0xff] %v261_v20   ;;  %v273_v23 = vld [vmem:[%s3475_s28 + $0x148] sm:$0xff]   ;;  %266 = vst [vmem:[%s3480_s29 + $0xa8] sm:$0xff] %v265_v21   ;;  %v277_v24 = vld [vmem:[%s3475_s28 + $0x150] sm:$0xff]  }
  0x1e   : > { %270 = vst [vmem:[%s3480_s29 + $0xb0] sm:$0xff] %v269_v22   ;;  %274 = vst [vmem:[%s3480_s29 + $0xb8] sm:$0xff] %v273_v23   ;;  %v281_v25 = vld [vmem:[%s3475_s28 + $0x158] sm:$0xff]   ;;  %v285_v26 = vld [vmem:[%s3475_s28 + $0x160] sm:$0xff]  }
  0x1f   : > { %278 = vst [vmem:[%s3480_s29 + $0xc0] sm:$0xff] %v277_v24   ;;  %282 = vst [vmem:[%s3480_s29 + $0xc8] sm:$0xff] %v281_v25   ;;  %v289_v27 = vld [vmem:[%s3475_s28 + $0x1b0] sm:$0xff]   ;;  %v293_v28 = vld [vmem:[%s3475_s28 + $0x1b8] sm:$0xff]  }
  0x20   : > { %286 = vst [vmem:[%s3480_s29 + $0xd0] sm:$0xff] %v285_v26   ;;  %v297_v29 = vld [vmem:[%s3475_s28 + $0x1c0] sm:$0xff]   ;;  %290 = vst [vmem:[%s3480_s29 + $0xd8] sm:$0xff] %v289_v27   ;;  %v301_v30 = vld [vmem:[%s3475_s28 + $0x1c8] sm:$0xff]  }
  0x21   : > { %294 = vst [vmem:[%s3480_s29 + $0xe0] sm:$0xff] %v293_v28   ;;  %298 = vst [vmem:[%s3480_s29 + $0xe8] sm:$0xff] %v297_v29   ;;  %v305_v31 = vld [vmem:[%s3475_s28 + $0x1d0] sm:$0xff]   ;;  %v309_v32 = vld [vmem:[%s3475_s28 + $0x1d8] sm:$0xff]  }
  0x22   : > { %302 = vst [vmem:[%s3480_s29 + $0xf0] sm:$0xff] %v301_v30   ;;  %306 = vst [vmem:[%s3480_s29 + $0xf8] sm:$0xff] %v305_v31   ;;  %v313_v33 = vld [vmem:[%s3475_s28 + $0x1e0] sm:$0xff]   ;;  %v317_v34 = vld [vmem:[%s3475_s28 + $0x1e8] sm:$0xff]  }
  0x23   : > { %310 = vst [vmem:[%s3480_s29 + $0x100] sm:$0xff] %v309_v32   ;;  %v321_v35 = vld [vmem:[%s3475_s28 + $0x1f0] sm:$0xff]   ;;  %314 = vst [vmem:[%s3480_s29 + $0x108] sm:$0xff] %v313_v33  }
  0x24   : > { %318 = vst [vmem:[%s3480_s29 + $0x110] sm:$0xff] %v317_v34   ;;  %322 = vst [vmem:[%s3480_s29 + $0x118] sm:$0xff] %v321_v35  }
  0x25 PF: > { %p2549_p5 = scmp.ge.s32.totalorder %s3414_s17, 1  ;;  %p490_p6 = scmp.lt.s32.totalorder %s3414_s17, 3 }
  0x27   : > { %p491_p7 = pnand %p2549_p5, %p490_p6 }
  0x28   : > { %v3296_v36 = vld [vmem:[%s3926_s1 + $0x40] sm:$0xff] (!%p491_p7)   ;;  %v3298_v38 = vld [vmem:[%s3926_s1 + $0x48] sm:$0xff] (!%p491_p7)   ;;  %v3300_v40 = vld [vmem:[%s3926_s1 + $0x50] sm:$0xff] (!%p491_p7)   ;;  %s497_s21 = sand.u32 (!%p491_p7), 1, %s3406_s15   ;;  %vm876_vm0 = vsmask.f32 (!%p491_p7), 3328 }
  0x29   : > { %494 = sbr.rel (%p491_p7) target bundleno = 450 (0x1c2), region = 69  ;;  %v3297_v37 = vld [vmem:[%s3926_s1 + $0x100] sm:$0xff] (!%p491_p7)   ;;  %2973 = vmatprep.subr.bf16.mxu1 (!%p491_p7), %v3296_v36  ;;  %v3299_v39 = vld [vmem:[%s3926_s1 + $0x108] sm:$0xff] (!%p491_p7)   ;;  %v3301_v41 = vld [vmem:[%s3926_s1 + $0x110] sm:$0xff] (!%p491_p7)   ;;  %vm877_vm1 = vsmask.f32 (!%p491_p7), 7440 }
  0x2a   : > { %3069 = vmatprep.subr.bf16.mxu0 (!%p491_p7), %v3297_v37  ;;  %2974 = vmatpush3.bf16.msra.mxu1 (!%p491_p7), %v3296_v36  ;;  %v3302_v42 = vld [vmem:[%s3926_s1 + $0x58] sm:$0xff] (!%p491_p7)   ;;  %s3271_s27 = smul.u32 (!%p491_p7), 288, %s497_s21  ;;  %v3304_v44 = vld [vmem:[%s3926_s1 + $0x60] sm:$0xff] (!%p491_p7)   ;;  %v3306_v46 = vld [vmem:[%s3926_s1 + $0x68] sm:$0xff] (!%p491_p7)   ;;  %p526_p8 = scmp.lt.s32.totalorder (!%p491_p7), %s2544_s18, 1 }
  0x2b   : > { %3070 = vmatpush3.bf16.msra.mxu0 (!%p491_p7), %v3297_v37  ;;  %2975 = vmatprep.subr.bf16.mxu1 (!%p491_p7), %v3298_v38  ;;  %v3303_v43 = vld [vmem:[%s3926_s1 + $0x118] sm:$0xff] (!%p491_p7)   ;;  %v3305_v45 = vld [vmem:[%s3926_s1 + $0x120] sm:$0xff] (!%p491_p7)   ;;  %v3307_v48 = vld [vmem:[%s3926_s1 + $0x128] sm:$0xff] (!%p491_p7)  }
  0x2c   : > { %3071 = vmatprep.subr.bf16.mxu0 (!%p491_p7), %v3299_v39  ;;  %s3587_s7 = scalar_lea.vmem (!%p491_p7), [#allocation2], %s3271_s27  ;;  %v3308_v50 = vld [vmem:[%s3926_s1 + $0x70] sm:$0xff] (!%p491_p7)   ;;  %v3310_v52 = vld [vmem:[%s3926_s1 + $0x78] sm:$0xff] (!%p491_p7)   ;;  %v3313_v54 = vld [vmem:[%s3926_s1] sm:$0xff] (!%p491_p7)  }
  0x2d   : > { %v3312_v47 = vld [vmem:[%s3587_s7 + $0x48] ss:$8 sps:$4 sm:$0xff] (!%p491_p7)   ;;  %v3314_v49 = vld [vmem:[%s3587_s7 + $0xd8] ss:$8 sps:$4 sm:$0xff] (!%p491_p7)   ;;  %v2702_v6 = vld [vmem:[%s3587_s7 + $0x94] sm:$0x1] (!%p491_p7) }
  0x2e   : > { %2976 = vmatpush3.bf16.msra.mxu1 (!%p491_p7), %v3298_v38  ;;  %2989 = vmatprep.mubr.bf16.mxu1 (!%p491_p7), %v3312_v47  ;;  %v3309_v51 = vld [vmem:[%s3926_s1 + $0x130] sm:$0xff] (!%p491_p7)   ;;  %v3311_v53 = vld [vmem:[%s3926_s1 + $0x138] sm:$0xff] (!%p491_p7)   ;;  %v3315_v55 = vld [vmem:[%s3926_s1 + $0x140] sm:$0xff] (!%p491_p7)   ;;  %v1513_v12 = vshll.u32 (!%p491_p7), %v2702_v6, 16 }
  0x2f   : > { %3072 = vmatpush3.bf16.msra.mxu0 (!%p491_p7), %v3299_v39  ;;  %2977 = vmatprep.subr.bf16.mxu1 (!%p491_p7), %v3300_v40  ;;  %v3316_v56 = vld [vmem:[%s3587_s7 + $0x58] ss:$8 sps:$4 sm:$0xff] (!%p491_p7)   ;;  %v3317_v57 = vld [vmem:[%s3587_s7 + $0xe8] ss:$8 sps:$4 sm:$0xff] (!%p491_p7)   ;;  %v2704_v11 = vld [vmem:[%s3587_s7 + $0x9c] sm:$0x1] (!%p491_p7) }
  0x30   : > { %3073 = vmatprep.subr.bf16.mxu0 %v3301_v41  ;;  %3085 = vmatprep.mubr.bf16.mxu0 %v3314_v49  ;;  %v3318_v58 = vld [vmem:[%s3926_s1 + $0x8] sm:$0xff]   ;;  %v3330_v61 = vld [vmem:[%s3587_s7 + $0xf8] ss:$8 sps:$4 sm:$0xff]   ;;  %v3320_v62 = vld [vmem:[%s3926_s1 + $0x10] sm:$0xff]   ;;  %v1527_v18 = vshll.u32 %v2704_v11, 16  ;;  %v1515_v24 = vrot.slane %v1513_v12, 5 }
  0x31   : > { %v3319_v59 = vld [vmem:[%s3926_s1 + $0x148] sm:$0xff]   ;;  %v3321_v63 = vld [vmem:[%s3926_s1 + $0x150] sm:$0xff]   ;;  %v3322_v0 = vld [vmem:[%s3926_s1 + $0x18] sm:$0xff]   ;;  %s3936_s18 = smov (!%p526_p8, %s2544_s18), 1 }
  0x32   : > { %2978 = vmatpush3.bf16.msra.mxu1 %v3300_v40  ;;  %v3328_v60 = vld [vmem:[%s3587_s7 + $0x68] ss:$8 sps:$4 sm:$0xff]   ;;  %v3332_v1 = vld [vmem:[%s3587_s7 + $0x78] ss:$8 sps:$4 sm:$0xff]   ;;  %vm3655_vm2 = vmor %vm876_vm0, %vm877_vm1  ;;  %v1529_v27 = vrot.slane %v1527_v18, 5  ;;  %s2864_s9 = sshll.u32 %s3936_s18, 6 }
  0x33   : > { %3074 = vmatpush3.bf16.msra.mxu0 %v3301_v41  ;;  %2979 = vmatprep.subr.bf16.mxu1 %v3302_v42  ;;  %v3333_v2 = vld [vmem:[%s3587_s7 + $0x108] ss:$8 sps:$4 sm:$0xff]   ;;  %v3323_v3 = vld [vmem:[%s3926_s1 + $0x158] sm:$0xff]   ;;  %v3324_v10 = vld [vmem:[%s3926_s1 + $0x20] sm:$0xff]   ;;  %s530_s14 = scalar_lea.vmem %s3928_s3, %s2864_s9  ;;  %s2552_s17 = sshll.u32 %s3936_s18, 1 }
  0x34   : > { %3075 = vmatprep.subr.bf16.mxu0 %v3303_v43  ;;  %v3336_v4 = vld [vmem:[%s3587_s7] ss:$8 sps:$4 sm:$0xff]   ;;  %v2701_v5 = vld [vmem:[%s3587_s7 + $0x90] sm:$0xf]  ;;  %v2703_v7 = vld [vmem:[%s3587_s7 + $0x98] sm:$0xf]  ;;  %s534_s23 = scalar_lea.vmem %s3929_s4, %s2552_s17 }
  0x35   : > { %v1504_v8 = vshrl.u32 %v2701_v5, 16  ;;  %v1507_v9 = vshll.u32 %v2701_v5, 16  ;;  %v1518_v13 = vshrl.u32 %v2703_v7, 16  ;;  %v1521_v14 = vshll.u32 %v2703_v7, 16  ;;  %v3325_v15 = vld [vmem:[%s3926_s1 + $0x160] sm:$0xff]   ;;  %v3326_v19 = vld [vmem:[%s3926_s1 + $0x28] sm:$0xff]  }
  0x36   : > { %2980 = vmatpush3.bf16.msra.mxu1 %v3302_v42  ;;  %v3327_v22 = vld [vmem:[%s3926_s1 + $0x168] sm:$0xff]   ;;  %v2705_v28 = vld [vmem:[%s3587_s7 + $0xa0] sm:$0xf]  ;;  %v2706_v29 = vld [vmem:[%s3587_s7 + $0xa4] sm:$0x1] }
  0x37   : > { %3076 = vmatpush3.bf16.msra.mxu0 %v3303_v43  ;;  %2981 = vmatprep.subr.bf16.mxu1 %v3304_v44  ;;  %v1506_v16 = vrot.slane %v1504_v8, 4  ;;  %v1509_v17 = vrot.slane %v1507_v9, 5  ;;  %v1520_v20 = vrot.slane %v1518_v13, 4  ;;  %v1523_v21 = vrot.slane %v1521_v14, 5  ;;  %v2707_v31 = vld [vmem:[%s3587_s7 + $0xa8] sm:$0xf] }
  0x38   : > { %3077 = vmatprep.subr.bf16.mxu0 %v3305_v45  ;;  %v2708_v32 = vld [vmem:[%s3587_s7 + $0xac] sm:$0x1]  ;;  %v1532_v33 = vshrl.u32 %v2705_v28, 16  ;;  %v1535_v35 = vshll.u32 %v2705_v28, 16  ;;  %v1541_v36 = vshll.u32 %v2706_v29, 16  ;;  %v1546_v37 = vshrl.u32 %v2707_v31, 16 }
  0x39   : > { %v1510_v23 = vor.u32 %v1509_v17, %v1506_v16  ;;  %v1524_v26 = vor.u32 %v1523_v21, %v1520_v20  ;;  %v3329_v38 = vld [vmem:[%s3926_s1 + $0x30] sm:$0xff]   ;;  %v1549_v41 = vshll.u32 %v2707_v31, 16  ;;  %v3350_v9 = vld [vmem:[%s3587_s7 + $0x20] ss:$8 sps:$4 sm:$0xff]   ;;  %v3344_v31 = vld [vmem:[%s3926_s1 + $0x98] sm:$0xff]  }
  0x3a   : > { %2982 = vmatpush3.bf16.msra.mxu1 %v3304_v44  ;;  %v1534_v40 = vrot.slane %v1532_v33, 4  ;;  %v3331_v42 = vld [vmem:[%s3926_s1 + $0x170] sm:$0xff]   ;;  %v1537_v44 = vrot.slane %v1535_v35, 5  ;;  %v2713_v21 = vld [vmem:[%s3587_s7 + $0xc0] sm:$0xf] }
  0x3b   : > { %3078 = vmatpush3.bf16.msra.mxu0 %v3305_v45  ;;  %2983 = vmatprep.subr.bf16.mxu1 %v3306_v46  ;;  %v1511_v30 = vrot.slane %v1510_v23, 4  ;;  %v1525_v34 = vrot.slane %v1524_v26, 4  ;;  %v1548_v45 = vrot.slane %v1546_v37, 4  ;;  %v1551_v49 = vrot.slane %v1549_v41, 5  ;;  %v3353_v20 = vld [vmem:[%s3587_s7 + $0x30] ss:$8 sps:$4 sm:$0xff]  }
  0x3c   : > { %3079 = vmatprep.subr.bf16.mxu0 %v3307_v48  ;;  %v2715_v23 = vld [vmem:[%s3587_s7 + $0xc8] sm:$0xf]  ;;  %v1588_v28 = vshrl.u32 %v2713_v21, 16  ;;  %v1591_v29 = vshll.u32 %v2713_v21, 16 }
  0x3d   : > { %v1516_v39 = vsel %vm3655_vm2, %v1511_v30, %v1515_v24  ;;  %v1530_v43 = vsel %vm3655_vm2, %v1525_v34, %v1529_v27  ;;  %v3343_v24 = vld [vmem:[%s3926_s1 + $0x190] sm:$0xff]   ;;  %v2716_v27 = vld [vmem:[%s3587_s7 + $0xcc] sm:$0x1]  ;;  %v1602_v33 = vshrl.u32 %v2715_v23, 16  ;;  %v1605_v34 = vshll.u32 %v2715_v23, 16 }
  0x3e   : > { %2984 = vmatpush3.bf16.msra.mxu1 %v3306_v46  ;;  %v1555_v46 = vshll.u32 %v2708_v32, 16  ;;  %v2733_v47 = vcombine.low %v1516_v39, %v1530_v43  ;;  %v1611_v35 = vshll.u32 %v2716_v27, 16  ;;  %v1590_v37 = vrot.slane %v1588_v28, 4 }
  0x3f   : > { %3080 = vmatpush3.bf16.msra.mxu0 %v3307_v48  ;;  %2985 = vmatprep.subr.bf16.mxu1 %v3308_v50  ;;  %v1543_v48 = vrot.slane %v1541_v36, 5  ;;  %v1607_v43 = vrot.slane %v1605_v34, 5 }
  0x40   : > { %3081 = vmatprep.subr.bf16.mxu0 %v3309_v51 }
  0x42   : > { %2986 = vmatpush3.bf16.msra.mxu1 %v3308_v50  ;;  %v3334_v50 = vld [vmem:[%s3926_s1 + $0x38] sm:$0xff]  }
  0x43   : > { %3082 = vmatpush3.bf16.msra.mxu0 %v3309_v51  ;;  %2987 = vmatprep.subr.bf16.mxu1 %v3310_v52  ;;  %v1538_v51 = vor.u32 %v1537_v44, %v1534_v40  ;;  %v3345_v40 = vld [vmem:[%s3926_s1 + $0x198] sm:$0xff]   ;;  %v1613_v44 = vrot.slane %v1611_v35, 5 }
  0x44   : > { %3083 = vmatprep.subr.bf16.mxu0 %v3311_v53 }
  0x46   : > { %2988 = vmatpush3.bf16.msra.mxu1 %v3310_v52  ;;  %v1552_v52 = vor.u32 %v1551_v49, %v1548_v45  ;;  %v3346_v49 = vld [vmem:[%s3926_s1 + $0xa0] sm:$0xff]  }
  0x47   : > { %3084 = vmatpush3.bf16.msra.mxu0 %v3311_v53  ;;  %2997 = vmatprep.subr.bf16.mxu1 %v3313_v54  ;;  %v1539_v53 = vrot.slane %v1538_v51, 4 }
  0x48   : > { %3093 = vmatprep.subr.bf16.mxu0 %v3315_v55 }
  0x49   : > { %2990 = vmatmul.mubr.bf16.vlgmr.msra.gmra.mrb[0].mxu1 %v3316_v56  ;;  %v1553_v56 = vrot.slane %v1552_v52, 4  ;;  %v862_v52 = vld [vmem:[%s3587_s7 + $0x8] sm:$0xf] }
  0x4a   : > { %2998 = vmatpush3.bf16.msra.mxu1 %v3313_v54  ;;  %3086 = vmatmul.mubr.bf16.vlgmr.msra.gmra.mrb[0].mxu0 %v3317_v57  ;;  %v1557_v54 = vrot.slane %v1555_v46, 5  ;;  %v3337_v57 = vld [vmem:[%s3926_s1 + $0x80] sm:$0xff]  }
  0x4b   : > { %3094 = vmatpush3.bf16.msra.mxu0 %v3315_v55  ;;  %2999 = vmatprep.subr.bf16.mxu1 %v3318_v58  ;;  %v3335_v55 = vld [vmem:[%s3926_s1 + $0x178] sm:$0xff]  }
  0x4c   : > { %3095 = vmatprep.subr.bf16.mxu0 %v3319_v59  ;;  %2993 = vmatprep.mubr.bf16.mxu1 %v3328_v60  ;;  %v3338_v60 = vld [vmem:[%s3926_s1 + $0x180] sm:$0xff]  }
  0x4d   : > { %3089 = vmatprep.mubr.bf16.mxu0 %v3330_v61  ;;  %v3339_v61 = vld [vmem:[%s3587_s7 + $0x10] ss:$8 sps:$4 sm:$0xff]  }
  0x4e   : > { %3000 = vmatpush3.bf16.msra.mxu1 %v3318_v58  ;;  %v1544_v58 = vsel %vm3655_vm2, %v1539_v53, %v1543_v48  ;;  %v861_v48 = vld [vmem:[%s3587_s7 + $0x4] sm:$0x1]  ;;  %v863_v53 = vld [vmem:[%s3587_s7 + $0xc] sm:$0x1] }
  0x4f   : > { %3096 = vmatpush3.bf16.msra.mxu0 %v3319_v59  ;;  %3001 = vmatprep.subr.bf16.mxu1 %v3320_v62  ;;  %v1558_v59 = vsel %vm3655_vm2, %v1553_v56, %v1557_v54 }
  0x50   : > { %3097 = vmatprep.subr.bf16.mxu0 %v3321_v63 }
  0x51   : > { %2994 = vmatmul.mubr.bf16.gmra.mrb[4].mxu1 %v3332_v1  ;;  %v3341_v1 = vld [vmem:[%s3926_s1 + $0x188] sm:$0xff]  }
  0x52   : > { %3002 = vmatpush3.bf16.msra.mxu1 %v3320_v62  ;;  %3090 = vmatmul.mubr.bf16.gmra.mrb[4].mxu0 %v3333_v2  ;;  %v3340_v62 = vld [vmem:[%s3926_s1 + $0x88] sm:$0xff]   ;;  %v2710_v2 = vld [vmem:[%s3587_s7 + $0xb4] sm:$0x1] }
  0x53   : > { %3098 = vmatpush3.bf16.msra.mxu0 %v3321_v63  ;;  %3003 = vmatprep.subr.bf16.mxu1 %v3322_v0  ;;  %v2709_v63 = vld [vmem:[%s3587_s7 + $0xb0] sm:$0xf]  ;;  %v1569_v7 = vshll.u32 %v2710_v2, 16 }
  0x54   : > { %3099 = vmatprep.subr.bf16.mxu0 %v3323_v3  ;;  %3013 = vmatprep.mubr.bf16.mxu1 %v3336_v4  ;;  %v2712_v4 = vld [vmem:[%s3587_s7 + $0xbc] sm:$0x1]  ;;  %v1560_v5 = vshrl.u32 %v2709_v63, 16  ;;  %v1563_v6 = vshll.u32 %v2709_v63, 16  ;;  %v903_v63 = vshll.u32 %v863_v53, 16 }
  0x55   : > { %3109 = vmatprep.mubr.bf16.mxu0 %v2733_v47  ;;  %v1583_v11 = vshll.u32 %v2712_v4, 16  ;;  %v1571_v16 = vrot.slane %v1569_v7, 5  ;;  %v860_v47 = vld [vmem:[%s3587_s7] sm:$0xf]  ;;  %v3348_v4 = vld [vmem:[%s3926_s1 + $0xa8] sm:$0xff]  }
  0x56   : > { %3004 = vmatpush3.bf16.msra.mxu1 %v3322_v0  ;;  %v2734_v0 = vcombine.low %v1544_v58, %v1558_v59  ;;  %v1562_v12 = vrot.slane %v1560_v5, 4  ;;  %v1565_v13 = vrot.slane %v1563_v6, 5  ;;  %v880_v54 = vshrl.u32 %v860_v47, 16  ;;  %v871_v53 = vld [vmem:[%s3587_s7 + $0x2c] sm:$0x1] }
  0x57   : > { %3100 = vmatpush3.bf16.msra.mxu0 %v3323_v3  ;;  %3005 = vmatprep.subr.bf16.mxu1 %v3324_v10  ;;  %v2711_v3 = vld [vmem:[%s3587_s7 + $0xb8] sm:$0xf]  ;;  %v1585_v18 = vrot.slane %v1583_v11, 5  ;;  %v894_v58 = vshrl.u32 %v862_v52, 16  ;;  %v897_v59 = vshll.u32 %v862_v52, 16 }
  0x58   : > { %3101 = vmatprep.subr.bf16.mxu0 %v3325_v15  ;;  %v1574_v8 = vshrl.u32 %v2711_v3, 16  ;;  %v870_v52 = vld [vmem:[%s3587_s7 + $0x28] sm:$0xf] }
  0x59   : > { %v896_v2 = vrot.slane %v894_v58, 4  ;;  %v950_v58 = vshrl.u32 %v870_v52, 16 }
  0x5a   : > { %3006 = vmatpush3.bf16.msra.mxu1 %v3324_v10  ;;  %v1577_v10 = vshll.u32 %v2711_v3, 16  ;;  %v1576_v14 = vrot.slane %v1574_v8, 4  ;;  %v899_v3 = vrot.slane %v897_v59, 5  ;;  %v905_v8 = vrot.slane %v903_v63, 5 }
  0x5b   : > { %3102 = vmatpush3.bf16.msra.mxu0 %v3325_v15  ;;  %3007 = vmatprep.subr.bf16.mxu1 %v3326_v19  ;;  %v3342_v15 = vld [vmem:[%s3926_s1 + $0x90] sm:$0xff]   ;;  %v953_v59 = vshll.u32 %v870_v52, 16  ;;  %v2818_v52 = vld [vmem:[%s3587_s7 + $0xc] sm:$0x1] }
  0x5c   : > { %3103 = vmatprep.subr.bf16.mxu0 %v3327_v22  ;;  %v1579_v17 = vrot.slane %v1577_v10, 5  ;;  %v3349_v10 = vld [vmem:[%s3926_s1 + $0x1a8] sm:$0xff]  }
  0x5e   : > { %3008 = vmatpush3.bf16.msra.mxu1 %v3326_v19  ;;  %v1566_v19 = vor.u32 %v1565_v13, %v1562_v12  ;;  %v1580_v26 = vor.u32 %v1579_v17, %v1576_v14  ;;  %v900_v12 = vor.u32 %v899_v3, %v896_v2  ;;  %v864_v13 = vld [vmem:[%s3587_s7 + $0x10] sm:$0xf]  ;;  %v955_v3 = vrot.slane %v953_v59, 5 }
  0x5f   : > { %3104 = vmatpush3.bf16.msra.mxu0 %v3327_v22  ;;  %3009 = vmatprep.subr.bf16.mxu1 %v3329_v38  ;;  %v2714_v22 = vld [vmem:[%s3587_s7 + $0xc4] sm:$0x1]  ;;  %v908_v17 = vshrl.u32 %v864_v13, 16  ;;  %v872_v2 = vld [vmem:[%s3587_s7 + $0x30] sm:$0xf] }
  0x60   : > { %3105 = vmatprep.subr.bf16.mxu0 %v3331_v42  ;;  %v1597_v30 = vshll.u32 %v2714_v22, 16  ;;  %v1567_v32 = vrot.slane %v1566_v19, 4  ;;  %v1581_v36 = vrot.slane %v1580_v26, 4  ;;  %v867_v19 = vld [vmem:[%s3587_s7 + $0x1c] sm:$0x1] }
  0x62   : > { %3010 = vmatpush3.bf16.msra.mxu1 %v3329_v38  ;;  %v1593_v38 = vrot.slane %v1591_v29, 5  ;;  %v1599_v39 = vrot.slane %v1597_v30, 5  ;;  %v1572_v41 = vsel %vm3655_vm2, %v1567_v32, %v1571_v16  ;;  %v1586_v45 = vsel %vm3655_vm2, %v1581_v36, %v1585_v18  ;;  %v866_v16 = vld [vmem:[%s3587_s7 + $0x18] sm:$0xf]  ;;  %v3352_v32 = vld [vmem:[%s3926_s1 + $0x1b0] sm:$0xff]  }
  0x63   : > { %3106 = vmatpush3.bf16.msra.mxu0 %v3331_v42  ;;  %3011 = vmatprep.subr.bf16.mxu1 %v3334_v50  ;;  %v1604_v42 = vrot.slane %v1602_v33, 4  ;;  %v901_v18 = vrot.slane %v900_v12, 4  ;;  %v922_v22 = vshrl.u32 %v866_v16, 16  ;;  %v925_v26 = vshll.u32 %v866_v16, 16 }
  0x64   : > { %3107 = vmatprep.subr.bf16.mxu0 %v3335_v55  ;;  %v1594_v46 = vor.u32 %v1593_v38, %v1590_v37  ;;  %v931_v30 = vshll.u32 %v867_v19, 16 }
  0x65   : > { %v1608_v51 = vor.u32 %v1607_v43, %v1604_v42  ;;  %v906_v27 = vsel %vm3655_vm2, %v901_v18, %v905_v8  ;;  %v924_v29 = vrot.slane %v922_v22, 4  ;;  %v927_v35 = vrot.slane %v925_v26, 5  ;;  %v3355_v42 = vld [vmem:[%s3926_s1 + $0x1b8] sm:$0xff]   ;;  %v3356_v43 = vld [vmem:[%s3926_s1 + $0xc0] sm:$0xff]  }
  0x66   : > { %3012 = vmatpush3.bf16.msra.mxu1 %v3334_v50  ;;  %v2735_v50 = vcombine.low %v1572_v41, %v1586_v45  ;;  %v1595_v56 = vrot.slane %v1594_v46, 4  ;;  %v3358_v46 = vld [vmem:[%s3926_s1 + $0x1c0] sm:$0xff]   ;;  %v3364_v22 = vld [vmem:[%s3926_s1 + $0xd8] sm:$0xff]  }
  0x67   : > { %3108 = vmatpush3.bf16.msra.mxu0 %v3335_v55  ;;  %3021 = vmatprep.subr.bf16.mxu1 %v3337_v57  ;;  %v883_v55 = vshll.u32 %v860_v47, 16  ;;  %v928_v37 = vor.u32 %v927_v35, %v924_v29  ;;  %v3359_v47 = vld [vmem:[%s3587_s7 + $0x18] ss:$8 sps:$4 sm:$0xff]  }
  0x68   : > { %3117 = vmatprep.subr.bf16.mxu0 %v3338_v60 }
  0x69   : > { %3014 = vmatmul.mubr.bf16.vlgmr.msra.gmra.mrb[0].mxu1 %v3339_v61  ;;  %v882_v61 = vrot.slane %v880_v54, 4  ;;  %v929_v41 = vrot.slane %v928_v37, 4  ;;  %v3361_v54 = vld [vmem:[%s3926_s1 + $0x1c8] sm:$0xff]   ;;  %v3366_v37 = vld [vmem:[%s3926_s1 + $0xe0] sm:$0xff]  }
  0x6a   : > { %3022 = vmatpush3.bf16.msra.mxu1 %v3337_v57  ;;  %3110 = vmatmul.mubr.bf16.vlgmr.msra.gmra.mrb[0].mxu0 %v2734_v0  ;;  %v889_v57 = vshll.u32 %v861_v48, 16  ;;  %v3347_v0 = vld [vmem:[%s3926_s1 + $0x1a0] sm:$0xff]  }
  0x6b   : > { %3118 = vmatpush3.bf16.msra.mxu0 %v3338_v60  ;;  %3023 = vmatprep.subr.bf16.mxu1 %v3340_v62  ;;  %v1609_v60 = vrot.slane %v1608_v51, 4  ;;  %v868_v48 = vld [vmem:[%s3587_s7 + $0x20] sm:$0xf]  ;;  %v869_v51 = vld [vmem:[%s3587_s7 + $0x24] sm:$0x1] }
  0x6c   : > { %3119 = vmatprep.subr.bf16.mxu0 %v3341_v1  ;;  %3017 = vmatprep.mubr.bf16.mxu1 %v3350_v9  ;;  %v891_v7 = vrot.slane %v889_v57, 5  ;;  %v3357_v9 = vld [vmem:[%s3587_s7 + $0x8] ss:$8 sps:$4 sm:$0xff]   ;;  %v945_v57 = vshll.u32 %v869_v51, 16 }
  0x6d   : > { %3113 = vmatprep.mubr.bf16.mxu0 %v2735_v50  ;;  %v1614_v5 = vsel %vm3655_vm2, %v1609_v60, %v1613_v44  ;;  %v3360_v50 = vld [vmem:[%s3926_s1 + $0xc8] sm:$0xff]   ;;  %v959_v60 = vshll.u32 %v871_v53, 16  ;;  %v2819_v53 = vld [vmem:[%s3587_s7 + $0x10] sm:$0xf] }
  0x6e   : > { %3024 = vmatpush3.bf16.msra.mxu1 %v3340_v62  ;;  %v885_v62 = vrot.slane %v883_v55, 5  ;;  %v936_v55 = vshrl.u32 %v868_v48, 16  ;;  %v2817_v51 = vld [vmem:[%s3587_s7 + $0x8] sm:$0xf]  ;;  %v2145_v59 = vshll.u32 %v2819_v53, 16 }
  0x6f   : > { %3120 = vmatpush3.bf16.msra.mxu0 %v3341_v1  ;;  %3025 = vmatprep.subr.bf16.mxu1 %v3342_v15  ;;  %v1600_v1 = vsel %vm3655_vm2, %v1595_v56, %v1599_v39  ;;  %v933_v39 = vrot.slane %v931_v30, 5  ;;  %v939_v56 = vshll.u32 %v868_v48, 16  ;;  %v3372_v30 = vld [vmem:[%s3587_s7 + $0x38] ss:$8 sps:$4 sm:$0xff]  }
  0x70   : > { %3121 = vmatprep.subr.bf16.mxu0 %v3343_v24  ;;  %v886_v6 = vor.u32 %v885_v62, %v882_v61  ;;  %v2736_v11 = vcombine.low %v1600_v1, %v1614_v5  ;;  %v3370_v61 = vld [vmem:[%s3587_s7 + $0x28] ss:$8 sps:$4 sm:$0xff]   ;;  %v938_v62 = vrot.slane %v936_v55, 4  ;;  %v952_v1 = vrot.slane %v950_v58, 4  ;;  %v873_v5 = vld [vmem:[%s3587_s7 + $0x34] sm:$0x1] }
  0x71   : > { %3018 = vmatmul.mubr.bf16.gmra.mrb[4].mxu1 %v3353_v20  ;;  %v911_v20 = vshll.u32 %v864_v13, 16  ;;  %v934_v45 = vsel %vm3655_vm2, %v929_v41, %v933_v39  ;;  %v941_v63 = vrot.slane %v939_v56, 5  ;;  %v973_v12 = vshll.u32 %v873_v5, 16  ;;  %v3363_v13 = vld [vmem:[%s3926_s1 + $0x1d0] sm:$0xff]   ;;  %v3367_v41 = vld [vmem:[%s3926_s1 + $0x1e0] sm:$0xff]   ;;  %v3374_v48 = vld [vmem:[%s3926_s1 + $0xf8] sm:$0xff]  }
  0x72   : > { %3026 = vmatpush3.bf16.msra.mxu1 %v3342_v15  ;;  %v887_v14 = vrot.slane %v886_v6, 4  ;;  %v865_v15 = vld [vmem:[%s3587_s7 + $0x14] sm:$0x1]  ;;  %3114 = vmatmul.mubr.bf16.gmra.mrb[4].mxu0 %v2736_v11  ;;  %v874_v6 = vld [vmem:[%s3587_s7 + $0x38] sm:$0xf]  ;;  %v967_v11 = vshll.u32 %v872_v2, 16 }
  0x73   : > { %3122 = vmatpush3.bf16.msra.mxu0 %v3343_v24  ;;  %3027 = vmatprep.subr.bf16.mxu1 %v3344_v31  ;;  %v917_v21 = vshll.u32 %v865_v15, 16  ;;  %v910_v24 = vrot.slane %v908_v17, 4  ;;  %v913_v28 = vrot.slane %v911_v20, 5  ;;  %v942_v8 = vor.u32 %v941_v63, %v938_v62  ;;  %v2828_v5 = vld [vmem:[%s3587_s7 + $0x34] sm:$0x1] }
  0x74   : > { %3123 = vmatprep.subr.bf16.mxu0 %v3345_v40  ;;  %v892_v23 = vsel %vm3655_vm2, %v887_v14, %v891_v7  ;;  %3133 = vmatprep.mubr.bf16.mxu0 %v3357_v9  ;;  %v3362_v7 = vld [vmem:[%s3926_s1 + $0xd0] sm:$0xff]   ;;  %v875_v9 = vld [vmem:[%s3587_s7 + $0x3c] sm:$0x1]  ;;  %v956_v14 = vor.u32 %v955_v3, %v952_v1  ;;  %v978_v15 = vshrl.u32 %v874_v6, 16  ;;  %v981_v16 = vshll.u32 %v874_v6, 16 }
  0x75   : > { %v2617_v33 = vcombine.low %v892_v23, %v906_v27  ;;  %v919_v34 = vrot.slane %v917_v21, 5  ;;  %v914_v36 = vor.u32 %v913_v28, %v910_v24  ;;  %v987_v17 = vshll.u32 %v875_v9, 16  ;;  %v2827_v1 = vld [vmem:[%s3587_s7 + $0x30] sm:$0xf]  ;;  %v3379_v6 = vld [vmem:[%s3587_s7 + $0x60] ss:$8 sps:$4 sm:$0xff]  }
  0x76   : > { %3028 = vmatpush3.bf16.msra.mxu1 %v3344_v31  ;;  %v3351_v31 = vld [vmem:[%s3926_s1 + $0xb0] sm:$0xff]   ;;  %v943_v18 = vrot.slane %v942_v8, 4  ;;  %v969_v20 = vrot.slane %v967_v11, 5  ;;  %v975_v21 = vrot.slane %v973_v12, 5  ;;  %v957_v23 = vrot.slane %v956_v14, 4  ;;  %v3381_v11 = vld [vmem:[%s3926_s1 + $0x208] sm:$0xff]  }
  0x77   : > { %3124 = vmatpush3.bf16.msra.mxu0 %v3345_v40  ;;  %3029 = vmatprep.subr.bf16.mxu1 %v3346_v49  ;;  %v915_v38 = vrot.slane %v914_v36, 4  ;;  %v3354_v40 = vld [vmem:[%s3926_s1 + $0xb8] sm:$0xff]   ;;  %v980_v24 = vrot.slane %v978_v15, 4  ;;  %v983_v26 = vrot.slane %v981_v16, 5  ;;  %v989_v27 = vrot.slane %v987_v17, 5 }
  0x78   : > { %3125 = vmatprep.subr.bf16.mxu0 %v3347_v0  ;;  %3037 = vmatprep.mubr.bf16.mxu1 %v2617_v33  ;;  %v3365_v33 = vld [vmem:[%s3926_s1 + $0x1d8] sm:$0xff]   ;;  %v2128_v55 = vshrl.u32 %v2817_v51, 16  ;;  %v2131_v56 = vshll.u32 %v2817_v51, 16  ;;  %v2142_v58 = vshrl.u32 %v2819_v53, 16  ;;  %v2201_v14 = vshll.u32 %v2827_v1, 16  ;;  %v3388_v51 = vld [vmem:[%s3926_s1 + $0x220] sm:$0xff]  }
  0x79   : > { %v920_v44 = vsel %vm3655_vm2, %v915_v38, %v919_v34  ;;  %v2207_v15 = vshll.u32 %v2828_v5, 16  ;;  %v3382_v16 = vld [vmem:[%s3587_s7 + $0xb0] ss:$8 sps:$4 sm:$0xff]  }
  0x7a   : > { %3030 = vmatpush3.bf16.msra.mxu1 %v3346_v49  ;;  %v2618_v49 = vcombine.low %v920_v44, %v934_v45  ;;  %v3368_v44 = vld [vmem:[%s3926_s1 + $0xe8] sm:$0xff]   ;;  %v2130_v62 = vrot.slane %v2128_v55, 4  ;;  %v2133_v63 = vrot.slane %v2131_v56, 5  ;;  %v2144_v3 = vrot.slane %v2142_v58, 4 }
  0x7b   : > { %3126 = vmatpush3.bf16.msra.mxu0 %v3347_v0  ;;  %3031 = vmatprep.subr.bf16.mxu1 %v3348_v4  ;;  %v947_v0 = vrot.slane %v945_v57, 5  ;;  %v3369_v45 = vld [vmem:[%s3926_s1 + $0x1e8] sm:$0xff]   ;;  %v2137_v57 = vshll.u32 %v2818_v52, 16 }
  0x7c   : > { %3127 = vmatprep.subr.bf16.mxu0 %v3349_v10  ;;  %v3389_v56 = vld [vmem:[%s3926_s1 + $0x228] sm:$0xff]  }
  0x7d   : > { %v948_v28 = vsel %vm3655_vm2, %v943_v18, %v947_v0  ;;  %v2826_v0 = vld [vmem:[%s3587_s7 + $0x2c] sm:$0x1]  ;;  %v2139_v17 = vrot.slane %v2137_v57, 5  ;;  %v2830_v57 = vld [vmem:[%s3587_s7 + $0x3c] sm:$0x1] }
  0x7e   : > { %3032 = vmatpush3.bf16.msra.mxu1 %v3348_v4  ;;  %v961_v4 = vrot.slane %v959_v60, 5 }
  0x7f   : > { %3128 = vmatpush3.bf16.msra.mxu0 %v3349_v10  ;;  %3033 = vmatprep.subr.bf16.mxu1 %v3351_v31  ;;  %v964_v10 = vshrl.u32 %v872_v2, 16  ;;  %v3378_v2 = vld [vmem:[%s3587_s7 + $0xa0] ss:$8 sps:$4 sm:$0xff]  }
  0x80   : > { %3129 = vmatprep.subr.bf16.mxu0 %v3352_v32 }
  0x81   : > { %v966_v19 = vrot.slane %v964_v10, 4  ;;  %v2193_v10 = vshll.u32 %v2826_v0, 16 }
  0x82   : > { %3034 = vmatpush3.bf16.msra.mxu1 %v3351_v31  ;;  %v962_v31 = vsel %vm3655_vm2, %v957_v23, %v961_v4  ;;  %v2147_v4 = vrot.slane %v2145_v59, 5 }
  0x83   : > { %3130 = vmatpush3.bf16.msra.mxu0 %v3352_v32  ;;  %3035 = vmatprep.subr.bf16.mxu1 %v3354_v40  ;;  %v970_v29 = vor.u32 %v969_v20, %v966_v19  ;;  %v984_v32 = vor.u32 %v983_v26, %v980_v24  ;;  %v2619_v34 = vcombine.low %v948_v28, %v962_v31  ;;  %v2203_v26 = vrot.slane %v2201_v14, 5 }
  0x84   : > { %3131 = vmatprep.subr.bf16.mxu0 %v3355_v42  ;;  %v2148_v12 = vor.u32 %v2147_v4, %v2144_v3  ;;  %v2195_v28 = vrot.slane %v2193_v10, 5  ;;  %v2209_v31 = vrot.slane %v2207_v15, 5  ;;  %v2822_v3 = vld [vmem:[%s3587_s7 + $0x1c] sm:$0x1]  ;;  %v2824_v4 = vld [vmem:[%s3587_s7 + $0x24] sm:$0x1] }
  0x85   : > { %v971_v35 = vrot.slane %v970_v29, 4  ;;  %v985_v36 = vrot.slane %v984_v32, 4  ;;  %v3386_v29 = vld [vmem:[%s3926_s1 + $0x210] sm:$0xff]  }
  0x86   : > { %3036 = vmatpush3.bf16.msra.mxu1 %v3354_v40  ;;  %v3377_v40 = vld [vmem:[%s3587_s7 + $0x50] ss:$8 sps:$4 sm:$0xff]   ;;  %v2149_v23 = vrot.slane %v2148_v12, 4 }
  0x87   : > { %3132 = vmatpush3.bf16.msra.mxu0 %v3355_v42  ;;  %3045 = vmatprep.subr.bf16.mxu1 %v3356_v43  ;;  %v976_v38 = vsel %vm3655_vm2, %v971_v35, %v975_v21  ;;  %v990_v39 = vsel %vm3655_vm2, %v985_v36, %v989_v27  ;;  %v3383_v21 = vld [vmem:[%s3587_s7 + $0x70] ss:$8 sps:$4 sm:$0xff]  }
  0x88   : > { %3141 = vmatprep.subr.bf16.mxu0 %v3358_v46  ;;  %v2620_v42 = vcombine.low %v976_v38, %v990_v39  ;;  %v3387_v39 = vld [vmem:[%s3926_s1 + $0x218] sm:$0xff]  }
  0x89   : > { %3038 = vmatmul.mubr.bf16.vlgmr.msra.gmra.mrb[0].mxu1 %v2618_v49  ;;  %v3375_v49 = vld [vmem:[%s3926_s1 + $0x1f8] sm:$0xff]  }
  0x8a   : > { %3046 = vmatpush3.bf16.msra.mxu1 %v3356_v43  ;;  %3134 = vmatmul.mubr.bf16.vlgmr.msra.gmra.mrb[0].mxu0 %v3359_v47  ;;  %v3376_v43 = vld [vmem:[%s3587_s7 + $0x90] ss:$8 sps:$4 sm:$0xff]  }
  0x8b   : > { %3142 = vmatpush3.bf16.msra.mxu0 %v3358_v46  ;;  %3047 = vmatprep.subr.bf16.mxu1 %v3360_v50  ;;  %v3371_v46 = vld [vmem:[%s3926_s1 + $0xf0] sm:$0xff]  }
  0x8c   : > { %3143 = vmatprep.subr.bf16.mxu0 %v3361_v54  ;;  %3137 = vmatprep.mubr.bf16.mxu0 %v3370_v61  ;;  %v3373_v47 = vld [vmem:[%s3926_s1 + $0x1f0] sm:$0xff]   ;;  %v2825_v61 = vld [vmem:[%s3587_s7 + $0x28] sm:$0xf] }
  0x8d   : > { %3041 = vmatprep.mubr.bf16.mxu1 %v2619_v34  ;;  %v2184_v8 = vshrl.u32 %v2825_v61, 16  ;;  %v2187_v9 = vshll.u32 %v2825_v61, 16 }
  0x8e   : > { %3048 = vmatpush3.bf16.msra.mxu1 %v3360_v50  ;;  %v3380_v50 = vld [vmem:[%s3926_s1 + $0x200] sm:$0xff]  }
  0x8f   : > { %3144 = vmatpush3.bf16.msra.mxu0 %v3361_v54  ;;  %3049 = vmatprep.subr.bf16.mxu1 %v3362_v7  ;;  %v2820_v54 = vld [vmem:[%s3587_s7 + $0x14] sm:$0x1]  ;;  %v2186_v19 = vrot.slane %v2184_v8, 4  ;;  %v2189_v20 = vrot.slane %v2187_v9, 5 }
  0x90   : > { %3145 = vmatprep.subr.bf16.mxu0 %v3363_v13  ;;  %v2151_v60 = vshll.u32 %v2820_v54, 16  ;;  %v3390_v9 = vld [vmem:[%s3926_s1 + $0x230] sm:$0xff]  }
  0x91   : > { %3042 = vmatmul.mubr.bf16.gmra.mrb[4].mxu1 %v2620_v42  ;;  %v2190_v27 = vor.u32 %v2189_v20, %v2186_v19  ;;  %v2831_v42 = vld [vmem:[%s3587_s7 + $0x40] sm:$0xf] }
  0x92   : > { %3050 = vmatpush3.bf16.msra.mxu1 %v3362_v7  ;;  %3138 = vmatmul.mubr.bf16.gmra.mrb[4].mxu0 %v3372_v30  ;;  %v2134_v7 = vor.u32 %v2133_v63, %v2130_v62  ;;  %v2153_v18 = vrot.slane %v2151_v60, 5 }
  0x93   : > { %3146 = vmatpush3.bf16.msra.mxu0 %v3363_v13  ;;  %3051 = vmatprep.subr.bf16.mxu1 %v3364_v22  ;;  %v2198_v13 = vshrl.u32 %v2827_v1, 16  ;;  %v2191_v32 = vrot.slane %v2190_v27, 4 }
  0x94   : > { %3147 = vmatprep.subr.bf16.mxu0 %v3365_v33  ;;  %3157 = vmatprep.mubr.bf16.mxu0 %v3377_v40  ;;  %v2154_v35 = vsel %vm3655_vm2, %v2149_v23, %v2153_v18  ;;  %v3391_v18 = vld [vmem:[%s3926_s1 + $0x238] sm:$0xff]  }
  0x95   : > { %3061 = vmatprep.mubr.bf16.mxu1 %v3376_v43  ;;  %v2200_v24 = vrot.slane %v2198_v13, 4  ;;  %v2196_v38 = vsel %vm3655_vm2, %v2191_v32, %v2195_v28  ;;  %v2179_v13 = vshll.u32 %v2824_v4, 16 }
  0x96   : > { %3052 = vmatpush3.bf16.msra.mxu1 %v3364_v22  ;;  %v2135_v22 = vrot.slane %v2134_v7, 4 }
  0x97   : > { %3148 = vmatpush3.bf16.msra.mxu0 %v3365_v33  ;;  %3053 = vmatprep.subr.bf16.mxu1 %v3366_v37  ;;  %v2204_v30 = vor.u32 %v2203_v26, %v2200_v24  ;;  %v3384_v33 = vld [vmem:[%s3587_s7 + $0xc0] ss:$8 sps:$4 sm:$0xff]  }
  0x98   : > { %3149 = vmatprep.subr.bf16.mxu0 %v3367_v41  ;;  %v2140_v34 = vsel %vm3655_vm2, %v2135_v22, %v2139_v17  ;;  %v2181_v22 = vrot.slane %v2179_v13, 5 }
  0x99   : > { %v2205_v36 = vrot.slane %v2204_v30, 4  ;;  %v2849_v43 = vcombine.low %v2140_v34, %v2154_v35 }
  0x9a   : > { %3054 = vmatpush3.bf16.msra.mxu1 %v3366_v37  ;;  %v3385_v37 = vld [vmem:[%s3587_s7 + $0x80] ss:$8 sps:$4 sm:$0xff]  }
  0x9b   : > { %3150 = vmatpush3.bf16.msra.mxu0 %v3367_v41  ;;  %3055 = vmatprep.subr.bf16.mxu1 %v3368_v44  ;;  %v2210_v40 = vsel %vm3655_vm2, %v2205_v36, %v2209_v31  ;;  %v2829_v41 = vld [vmem:[%s3587_s7 + $0x38] sm:$0xf] }
  0x9c   : > { %3151 = vmatprep.subr.bf16.mxu0 %v3369_v45 }
  0x9e   : > { %3056 = vmatpush3.bf16.msra.mxu1 %v3368_v44  ;;  %v2821_v44 = vld [vmem:[%s3587_s7 + $0x18] sm:$0xf] }
  0x9f   : > { %3152 = vmatpush3.bf16.msra.mxu0 %v3369_v45  ;;  %3057 = vmatprep.subr.bf16.mxu1 %v3371_v46  ;;  %v2823_v45 = vld [vmem:[%s3587_s7 + $0x20] sm:$0xf]  ;;  %v2156_v52 = vshrl.u32 %v2821_v44, 16  ;;  %v2159_v53 = vshll.u32 %v2821_v44, 16 }
  0xa0   : > { %3153 = vmatprep.subr.bf16.mxu0 %v3373_v47  ;;  %v2170_v54 = vshrl.u32 %v2823_v45, 16  ;;  %v2173_v55 = vshll.u32 %v2823_v45, 16  ;;  %v2861_v45 = vld [vmem:[%s3927_s2] ss:$0 sm:$0xff] }
  0xa1   : > { %v2158_v62 = vrot.slane %v2156_v52, 4  ;;  %v2161_v63 = vrot.slane %v2159_v53, 5 }
  0xa2   : > { %3058 = vmatpush3.bf16.msra.mxu1 %v3371_v46  ;;  %v2851_v46 = vcombine.low %v2196_v38, %v2210_v40  ;;  %v2172_v0 = vrot.slane %v2170_v54, 4  ;;  %v2175_v1 = vrot.slane %v2173_v55, 5 }
  0xa3   : > { %3154 = vmatpush3.bf16.msra.mxu0 %v3373_v47  ;;  %3059 = vmatprep.subr.bf16.mxu1 %v3374_v48  ;;  %v2212_v47 = vshrl.u32 %v2829_v41, 16  ;;  %v2162_v10 = vor.u32 %v2161_v63, %v2158_v62 }
  0xa4   : > { %3155 = vmatprep.subr.bf16.mxu0 %v3375_v49  ;;  %v2176_v12 = vor.u32 %v2175_v1, %v2172_v0 }
  0xa5   : > { %v2214_v58 = vrot.slane %v2212_v47, 4  ;;  %v2163_v19 = vrot.slane %v2162_v10, 4 }
  0xa6   : > { %3060 = vmatpush3.bf16.msra.mxu1 %v3374_v48  ;;  %v2215_v48 = vshll.u32 %v2829_v41, 16 }
  0xa7   : > { %3156 = vmatpush3.bf16.msra.mxu0 %v3375_v49  ;;  %3189 = vmatprep.subr.bf16.mxu1 %v3380_v50  ;;  %v2226_v49 = vshrl.u32 %v2831_v42, 16 }
  0xa8   : > { %3165 = vmatprep.subr.bf16.mxu0 %v3380_v50  ;;  %v2217_v59 = vrot.slane %v2215_v48, 5 }
  0xa9   : > { %3062 = vmatmul.mubr.bf16.vlgmr.msra.gmra.mrb[0].mxu1 %v3378_v2  ;;  %v2228_v60 = vrot.slane %v2226_v49, 4  ;;  %v2832_v2 = vld [vmem:[%s3587_s7 + $0x44] sm:$0x1] }
  0xaa   : > { %3158 = vmatmul.mubr.bf16.vlgmr.msra.gmra.mrb[0].mxu0 %v3379_v6  ;;  %3197 = vmatpush3.bf16.msra.mxu1 %v3380_v50  ;;  %v2218_v5 = vor.u32 %v2217_v59, %v2214_v58  ;;  %v2221_v6 = vshll.u32 %v2830_v57, 16  ;;  %v2235_v8 = vshll.u32 %v2832_v2, 16 }
  0xab   : > { %3166 = vmatpush3.bf16.msra.mxu0 %v3380_v50  ;;  %3190 = vmatprep.subr.bf16.mxu1 %v3381_v11  ;;  %v2229_v50 = vshll.u32 %v2831_v42, 16 }
  0xac   : > { %3167 = vmatprep.subr.bf16.mxu0 %v3381_v11  ;;  %3065 = vmatprep.mubr.bf16.mxu1 %v3382_v16  ;;  %v2219_v14 = vrot.slane %v2218_v5, 4  ;;  %v2223_v15 = vrot.slane %v2221_v6, 5  ;;  %v2237_v17 = vrot.slane %v2235_v8, 5 }
  0xad   : > { %3161 = vmatprep.mubr.bf16.mxu0 %v3383_v21  ;;  %v2231_v61 = vrot.slane %v2229_v50, 5  ;;  %v2177_v21 = vrot.slane %v2176_v12, 4 }
  0xae   : > { %3198 = vmatpush3.bf16.msra.mxu1 %v3381_v11  ;;  %v2224_v23 = vsel %vm3655_vm2, %v2219_v14, %v2223_v15 }
  0xaf   : > { %3168 = vmatpush3.bf16.msra.mxu0 %v3381_v11  ;;  %3191 = vmatprep.subr.bf16.mxu1 %v3386_v29  ;;  %v2232_v7 = vor.u32 %v2231_v61, %v2228_v60  ;;  %v2165_v11 = vshll.u32 %v2822_v3, 16  ;;  %v2182_v27 = vsel %vm3655_vm2, %v2177_v21, %v2181_v22 }
  0xb0   : > { %3169 = vmatprep.subr.bf16.mxu0 %v3386_v29 }
  0xb1   : > { %3066 = vmatmul.mubr.bf16.gmra.mrb[4].mxu1 %v3384_v33  ;;  %v2233_v16 = vrot.slane %v2232_v7, 4  ;;  %v2167_v20 = vrot.slane %v2165_v11, 5 }
  0xb2   : > { %3162 = vmatmul.mubr.bf16.gmra.mrb[4].mxu0 %v3385_v37  ;;  %3199 = vmatpush3.bf16.msra.mxu1 %v3386_v29 }
  0xb3   : > { %3170 = vmatpush3.bf16.msra.mxu0 %v3386_v29  ;;  %3192 = vmatprep.subr.bf16.mxu1 %v3387_v39  ;;  %v2238_v24 = vsel %vm3655_vm2, %v2233_v16, %v2237_v17  ;;  %v2168_v26 = vsel %vm3655_vm2, %v2163_v19, %v2167_v20 }
  0xb4   : > { %3171 = vmatprep.subr.bf16.mxu0 %v3387_v39  ;;  %3181 = vmatprep.mubr.bf16.mxu0 %v2849_v43  ;;  %v2852_v28 = vcombine.low %v2224_v23, %v2238_v24  ;;  %v2850_v29 = vcombine.low %v2168_v26, %v2182_v27 }
  0xb5   : > { %3185 = vmatprep.mubr.bf16.mxu1 %v2851_v46 }
  0xb6   : > { %3200 = vmatpush3.bf16.msra.mxu1 %v3387_v39 }
  0xb7   : > { %3172 = vmatpush3.bf16.msra.mxu0 %v3387_v39  ;;  %3193 = vmatprep.subr.bf16.mxu1 %v3388_v51 }
  0xb8   : > { %3173 = vmatprep.subr.bf16.mxu0 %v3388_v51 }
  0xba   : > { %3201 = vmatpush3.bf16.msra.mxu1 %v3388_v51 }
  0xbb   : > { %3174 = vmatpush3.bf16.msra.mxu0 %v3388_v51  ;;  %3194 = vmatprep.subr.bf16.mxu1 %v3389_v56 }
  0xbc   : > { %3175 = vmatprep.subr.bf16.mxu0 %v3389_v56 }
  0xbe   : > { %3202 = vmatpush3.bf16.msra.mxu1 %v3389_v56 }
  0xbf   : > { %3176 = vmatpush3.bf16.msra.mxu0 %v3389_v56  ;;  %3195 = vmatprep.subr.bf16.mxu1 %v3390_v9 }
  0xc0   : > { %3177 = vmatprep.subr.bf16.mxu0 %v3390_v9 }
  0xc2   : > { %3203 = vmatpush3.bf16.msra.mxu1 %v3390_v9 }
  0xc3   : > { %3178 = vmatpush3.bf16.msra.mxu0 %v3390_v9  ;;  %3196 = vmatprep.subr.bf16.mxu1 %v3391_v18 }
  0xc4   : > { %3179 = vmatprep.subr.bf16.mxu0 %v3391_v18 }
  0xc6   : > { %3204 = vmatpush3.bf16.msra.mxu1 %v3391_v18 }
  0xc7   : > { %3180 = vmatpush3.bf16.msra.mxu0 %v3391_v18 }
  0xc9   : > { %3186 = vmatmul.mubr.bf16.vlgmr.msra.gmra.mrb[8].mxu1 %v2852_v28 }
  0xca   : > { %3182 = vmatmul.mubr.bf16.vlgmr.msra.gmra.mrb[0].mxu0 %v2850_v29 }
 0x17c   : > { %v3063_v30 = vpop.f32.mrb[0].mxu1 }
 0x17d   : > { %v1277_v31 = vpop.f32.mrb[1].mxu1 }
 0x17e   : > { %v3064_v32 = vpop.f32.mrb[2].mxu1 }
 0x17f   : > { %v1280_v33 = vpop.f32.mrb[3].mxu1 }
 0x184   : > { %v3067_v34 = vpop.f32.mrb[4].mxu1 }
 0x185   : > { %v3163_v35 = vpop.f32.mrb[4].mxu0  ;;  %v1293_v36 = vpop.f32.mrb[5].mxu1 }
 0x186   : > { %v3209_v37 = vadd.f32 %v3163_v35, %v3067_v34  ;;  %v2088_v38 = vpop.f32.mrb[5].mxu0  ;;  %v3068_v25 = vpop.f32.mrb[6].mxu1 }
 0x187   : > { %v3211_v39 = vadd.f32 %v2088_v38, %v1293_v36  ;;  %v3164_v40 = vpop.f32.mrb[6].mxu0  ;;  %v1296_v41 = vpop.f32.mrb[7].mxu1 }
 0x188   : > { %v3213_v42 = vadd.f32 %v3164_v40, %v3068_v25  ;;  %v2091_v43 = vpop.f32.mrb[7].mxu0 }
 0x189   : > { %v3215_v44 = vadd.f32 %v2091_v43, %v1296_v41 }
 0x19c   : > { %v3187_v46 = vpop.f32.mrb[8].mxu1 }
 0x19d   : > { %v3183_v47 = vpop.f32.mrb[0].mxu0  ;;  %v3210_v48 = vadd.f32 %v3209_v37, %v3187_v46  ;;  %v2370_v49 = vpop.f32.mrb[9].mxu1 }
 0x19e   : > { %v3205_v50 = vadd.f32 %v3183_v47, %v3063_v30  ;;  %v2354_v51 = vpop.f32.mrb[1].mxu0  ;;  %v3212_v52 = vadd.f32 %v3211_v39, %v2370_v49  ;;  %v3188_v53 = vpop.f32.mrb[10].mxu1 }
 0x19f   : > { %v2406_v54 = vadd.f32 %v3210_v48, %v2861_v45  ;;  %v3206_v55 = vadd.f32 %v2354_v51, %v1277_v31  ;;  %v3184_v56 = vpop.f32.mrb[2].mxu0  ;;  %v3214_v57 = vadd.f32 %v3213_v42, %v3188_v53  ;;  %v2373_v58 = vpop.f32.mrb[11].mxu1 }
 0x1a0   : > { %v2402_v59 = vadd.f32 %v3205_v50, %v2861_v45  ;;  %v2404_v60 = vadd.f32 %v3212_v52, %v2861_v45  ;;  %v3207_v61 = vadd.f32 %v3184_v56, %v3064_v32  ;;  %v2357_v62 = vpop.f32.mrb[3].mxu0  ;;  %v3216_v63 = vadd.f32 %v3215_v44, %v2373_v58 }
 0x1a1   : > { %2414 = vst [vmem:[%s530_s14 + $0x30] sm:$0xff] %v2406_v54  ;;  %v2400_v0 = vadd.f32 %v3206_v55, %v2861_v45  ;;  %v2407_v1 = vadd.f32 %v3214_v57, %v2861_v45  ;;  %v3208_v2 = vadd.f32 %v2357_v62, %v1280_v33  ;;  %v2436_v21 = vmul.f32 %v2406_v54, %v2406_v54 }
 0x1a2   : > { %2410 = vst [vmem:[%s530_s14 + $0x10] sm:$0xff] %v2402_v59  ;;  %2412 = vst [vmem:[%s530_s14 + $0x20] sm:$0xff] %v2404_v60  ;;  %v2403_v3 = vadd.f32 %v3207_v61, %v2861_v45  ;;  %v2405_v4 = vadd.f32 %v3216_v63, %v2861_v45  ;;  %v2432_v9 = vmul.f32 %v2402_v59, %v2402_v59 }
 0x1a3   : > { %2408 = vst [vmem:[%s530_s14] sm:$0xff] %v2400_v0  ;;  %2415 = vst [vmem:[%s530_s14 + $0x38] sm:$0xff] %v2407_v1  ;;  %v2401_v5 = vadd.f32 %v3208_v2, %v2861_v45  ;;  %v2430_v6 = vmul.f32 %v2400_v0, %v2400_v0  ;;  %v2434_v15 = vmul.f32 %v2404_v60, %v2404_v60 }
 0x1a4   : > { %2411 = vst [vmem:[%s530_s14 + $0x18] sm:$0xff] %v2403_v3  ;;  %2413 = vst [vmem:[%s530_s14 + $0x28] sm:$0xff] %v2405_v4  ;;  %v2433_v12 = vmul.f32 %v2403_v3, %v2403_v3  ;;  %v2435_v19 = vmul.f32 %v2405_v4, %v2405_v4  ;;  %v2437_v24 = vmul.f32 %v2407_v1, %v2407_v1 }
 0x1a5   : > { %2409 = vst [vmem:[%s530_s14 + $0x8] sm:$0xff] %v2401_v5  ;;  %v2416_v7 = vadd.f32 %v2401_v5, %v2400_v0  ;;  %v2431_v8 = vmul.f32 %v2401_v5, %v2401_v5 }
 0x1a7   : > { %v2417_v10 = vadd.f32 %v2416_v7, %v2402_v59  ;;  %v2438_v11 = vadd.f32 %v2431_v8, %v2430_v6 }
 0x1a9   : > { %v2439_v13 = vadd.f32 %v2438_v11, %v2432_v9  ;;  %v2418_v14 = vadd.f32 %v2417_v10, %v2403_v3 }
 0x1ab   : > { %v2419_v16 = vadd.f32 %v2418_v14, %v2404_v60  ;;  %v2440_v17 = vadd.f32 %v2439_v13, %v2433_v12 }
 0x1ad   : > { %v2420_v18 = vadd.f32 %v2419_v16, %v2405_v4  ;;  %v2441_v20 = vadd.f32 %v2440_v17, %v2434_v15 }
 0x1af   : > { %v2421_v22 = vadd.f32 %v2420_v18, %v2406_v54  ;;  %v2442_v23 = vadd.f32 %v2441_v20, %v2435_v19 }
 0x1b1   : > { %v2422_v26 = vadd.f32 %v2421_v22, %v2407_v1  ;;  %v2443_v27 = vadd.f32 %v2442_v23, %v2436_v21 }
 0x1b3   : > { %v2423_v28 = vrot.slane %v2422_v26, 4  ;;  %v2444_v29 = vadd.f32 %v2443_v27, %v2437_v24 }
 0x1b5   : > { %v2424_v30 = vadd.f32 %v2423_v28, %v2422_v26  ;;  %v2445_v31 = vrot.slane %v2444_v29, 4 }
 0x1b7   : > { %v2425_v32 = vrot.slane %v2424_v30, 2  ;;  %v2446_v33 = vadd.f32 %v2445_v31, %v2444_v29 }
 0x1b9   : > { %v2426_v34 = vadd.f32 %v2425_v32, %v2424_v30  ;;  %v2447_v35 = vrot.slane %v2446_v33, 2 }
 0x1bb   : > { %v2427_v36 = vrot.slane %v2426_v34, 1  ;;  %v2448_v37 = vadd.f32 %v2447_v35, %v2446_v33 }
 0x1bd   : > { %v2428_v38 = vadd.f32 %v2427_v36, %v2426_v34  ;;  %v2449_v25 = vrot.slane %v2448_v37, 1 }
 0x1bf   : > { %2429 = vst [vmem:[%s534_s23] sm:$0x1] %v2428_v38  ;;  %v2450_v39 = vadd.f32 %v2449_v25, %v2448_v37 }
 0x1c1   : > { %2451 = vst [vmem:[%s534_s23 + $0x1] sm:$0x1] %v2450_v39 }
 0x1c2 PF: > { %p12_p9 = scmp.ge.s32.totalorder %s3458_s19, 4   ;;  %s3932_s15 = smov %s3410_s16 }
 0x1c3   : > { %s3933_s16 = smov %s3467_s22  ;;  %s3934_s17 = smov %s3458_s19 }
 0x1c4   :  { %14 = sbr.rel (!%p12_p9) target bundleno = 2 (0x2), region = 133 }

// kernel: bottleneck_forward.10
= control target key start
LH: loop header
LB: loop body
LE: loop exit
PB: predicated region body
PF: predicated region fallthrough
CT: control target
= control target key end

     0   :  { %s640_s1 = inlined_call_operand.vmem [shape: bf16[128,128], index: 1, kind: input, shape index: {}]   ;;  %s641_s0 = inlined_call_operand.vmem [shape: bf16[128,128], index: 0, kind: input, shape index: {}]   ;;  %s642_s2 = inlined_call_operand.vmem [shape: f32[128,128], index: 2, kind: output, shape index: {0}]   ;;  %s643_s3 = inlined_call_operand.vmem [shape: f32[1,2,128], index: 3, kind: output, shape index: {1}]  }
   0x1   :  { %v502_v0 = vld [vmem:[%s640_s1] sm:$0xff]   ;;  %v503_v1 = vld [vmem:[%s640_s1 + $0x8] sm:$0xff]   ;;  %v504_v2 = vld [vmem:[%s640_s1 + $0x10] sm:$0xff]  }
   0x2   :  { %454 = vmatprep.subr.bf16.mxu0 %v502_v0  ;;  %486 = vmatprep.subr.bf16.mxu1 %v502_v0  ;;  %v505_v3 = vld [vmem:[%s640_s1 + $0x18] sm:$0xff]   ;;  %v510_v4 = vld [vmem:[%s641_s0] sm:$0xff]   ;;  %v507_v7 = vld [vmem:[%s640_s1 + $0x28] sm:$0xff]  }
   0x3   :  { %455 = vmatpush3.bf16.msra.mxu0 %v502_v0  ;;  %494 = vmatpush3.bf16.msra.mxu1 %v502_v0  ;;  %v506_v5 = vld [vmem:[%s640_s1 + $0x20] sm:$0xff]   ;;  %v508_v8 = vld [vmem:[%s640_s1 + $0x30] sm:$0xff]   ;;  %v509_v9 = vld [vmem:[%s640_s1 + $0x38] sm:$0xff]  }
   0x4   :  { %456 = vmatprep.subr.bf16.mxu0 %v503_v1  ;;  %487 = vmatprep.subr.bf16.mxu1 %v503_v1  ;;  %v514_v6 = vld [vmem:[%s641_s0 + $0x20] sm:$0xff]   ;;  %v511_v10 = vld [vmem:[%s641_s0 + $0x8] sm:$0xff]   ;;  %v512_v12 = vld [vmem:[%s641_s0 + $0x10] sm:$0xff]  }
   0x5   :  { %470 = vmatprep.mubr.bf16.mxu0 %v510_v4  ;;  %478 = vmatprep.mubr.bf16.mxu1 %v514_v6  ;;  %v515_v11 = vld [vmem:[%s641_s0 + $0x28] sm:$0xff]   ;;  %v516_v13 = vld [vmem:[%s641_s0 + $0x30] sm:$0xff]   ;;  %v513_v14 = vld [vmem:[%s641_s0 + $0x18] sm:$0xff]  }
   0x6   :  { %v517_v15 = vld [vmem:[%s641_s0 + $0x38] sm:$0xff]  }
   0x7   :  { %457 = vmatpush3.bf16.msra.mxu0 %v503_v1  ;;  %495 = vmatpush3.bf16.msra.mxu1 %v503_v1 }
   0x8   :  { %458 = vmatprep.subr.bf16.mxu0 %v504_v2  ;;  %488 = vmatprep.subr.bf16.mxu1 %v504_v2 }
   0xb   :  { %459 = vmatpush3.bf16.msra.mxu0 %v504_v2  ;;  %496 = vmatpush3.bf16.msra.mxu1 %v504_v2 }
   0xc   :  { %460 = vmatprep.subr.bf16.mxu0 %v505_v3  ;;  %489 = vmatprep.subr.bf16.mxu1 %v505_v3 }
   0xf   :  { %461 = vmatpush3.bf16.msra.mxu0 %v505_v3  ;;  %497 = vmatpush3.bf16.msra.mxu1 %v505_v3 }
  0x10   :  { %462 = vmatprep.subr.bf16.mxu0 %v506_v5  ;;  %490 = vmatprep.subr.bf16.mxu1 %v506_v5 }
  0x13   :  { %463 = vmatpush3.bf16.msra.mxu0 %v506_v5  ;;  %498 = vmatpush3.bf16.msra.mxu1 %v506_v5 }
  0x14   :  { %464 = vmatprep.subr.bf16.mxu0 %v507_v7  ;;  %491 = vmatprep.subr.bf16.mxu1 %v507_v7 }
  0x17   :  { %465 = vmatpush3.bf16.msra.mxu0 %v507_v7  ;;  %499 = vmatpush3.bf16.msra.mxu1 %v507_v7 }
  0x18   :  { %466 = vmatprep.subr.bf16.mxu0 %v508_v8  ;;  %492 = vmatprep.subr.bf16.mxu1 %v508_v8 }
  0x1b   :  { %467 = vmatpush3.bf16.msra.mxu0 %v508_v8  ;;  %500 = vmatpush3.bf16.msra.mxu1 %v508_v8 }
  0x1c   :  { %468 = vmatprep.subr.bf16.mxu0 %v509_v9  ;;  %493 = vmatprep.subr.bf16.mxu1 %v509_v9 }
  0x1f   :  { %469 = vmatpush3.bf16.msra.mxu0 %v509_v9  ;;  %501 = vmatpush3.bf16.msra.mxu1 %v509_v9 }
  0x22   :  { %471 = vmatmul.mubr.bf16.vlgmr.msra.gmra.mrb[0].mxu0 %v511_v10  ;;  %479 = vmatmul.mubr.bf16.vlgmr.msra.gmra.mrb[0].mxu1 %v515_v11 }
  0x23   :  { %474 = vmatprep.mubr.bf16.mxu0 %v512_v12  ;;  %482 = vmatprep.mubr.bf16.mxu1 %v516_v13 }
  0x2a   :  { %475 = vmatmul.mubr.bf16.gmra.mrb[4].mxu0 %v513_v14  ;;  %483 = vmatmul.mubr.bf16.gmra.mrb[4].mxu1 %v517_v15 }
  0xf5   :  { %v472_v16 = vpop.f32.mrb[0].mxu0  ;;  %v480_v17 = vpop.f32.mrb[0].mxu1 }
  0xf6   :  { %241 = vst [vmem:[%s642_s2 + $0x10] sm:$0xff] %v472_v16  ;;  %v176_v18 = vpop.f32.mrb[1].mxu0  ;;  %249 = vst [vmem:[%s642_s2 + $0x50] sm:$0xff] %v480_v17  ;;  %v208_v19 = vpop.f32.mrb[1].mxu1  ;;  %v377_v27 = vmul.f32 %v472_v16, %v472_v16  ;;  %v385_v59 = vmul.f32 %v480_v17, %v480_v17 }
  0xf7   :  { %239 = vst [vmem:[%s642_s2] sm:$0xff] %v176_v18  ;;  %v473_v20 = vpop.f32.mrb[2].mxu0  ;;  %247 = vst [vmem:[%s642_s2 + $0x40] sm:$0xff] %v208_v19  ;;  %v481_v21 = vpop.f32.mrb[2].mxu1  ;;  %v375_v24 = vmul.f32 %v176_v18, %v176_v18  ;;  %v383_v53 = vmul.f32 %v208_v19, %v208_v19 }
  0xf8   :  { %242 = vst [vmem:[%s642_s2 + $0x18] sm:$0xff] %v473_v20  ;;  %v179_v22 = vpop.f32.mrb[3].mxu0  ;;  %250 = vst [vmem:[%s642_s2 + $0x58] sm:$0xff] %v481_v21  ;;  %v211_v23 = vpop.f32.mrb[3].mxu1  ;;  %v378_v30 = vmul.f32 %v473_v20, %v473_v20  ;;  %v386_v62 = vmul.f32 %v481_v21, %v481_v21 }
  0xf9   :  { %240 = vst [vmem:[%s642_s2 + $0x8] sm:$0xff] %v179_v22  ;;  %v354_v25 = vadd.f32 %v179_v22, %v176_v18  ;;  %v376_v26 = vmul.f32 %v179_v22, %v179_v22  ;;  %248 = vst [vmem:[%s642_s2 + $0x48] sm:$0xff] %v211_v23  ;;  %v384_v58 = vmul.f32 %v211_v23, %v211_v23 }
  0xfb   :  { %v355_v28 = vadd.f32 %v472_v16, %v354_v25  ;;  %v391_v29 = vadd.f32 %v376_v26, %v375_v24 }
  0xfd   :  { %v392_v31 = vadd.f32 %v391_v29, %v377_v27  ;;  %v476_v32 = vpop.f32.mrb[4].mxu0  ;;  %v356_v33 = vadd.f32 %v473_v20, %v355_v28  ;;  %v484_v34 = vpop.f32.mrb[4].mxu1 }
  0xfe   :  { %245 = vst [vmem:[%s642_s2 + $0x30] sm:$0xff] %v476_v32  ;;  %v192_v35 = vpop.f32.mrb[5].mxu0  ;;  %253 = vst [vmem:[%s642_s2 + $0x70] sm:$0xff] %v484_v34  ;;  %v224_v36 = vpop.f32.mrb[5].mxu1  ;;  %v381_v47 = vmul.f32 %v476_v32, %v476_v32  ;;  %v389_v7 = vmul.f32 %v484_v34, %v484_v34 }
  0xff   :  { %243 = vst [vmem:[%s642_s2 + $0x20] sm:$0xff] %v192_v35  ;;  %v357_v37 = vadd.f32 %v356_v33, %v192_v35  ;;  %v379_v38 = vmul.f32 %v192_v35, %v192_v35  ;;  %v393_v39 = vadd.f32 %v392_v31, %v378_v30  ;;  %v477_v40 = vpop.f32.mrb[6].mxu0  ;;  %251 = vst [vmem:[%s642_s2 + $0x60] sm:$0xff] %v224_v36  ;;  %v485_v41 = vpop.f32.mrb[6].mxu1 }
 0x100   :  { %246 = vst [vmem:[%s642_s2 + $0x38] sm:$0xff] %v477_v40  ;;  %v195_v42 = vpop.f32.mrb[7].mxu0  ;;  %254 = vst [vmem:[%s642_s2 + $0x78] sm:$0xff] %v485_v41  ;;  %v227_v43 = vpop.f32.mrb[7].mxu1  ;;  %v382_v50 = vmul.f32 %v477_v40, %v477_v40  ;;  %v387_v1 = vmul.f32 %v224_v36, %v224_v36  ;;  %v390_v10 = vmul.f32 %v485_v41, %v485_v41 }
 0x101   :  { %v394_v44 = vadd.f32 %v393_v39, %v379_v38  ;;  %244 = vst [vmem:[%s642_s2 + $0x28] sm:$0xff] %v195_v42  ;;  %v358_v45 = vadd.f32 %v357_v37, %v195_v42  ;;  %v380_v46 = vmul.f32 %v195_v42, %v195_v42  ;;  %252 = vst [vmem:[%s642_s2 + $0x68] sm:$0xff] %v227_v43 }
 0x102   :  { %v388_v6 = vmul.f32 %v227_v43, %v227_v43 }
 0x103   :  { %v359_v48 = vadd.f32 %v476_v32, %v358_v45  ;;  %v395_v49 = vadd.f32 %v394_v44, %v380_v46 }
 0x105   :  { %v396_v51 = vadd.f32 %v395_v49, %v381_v47  ;;  %v360_v52 = vadd.f32 %v477_v40, %v359_v48 }
 0x107   :  { %v361_v54 = vadd.f32 %v360_v52, %v208_v19  ;;  %v397_v55 = vadd.f32 %v396_v51, %v382_v50 }
 0x109   :  { %v398_v56 = vadd.f32 %v397_v55, %v383_v53  ;;  %v362_v57 = vadd.f32 %v361_v54, %v211_v23 }
 0x10b   :  { %v363_v60 = vadd.f32 %v480_v17, %v362_v57  ;;  %v399_v61 = vadd.f32 %v398_v56, %v384_v58 }
 0x10d   :  { %v400_v63 = vadd.f32 %v399_v61, %v385_v59  ;;  %v364_v0 = vadd.f32 %v481_v21, %v363_v60 }
 0x10f   :  { %v365_v2 = vadd.f32 %v364_v0, %v224_v36  ;;  %v401_v3 = vadd.f32 %v400_v63, %v386_v62 }
 0x111   :  { %v402_v4 = vadd.f32 %v401_v3, %v387_v1  ;;  %v366_v5 = vadd.f32 %v365_v2, %v227_v43 }
 0x113   :  { %v367_v8 = vadd.f32 %v484_v34, %v366_v5  ;;  %v403_v9 = vadd.f32 %v402_v4, %v388_v6 }
 0x115   :  { %v368_v11 = vadd.f32 %v485_v41, %v367_v8  ;;  %v404_v12 = vadd.f32 %v403_v9, %v389_v7 }
 0x117   :  { %v369_v13 = vrot.slane %v368_v11, 4  ;;  %v405_v14 = vadd.f32 %v404_v12, %v390_v10 }
 0x119   :  { %v370_v15 = vadd.f32 %v369_v13, %v368_v11  ;;  %v406_v16 = vrot.slane %v405_v14, 4 }
 0x11b   :  { %v371_v17 = vrot.slane %v370_v15, 2  ;;  %v407_v18 = vadd.f32 %v406_v16, %v405_v14 }
 0x11d   :  { %v372_v19 = vadd.f32 %v371_v17, %v370_v15  ;;  %v408_v20 = vrot.slane %v407_v18, 2 }
 0x11f   :  { %v373_v21 = vrot.slane %v372_v19, 1  ;;  %v409_v22 = vadd.f32 %v408_v20, %v407_v18 }
 0x121   :  { %v374_v23 = vadd.f32 %v373_v21, %v372_v19  ;;  %v410_v24 = vrot.slane %v409_v22, 1 }
 0x123   :  { %v411_v25 = vadd.f32 %v410_v24, %v409_v22  ;;  %412 = vst [vmem:[%s643_s3] sm:$0x1] %v374_v23 }
 0x125   :  { %413 = vst [vmem:[%s643_s3 + $0x1] sm:$0x1] %v411_v25 }

// kernel: bottleneck_forward.11
= control target key start
LH: loop header
LB: loop body
LE: loop exit
PB: predicated region body
PF: predicated region fallthrough
CT: control target
= control target key end

     0   :  { %v61_v16 = vlaneseq  ;;  %s525_s0 = inlined_call_operand.vmem [shape: f32[128,128], index: 0, kind: input, shape index: {}]   ;;  %s526_s1 = inlined_call_operand.vmem [shape: f32[2,128], index: 1, kind: input, shape index: {}]   ;;  %s527_s2 = inlined_call_operand.vmem [shape: f32[1,128], index: 2, kind: input, shape index: {}]   ;;  %s528_s3 = inlined_call_operand.vmem [shape: f32[1,128], index: 3, kind: input, shape index: {}]   ;;  %s529_s4 = inlined_call_operand.vmem [shape: f32[128,128], index: 4, kind: input, shape index: {}]   ;;  %s530_s5 = inlined_call_operand.vmem [shape: f32[2,128], index: 5, kind: input, shape index: {}]   ;;  %s531_s6 = inlined_call_operand.vmem [shape: f32[1,128], index: 6, kind: input, shape index: {}]   ;;  %s532_s7 = inlined_call_operand.vmem [shape: f32[1,128], index: 7, kind: input, shape index: {}]   ;;  %s533_s8 = inlined_call_operand.hbm [shape: f32[128,128], index: 8, kind: output, shape index: {}]  }
   0x1   :  { %v30_v0 = vld [vmem:[%s526_s1] sm:$0x1]  ;;  %v32_v1 = vld [vmem:[%s526_s1 + $0x1] sm:$0x1] }
   0x2   :  { %v31_v2 = vmul.f32 0.0078125, %v30_v0  ;;  %v33_v3 = vmul.f32 0.0078125, %v32_v1  ;;  %v104_v4 = vld [vmem:[%s530_s5] sm:$0x1]  ;;  %v106_v5 = vld [vmem:[%s530_s5 + $0x1] sm:$0x1] }
   0x3   :  { %v105_v7 = vmul.f32 0.0078125, %v104_v4  ;;  %v107_v8 = vmul.f32 0.0078125, %v106_v5 }
   0x4   :  { %v34_v6 = vmul.f32 %v31_v2, %v31_v2 }
   0x5   :  { %v108_v10 = vmul.f32 %v105_v7, %v105_v7 }
   0x6   :  { %v35_v9 = vsub.f32 %v33_v3, %v34_v6 }
   0x7   :  { %v109_v12 = vsub.f32 %v107_v8, %v108_v10 }
   0x8   :  { %v36_v11 = vmax.f32 %v35_v9, 0.0 }
   0x9   :  { %v110_v14 = vmax.f32 %v109_v12, 0.0 }
   0xa   :  { %v38_v13 = vadd.f32 1e-05, %v36_v11 }
   0xb   :  { %v112_v15 = vadd.f32 1e-05, %v110_v14 }
   0xc   :  { %245 = vrsqrt.f32 %v38_v13 }
   0xd   :  { %247 = vrsqrt.f32 %v112_v15 }
   0xe   :  { %13 = vsyncpa [#allocation3], 0  ;;  %v62_v17 = vshrl.u32 %v61_v16, 7  ;;  %v37_v18 = vld [vmem:[%s527_s2] sm:$0x1]  ;;  %v45_v27 = vld [vmem:[%s525_s0 + $0x8] sm:$0xff] }
   0xf   :  { %v111_v21 = vld [vmem:[%s531_s6] sm:$0x1]  ;;  %v46_v31 = vld [vmem:[%s525_s0 + $0x10] sm:$0xff]  ;;  %v47_v32 = vld [vmem:[%s525_s0 + $0x18] sm:$0xff] }
  0x10   :  { %v63_v19 = vsub.s32 0, %v62_v17  ;;  %v41_v23 = vld [vmem:[%s528_s3] sm:$0x1]  ;;  %v119_v35 = vld [vmem:[%s529_s4 + $0x8] sm:$0xff]  ;;  %v120_v36 = vld [vmem:[%s529_s4 + $0x10] sm:$0xff] }
  0x11   :  { %v44_v25 = vld [vmem:[%s525_s0] sm:$0xff]  ;;  %v121_v41 = vld [vmem:[%s529_s4 + $0x18] sm:$0xff]  ;;  %v49_v43 = vld [vmem:[%s525_s0 + $0x28] sm:$0xff] }
  0x12   :  { %v118_v26 = vld [vmem:[%s529_s4] sm:$0xff]  ;;  %v123_v52 = vld [vmem:[%s529_s4 + $0x28] sm:$0xff]  ;;  %v50_v61 = vld [vmem:[%s525_s0 + $0x30] sm:$0xff] }
  0x13   :  { %v48_v33 = vld [vmem:[%s525_s0 + $0x20] sm:$0xff]  ;;  %v124_v62 = vld [vmem:[%s529_s4 + $0x30] sm:$0xff]  ;;  %v51_v15 = vld [vmem:[%s525_s0 + $0x38] sm:$0xff] }
  0x14   :  { %v115_v34 = vld [vmem:[%s532_s7] sm:$0x1]  ;;  %v125_v16 = vld [vmem:[%s529_s4 + $0x38] sm:$0xff] }
  0x15   :  { %v122_v42 = vld [vmem:[%s529_s4 + $0x20] sm:$0xff] }
  0x16   :  { %v246_v20 = vpop.eup %245 }
  0x17   :  { %v40_v22 = vmul.f32 %v246_v20, %v37_v18  ;;  %v248_v24 = vpop.eup %247 }
  0x18   :  { %v114_v30 = vmul.f32 %v248_v24, %v111_v21  ;;  %v52_v21 = vld [vmem:[%s525_s0 + $0x40] sm:$0xff] }
  0x19   :  { %v42_v28 = vmul.f32 %v40_v22, %v31_v2  ;;  %v351_v29 = vrot.slane %v40_v22, %v63_v19  ;;  %v126_v22 = vld [vmem:[%s529_s4 + $0x40] sm:$0xff] }
  0x1a   :  { %v116_v39 = vmul.f32 %v114_v30, %v105_v7  ;;  %v372_v40 = vrot.slane %v114_v30, %v63_v19  ;;  %v54_v30 = vld [vmem:[%s525_s0 + $0x50] sm:$0xff] }
  0x1b   :  { %v43_v37 = vsub.f32 %v41_v23, %v42_v28  ;;  %v66_v38 = vmul.f32 %v351_v29, %v44_v25  ;;  %v67_v44 = vmul.f32 %v351_v29, %v45_v27  ;;  %v68_v45 = vmul.f32 %v351_v29, %v46_v31  ;;  %v53_v23 = vld [vmem:[%s525_s0 + $0x48] sm:$0xff] }
  0x1c   :  { %v69_v46 = vmul.f32 %v351_v29, %v47_v32  ;;  %v70_v47 = vmul.f32 %v351_v29, %v48_v33  ;;  %v117_v49 = vsub.f32 %v115_v34, %v116_v39  ;;  %v140_v50 = vmul.f32 %v372_v40, %v118_v26  ;;  %v127_v28 = vld [vmem:[%s529_s4 + $0x48] sm:$0xff]  ;;  %v128_v39 = vld [vmem:[%s529_s4 + $0x50] sm:$0xff] }
  0x1d   :  { %v387_v48 = vrot.slane %v43_v37, %v63_v19  ;;  %v141_v51 = vmul.f32 %v372_v40, %v119_v35  ;;  %v142_v53 = vmul.f32 %v372_v40, %v120_v36  ;;  %v143_v54 = vmul.f32 %v372_v40, %v121_v41  ;;  %v55_v41 = vld [vmem:[%s525_s0 + $0x58] sm:$0xff] }
  0x1e   :  { %v144_v55 = vmul.f32 %v372_v40, %v122_v42  ;;  %v71_v56 = vmul.f32 %v351_v29, %v49_v43  ;;  %v399_v58 = vrot.slane %v117_v49, %v63_v19  ;;  %v145_v2 = vmul.f32 %v372_v40, %v123_v52 }
  0x1f   :  { %v88_v57 = vadd.f32 %v387_v48, %v66_v38  ;;  %v89_v59 = vadd.f32 %v387_v48, %v67_v44  ;;  %v90_v60 = vadd.f32 %v387_v48, %v68_v45  ;;  %v91_v63 = vadd.f32 %v387_v48, %v69_v46  ;;  %v129_v46 = vld [vmem:[%s529_s4 + $0x58] sm:$0xff] }
  0x20   :  { %v92_v0 = vadd.f32 %v387_v48, %v70_v47  ;;  %v93_v1 = vadd.f32 %v387_v48, %v71_v56  ;;  %v162_v3 = vadd.f32 %v399_v58, %v140_v50  ;;  %v163_v4 = vadd.f32 %v399_v58, %v141_v51  ;;  %v56_v47 = vld [vmem:[%s525_s0 + $0x60] sm:$0xff] }
  0x21   :  { %v164_v5 = vadd.f32 %v399_v58, %v142_v53  ;;  %v165_v6 = vadd.f32 %v399_v58, %v143_v54  ;;  %v166_v7 = vadd.f32 %v399_v58, %v144_v55  ;;  %v167_v8 = vadd.f32 %v399_v58, %v145_v2  ;;  %v130_v53 = vld [vmem:[%s529_s4 + $0x60] sm:$0xff] }
  0x22   :  { %v72_v9 = vmul.f32 %v351_v29, %v50_v61  ;;  %v146_v10 = vmul.f32 %v372_v40, %v124_v62  ;;  %v178_v11 = vadd.f32 %v162_v3, %v88_v57  ;;  %v179_v12 = vadd.f32 %v163_v4, %v89_v59  ;;  %v131_v4 = vld [vmem:[%s529_s4 + $0x68] sm:$0xff] }
  0x23   :  { %v180_v13 = vadd.f32 %v164_v5, %v90_v60  ;;  %v181_v14 = vadd.f32 %v165_v6, %v91_v63  ;;  %v182_v17 = vadd.f32 %v166_v7, %v92_v0  ;;  %v183_v18 = vadd.f32 %v167_v8, %v93_v1  ;;  %v57_v63 = vld [vmem:[%s525_s0 + $0x68] sm:$0xff]  ;;  %v58_v5 = vld [vmem:[%s525_s0 + $0x70] sm:$0xff] }
  0x24   :  { %v94_v19 = vadd.f32 %v387_v48, %v72_v9  ;;  %v168_v20 = vadd.f32 %v399_v58, %v146_v10  ;;  %v194_v24 = vmax.f32 %v178_v11, 0.0  ;;  %v195_v25 = vmax.f32 %v179_v12, 0.0  ;;  %v132_v6 = vld [vmem:[%s529_s4 + $0x70] sm:$0xff]  ;;  %v59_v11 = vld [vmem:[%s525_s0 + $0x78] sm:$0xff]  ;;  %s273_s0 = smov [#allocation2]  }
  0x25   :  { %v196_v26 = vmax.f32 %v180_v13, 0.0  ;;  %v197_v27 = vmax.f32 %v181_v14, 0.0  ;;  %v198_v31 = vmax.f32 %v182_v17, 0.0  ;;  %v199_v32 = vmax.f32 %v183_v18, 0.0 }
  0x26   :  { %v184_v33 = vadd.f32 %v168_v20, %v94_v19  ;;  %v73_v34 = vmul.f32 %v351_v29, %v51_v15  ;;  %210 = vst [vmem:[#allocation2] sm:$0xff] %v194_v24  ;;  %211 = vst [vmem:[#allocation2 + $0x8] sm:$0xff] %v195_v25  ;;  %v147_v35 = vmul.f32 %v372_v40, %v125_v16  ;;  %v133_v20 = vld [vmem:[%s529_s4 + $0x78] sm:$0xff]  ;;  %s231_s4 = sshll.u32 %s273_s0, 4  ;;  %s232_s4 = int_to_ptr.vmem [resolvable:$true] %s231_s4 }
  0x27   :  { %212 = vst [vmem:[#allocation2 + $0x10] sm:$0xff] %v196_v26  ;;  %213 = vst [vmem:[#allocation2 + $0x18] sm:$0xff] %v197_v27  ;;  %v74_v36 = vmul.f32 %v351_v29, %v52_v21  ;;  %v148_v37 = vmul.f32 %v372_v40, %v126_v22  ;;  %v75_v38 = vmul.f32 %v351_v29, %v53_v23  ;;  %s249_s24 = scalar_lea.vmem %s232_s4, 2048  ;;  %p254_p1 = scmp.lt.s32.totalorder %s232_s4, %s232_s4 }
  0x28   :  { %214 = vst [vmem:[#allocation2 + $0x20] sm:$0xff] %v198_v31  ;;  %215 = vst [vmem:[#allocation2 + $0x28] sm:$0xff] %v199_v32  ;;  %v200_v42 = vmax.f32 %v184_v33, 0.0  ;;  %v95_v43 = vadd.f32 %v387_v48, %v73_v34  ;;  %v149_v44 = vmul.f32 %v372_v40, %v127_v28  ;;  %v76_v45 = vmul.f32 %v351_v29, %v54_v30  ;;  %p250_p0 = scmp.ne.s32.totalorder %s232_s4, %s249_s24  ;;  %p255_p2 = scmp.lt.s32.totalorder %s249_s24, %s249_s24 }
  0x29   :  { %v169_v49 = vadd.f32 %v399_v58, %v147_v35  ;;  %v96_v50 = vadd.f32 %v387_v48, %v74_v36  ;;  %v170_v51 = vadd.f32 %v399_v58, %v148_v37  ;;  %v97_v52 = vadd.f32 %v387_v48, %v75_v38 }
  0x2a   :  { %216 = vst [vmem:[#allocation2 + $0x30] sm:$0xff] %v200_v42  ;;  %v171_v54 = vadd.f32 %v399_v58, %v149_v44  ;;  %v98_v55 = vadd.f32 %v387_v48, %v76_v45  ;;  %v150_v56 = vmul.f32 %v372_v40, %v128_v39  ;;  %v77_v57 = vmul.f32 %v351_v29, %v55_v41  ;;  %p256_p3 = por %p255_p2, %p254_p1 }
  0x2b   :  { %v185_v59 = vadd.f32 %v169_v49, %v95_v43  ;;  %v186_v60 = vadd.f32 %v170_v51, %v96_v50  ;;  %v151_v61 = vmul.f32 %v372_v40, %v129_v46  ;;  %v78_v62 = vmul.f32 %v351_v29, %v56_v47 }
  0x2c   :  { %v187_v0 = vadd.f32 %v171_v54, %v97_v52  ;;  %v172_v1 = vadd.f32 %v399_v58, %v150_v56  ;;  %v99_v2 = vadd.f32 %v387_v48, %v77_v57  ;;  %v152_v3 = vmul.f32 %v372_v40, %v130_v53  ;;  %p257_p4 = pnand %p256_p3, %p250_p0 }
  0x2d   :  { %v201_v7 = vmax.f32 %v185_v59, 0.0  ;;  %v202_v8 = vmax.f32 %v186_v60, 0.0  ;;  %v173_v9 = vadd.f32 %v399_v58, %v151_v61  ;;  %v100_v10 = vadd.f32 %v387_v48, %v78_v62 }
  0x2e   :  { %v203_v12 = vmax.f32 %v187_v0, 0.0  ;;  %v188_v13 = vadd.f32 %v172_v1, %v98_v55  ;;  %v174_v14 = vadd.f32 %v399_v58, %v152_v3  ;;  %v79_v15 = vmul.f32 %v351_v29, %v57_v63 }
  0x2f   :  { %217 = vst [vmem:[#allocation2 + $0x38] sm:$0xff] %v201_v7  ;;  %218 = vst [vmem:[#allocation2 + $0x40] sm:$0xff] %v202_v8  ;;  %v189_v16 = vadd.f32 %v173_v9, %v99_v2  ;;  %v153_v17 = vmul.f32 %v372_v40, %v131_v4  ;;  %v80_v18 = vmul.f32 %v351_v29, %v58_v5 }
  0x30   :  { %v154_v19 = vmul.f32 %v372_v40, %v132_v6  ;;  %219 = vst [vmem:[#allocation2 + $0x48] sm:$0xff] %v203_v12  ;;  %v204_v21 = vmax.f32 %v188_v13, 0.0  ;;  %v190_v22 = vadd.f32 %v174_v14, %v100_v10  ;;  %v101_v23 = vadd.f32 %v387_v48, %v79_v15 }
  0x31   :  { %v81_v24 = vmul.f32 %v351_v29, %v59_v11  ;;  %v205_v25 = vmax.f32 %v189_v16, 0.0  ;;  %v175_v26 = vadd.f32 %v399_v58, %v153_v17  ;;  %v102_v27 = vadd.f32 %v387_v48, %v80_v18 }
  0x32   :  { %v176_v28 = vadd.f32 %v399_v58, %v154_v19  ;;  %220 = vst [vmem:[#allocation2 + $0x50] sm:$0xff] %v204_v21  ;;  %v206_v30 = vmax.f32 %v190_v22, 0.0  ;;  %v155_v32 = vmul.f32 %v372_v40, %v133_v20 }
  0x33   :  { %v103_v31 = vadd.f32 %v387_v48, %v81_v24  ;;  %221 = vst [vmem:[#allocation2 + $0x58] sm:$0xff] %v205_v25  ;;  %v191_v33 = vadd.f32 %v175_v26, %v101_v23 }
  0x34   :  { %v192_v34 = vadd.f32 %v176_v28, %v102_v27  ;;  %222 = vst [vmem:[#allocation2 + $0x60] sm:$0xff] %v206_v30  ;;  %v177_v35 = vadd.f32 %v399_v58, %v155_v32 }
  0x35   :  { %v207_v29 = vmax.f32 %v191_v33, 0.0 }
  0x36   :  { %v208_v36 = vmax.f32 %v192_v34, 0.0  ;;  %v193_v37 = vadd.f32 %v177_v35, %v103_v31 }
  0x37   :  { %223 = vst [vmem:[#allocation2 + $0x68] sm:$0xff] %v207_v29 }
  0x38   :  { %224 = vst [vmem:[#allocation2 + $0x70] sm:$0xff] %v208_v36  ;;  %v209_v38 = vmax.f32 %v193_v37, 0.0 }
  0x3a   :  { %225 = vst [vmem:[#allocation2 + $0x78] sm:$0xff] %v209_v38 }
  0x3b   :  { %260 = shalt.err (!%p257_p4)
}
  0x3c   :  { %s261_s27 = scalar_lea.hbm %s533_s8, 2048 }
  0x3d   :  { %p262_p5 = scmp.ne.s32.totalorder %s533_s8, %s261_s27  ;;  %p265_p6 = scmp.lt.u32.totalorder %s261_s27, %s533_s8 }
  0x3f   :  { %p267_p7 = pnand %p265_p6, %p262_p5 }
  0x41   :  { %270 = shalt.err (!%p267_p7)
}
  0x42   :  { %s274_s10 = smov 128   ;;  %s275_s11 = smov 8  }
  0x43   :  { %237 = dma.vmem_to_hbm [thread:$0]  %s232_s4, 2048, %s533_s8, [#allocation3], %s274_s10, %s274_s10, %s275_s11  }
  0x44   :  { %271 = dma.done.wait [#allocation3], 2048  }
  0x45   :  { %272 = vsyncadd [#allocation3], 4294965248 }
  0x46   :  { %241 = vsyncpa [#allocation3], 1 }

</bundles_post_ra>
